<compile_context>
chip_gen: v6e
topology: v6e:2x2x1
jax: 0.10.0
libtpu: 0.0.40
codegen_flags: <defaults>
</compile_context>

<pallas_src>
import functools

import jax
import jax.numpy as jnp
from jax.experimental import pallas as pl
from jax.experimental.pallas import tpu as pltpu

BLOCK_COUNT = 3  # matches CRPblock(feats, block_count=3)


def _crp_kernel(x_ref, w_ref, out_ref, *, H, W, C):
    """x_ref/out_ref: (M, W*C) with M = nb*H; w_ref: (BLOCK_COUNT, 9, W*C, W*C) bf16."""
    M, WC = x_ref.shape
    f32 = jnp.float32

    # ---- ReLU (not in-place, like the reference) ----
    x = jnp.maximum(x_ref[...].astype(f32), 0.0)
    acc = x
    path = x

    # ---- hoisted border masks (built once; JAX does not CSE broadcasts) ----
    lane = jax.lax.broadcasted_iota(jnp.int32, (M, WC), 1)        # lane = w*C + c
    row = jax.lax.broadcasted_iota(jnp.int32, (M, WC), 0) % H     # row within image
    zeros = jnp.zeros((M, WC), f32)

    def w_border(d):   # True where source column w+d falls outside [0, W)
        return lane >= (W - d) * C if d > 0 else lane < (-d) * C

    def h_border(d):   # True where source row r+d falls outside the same image
        return row >= H - d if d > 0 else row < -d

    wmsk = {d: w_border(d) for d in (-2, -1, 1, 2)}
    hmsk = {d: h_border(d) for d in (-2, -1, 1, 2)}
    conv_msk = {}
    for dy in (-1, 0, 1):
        for dx in (-1, 0, 1):
            if dy == 0 and dx == 0:
                conv_msk[(dy, dx)] = None
            elif dy == 0:
                conv_msk[(dy, dx)] = wmsk[dx]
            elif dx == 0:
                conv_msk[(dy, dx)] = hmsk[dy]
            else:
                conv_msk[(dy, dx)] = jnp.logical_or(wmsk[dx], hmsk[dy])

    # shifted[p] = src[p + d]  (roll by -d; borders handled by the masks above)
    def shift_w(v, d):
        return pltpu.roll(v, (-d * C) % WC, axis=1)

    def shift_h(v, d):
        return pltpu.roll(v, (-d) % M, axis=0)

    for b in range(BLOCK_COUNT):
        # -- MaxPool2d(5, stride=1, pad=2), separable: 1x5 along W then 5x1 along H --
        wmax = path
        for d in (-2, -1, 1, 2):
            cand = shift_w(path, d)
            wmax = jnp.where(wmsk[d], wmax, jnp.maximum(wmax, cand))      # -inf border
        pooled = wmax
        for d in (-2, -1, 1, 2):
            cand = shift_h(wmax, d)
            pooled = jnp.where(hmsk[d], pooled, jnp.maximum(pooled, cand))

        # -- Conv2d(C, C, 3, pad=1, bias=False): nine accumulating block-diagonal
        #    (M, WC) @ (WC, WC) matmuls, bf16 operands, f32 accumulation --
        conv = zeros
        t = 0
        for dy in (-1, 0, 1):
            for dx in (-1, 0, 1):
                tap = pooled
                if dx != 0:
                    tap = shift_w(tap, dx)
                if dy != 0:
                    tap = shift_h(tap, dy)
                m = conv_msk[(dy, dx)]
                if m is not None:
                    tap = jnp.where(m, zeros, tap)                         # zero border
                conv = conv + jnp.dot(tap.astype(jnp.bfloat16), w_ref[b, t],
                                      preferred_element_type=jnp.float32)
                t += 1

        path = conv            # stays f32 (residual math on the VPU stays f32)
        acc = acc + path

    out_ref[...] = acc.astype(out_ref.dtype)   # lane-dense (last dim = W*C) stores


def crp_block(x_nchw, weights_hwio):
    """x_nchw: (N, C, H, W).  weights_hwio: (BLOCK_COUNT, 3, 3, Cin, Cout)."""
    n, c, h, w = x_nchw.shape
    wc = w * c

    # Lane-packed NHWC with batch folded into rows: (N*H, W*C), lane = w*C + c.
    x_packed = jnp.transpose(x_nchw, (0, 2, 3, 1)).reshape(n * h, wc)

    # Block-diagonal ("kron") per-tap weights:
    #   big_w[b, t, w*C+ci, v*C+co] = weights[b, ky, kx, ci, co] if w == v else 0
    # with t = ky*3 + kx, so each tap matmul keeps the data lane-packed.
    w_taps = weights_hwio.reshape(BLOCK_COUNT, 9, c, c).astype(jnp.float32)
    eye_w = jnp.eye(w, dtype=jnp.float32)
    big_w = jnp.einsum('wv,btio->btwivo', eye_w, w_taps)       # (B, 9, W, C, W, C)
    big_w = big_w.reshape(BLOCK_COUNT, 9, wc, wc).astype(jnp.bfloat16)

    # Two chunks so v7x's two TensorCores split the batch; each chunk folds
    # n/num_chunks batch elements into the matmul M dimension.
    n_chunks = 2 if (n >= 2 and n % 2 == 0) else 1
    m = (n // n_chunks) * h

    kernel = functools.partial(_crp_kernel, H=h, W=w, C=c)
    out_packed = pl.pallas_call(
        kernel,
        out_shape=jax.ShapeDtypeStruct((n * h, wc), x_packed.dtype),
        grid=(n_chunks,),
        in_specs=[
            pl.BlockSpec((m, wc), lambda i: (i, 0)),
            # Constant-index weights: single-buffered (no refetch, saves VMEM).
            pl.BlockSpec((BLOCK_COUNT, 9, wc, wc), lambda i: (0, 0, 0, 0),
                         pipeline_mode=pl.Buffered(1)),
        ],
        out_specs=pl.BlockSpec((m, wc), lambda i: (i, 0)),
        compiler_params=pltpu.CompilerParams(
            dimension_semantics=("parallel",),        # split chunks across TCs (v7x)
            vmem_limit_bytes=32 * 1024 * 1024,        # generous; usage ~1 MiB
        ),
    )(x_packed, big_w)

    return jnp.transpose(out_packed.reshape(n, h, w, c), (0, 3, 1, 2))  # back to NCHW


def crp_ref(x_nchw, weights_hwio):
    """Pure-JAX reference mirroring the kernel's bf16-operand / f32-accumulate conv."""
    x = jnp.maximum(jnp.transpose(x_nchw, (0, 2, 3, 1)).astype(jnp.float32), 0.0)
    path = x
    acc = x
    w_bf = weights_hwio.astype(jnp.bfloat16)
    for b in range(BLOCK_COUNT):
        pooled = jax.lax.reduce_window(
            path, -jnp.inf, jax.lax.max,
            window_dimensions=(1, 5, 5, 1), window_strides=(1, 1, 1, 1),
            padding=((0, 0), (2, 2), (2, 2), (0, 0)))
        path = jax.lax.conv_general_dilated(
            pooled.astype(jnp.bfloat16), w_bf[b], window_strides=(1, 1),
            padding=((1, 1), (1, 1)),
            dimension_numbers=('NHWC', 'HWIO', 'NHWC'),
            preferred_element_type=jnp.float32)
        acc = acc + path
    return jnp.transpose(acc, (0, 3, 1, 2))


if __name__ == "__main__":
    key = jax.random.PRNGKey(0)
    kx, kw = jax.random.split(key)

    N, C, H, W = 4, 8, 16, 16  # feats = 8; W*C = 128 (exactly one lane-width)
    x = jax.random.normal(kx, (N, C, H, W), dtype=jnp.float32)

    # Deterministic conv weights (roughly PyTorch kaiming-uniform scale).
    fan_in = C * 3 * 3
    bound = 1.0 / (fan_in ** 0.5)
    weights = jax.random.uniform(
        kw, (BLOCK_COUNT, 3, 3, C, C), dtype=jnp.float32,
        minval=-bound, maxval=bound)

    out = crp_block(x, weights)
    jax.block_until_ready(out)

    ref = crp_ref(x, weights)
    assert out.shape == (N, C, H, W)
    err = float(jnp.max(jnp.abs(out - ref)))
    assert jnp.allclose(out, ref, atol=1e-3, rtol=1e-3), f"max abs err {err}"

    print("KERNEL_OK")
</pallas_src>

<mosaic_0001>
module attributes {stable_mosaic.version = 11 : i64} {
  func.func @_crp_kernel(%arg0: i32, %arg1: memref<32x128xf32, #tpu.memory_space<vmem>>, %arg2: memref<3x9x128x128xbf16, #tpu.memory_space<vmem>>, %arg3: memref<32x128xf32, #tpu.memory_space<vmem>>) attributes {dimension_semantics = [#tpu.dimension_semantics<parallel>], iteration_bounds = array<i64: 2>, scalar_prefetch = 0 : i64, scratch_operands = 0 : i64, tpu.core_type = #tpu.core_type<tc>, window_params = [{transform_indices = @transform_0, window_bounds = array<i64: 32, 128>}, {pipeline_mode = #tpu.pipeline_mode<synchronous>, transform_indices = @transform_1, window_bounds = array<i64: 3, 9, 128, 128>}, {transform_indices = @transform_2, window_bounds = array<i64: 32, 128>}]} {
    %c0 = arith.constant 0 : index
    %c0_0 = arith.constant 0 : index
    %0 = vector.load %arg1[%c0, %c0_0] : memref<32x128xf32, #tpu.memory_space<vmem>>, vector<32x128xf32>
    %cst = arith.constant 0.000000e+00 : f32
    %1 = vector.broadcast %cst : f32 to vector<32x128xf32>
    %2 = arith.maximumf %0, %1 : vector<32x128xf32>
    %3 = tpu.iota {dimensions = array<i32: 1>} : vector<32x128xi32>
    %4 = tpu.iota {dimensions = array<i32: 0>} : vector<32x128xi32>
    %c16_i32 = arith.constant 16 : i32
    %c0_i32 = arith.constant 0 : i32
    %5 = arith.cmpi eq, %c16_i32, %c0_i32 : i32
    %c1_i32 = arith.constant 1 : i32
    %6 = arith.select %5, %c1_i32, %c16_i32 : i32
    %7 = vector.broadcast %6 : i32 to vector<32x128xi32>
    %8 = arith.remsi %4, %7 : vector<32x128xi32>
    %c0_i32_1 = arith.constant 0 : i32
    %9 = vector.broadcast %c0_i32_1 : i32 to vector<32x128xi32>
    %10 = arith.cmpi ne, %8, %9 : vector<32x128xi32>
    %c0_i32_2 = arith.constant 0 : i32
    %11 = vector.broadcast %c0_i32_2 : i32 to vector<32x128xi32>
    %12 = arith.cmpi slt, %8, %11 : vector<32x128xi32>
    %c0_i32_3 = arith.constant 0 : i32
    %13 = arith.cmpi slt, %6, %c0_i32_3 : i32
    %14 = vector.broadcast %13 : i1 to vector<32x128xi1>
    %15 = vector.broadcast %14 : vector<32x128xi1> to vector<32x128xi1>
    %16 = arith.xori %12, %15 : vector<32x128xi1>
    %17 = arith.andi %16, %10 : vector<32x128xi1>
    %18 = vector.broadcast %6 : i32 to vector<32x128xi32>
    %19 = arith.addi %8, %18 : vector<32x128xi32>
    %20 = arith.select %17, %19, %8 : vector<32x128xi1>, vector<32x128xi32>
    %cst_4 = arith.constant 0.000000e+00 : f32
    %21 = vector.broadcast %cst_4 : f32 to vector<32x128xf32>
    %c16_i32_5 = arith.constant 16 : i32
    %22 = vector.broadcast %c16_i32_5 : i32 to vector<32x128xi32>
    %23 = arith.cmpi slt, %3, %22 : vector<32x128xi32>
    %c8_i32 = arith.constant 8 : i32
    %24 = vector.broadcast %c8_i32 : i32 to vector<32x128xi32>
    %25 = arith.cmpi slt, %3, %24 : vector<32x128xi32>
    %c120_i32 = arith.constant 120 : i32
    %26 = vector.broadcast %c120_i32 : i32 to vector<32x128xi32>
    %27 = arith.cmpi sge, %3, %26 : vector<32x128xi32>
    %c112_i32 = arith.constant 112 : i32
    %28 = vector.broadcast %c112_i32 : i32 to vector<32x128xi32>
    %29 = arith.cmpi sge, %3, %28 : vector<32x128xi32>
    %c2_i32 = arith.constant 2 : i32
    %30 = vector.broadcast %c2_i32 : i32 to vector<32x128xi32>
    %31 = arith.cmpi slt, %20, %30 : vector<32x128xi32>
    %c1_i32_6 = arith.constant 1 : i32
    %32 = vector.broadcast %c1_i32_6 : i32 to vector<32x128xi32>
    %33 = arith.cmpi slt, %20, %32 : vector<32x128xi32>
    %c15_i32 = arith.constant 15 : i32
    %34 = vector.broadcast %c15_i32 : i32 to vector<32x128xi32>
    %35 = arith.cmpi sge, %20, %34 : vector<32x128xi32>
    %c14_i32 = arith.constant 14 : i32
    %36 = vector.broadcast %c14_i32 : i32 to vector<32x128xi32>
    %37 = arith.cmpi sge, %20, %36 : vector<32x128xi32>
    %38 = arith.ori %25, %33 : vector<32x128xi1>
    %39 = arith.ori %27, %33 : vector<32x128xi1>
    %40 = arith.ori %25, %35 : vector<32x128xi1>
    %41 = arith.ori %27, %35 : vector<32x128xi1>
    %c16_i32_7 = arith.constant 16 : i32
    %42 = tpu.dynamic_rotate %2 by %c16_i32_7 dim 1 : vector<32x128xf32>, i32 -> vector<32x128xf32>
    %43 = arith.maximumf %2, %42 : vector<32x128xf32>
    %44 = arith.select %23, %2, %43 : vector<32x128xi1>, vector<32x128xf32>
    %c8_i32_8 = arith.constant 8 : i32
    %45 = tpu.dynamic_rotate %2 by %c8_i32_8 dim 1 : vector<32x128xf32>, i32 -> vector<32x128xf32>
    %46 = arith.maximumf %44, %45 : vector<32x128xf32>
    %47 = arith.select %25, %44, %46 : vector<32x128xi1>, vector<32x128xf32>
    %c120_i32_9 = arith.constant 120 : i32
    %48 = tpu.dynamic_rotate %2 by %c120_i32_9 dim 1 : vector<32x128xf32>, i32 -> vector<32x128xf32>
    %49 = arith.maximumf %47, %48 : vector<32x128xf32>
    %50 = arith.select %27, %47, %49 : vector<32x128xi1>, vector<32x128xf32>
    %c112_i32_10 = arith.constant 112 : i32
    %51 = tpu.dynamic_rotate %2 by %c112_i32_10 dim 1 : vector<32x128xf32>, i32 -> vector<32x128xf32>
    %52 = arith.maximumf %50, %51 : vector<32x128xf32>
    %53 = arith.select %29, %50, %52 : vector<32x128xi1>, vector<32x128xf32>
    %c2_i32_11 = arith.constant 2 : i32
    %54 = tpu.dynamic_rotate %53 by %c2_i32_11 dim 0 : vector<32x128xf32>, i32 -> vector<32x128xf32>
    %55 = arith.maximumf %53, %54 : vector<32x128xf32>
    %56 = arith.select %31, %53, %55 : vector<32x128xi1>, vector<32x128xf32>
    %c1_i32_12 = arith.constant 1 : i32
    %57 = tpu.dynamic_rotate %53 by %c1_i32_12 dim 0 : vector<32x128xf32>, i32 -> vector<32x128xf32>
    %58 = arith.maximumf %56, %57 : vector<32x128xf32>
    %59 = arith.select %33, %56, %58 : vector<32x128xi1>, vector<32x128xf32>
    %c31_i32 = arith.constant 31 : i32
    %60 = tpu.dynamic_rotate %53 by %c31_i32 dim 0 : vector<32x128xf32>, i32 -> vector<32x128xf32>
    %61 = arith.maximumf %59, %60 : vector<32x128xf32>
    %62 = arith.select %35, %59, %61 : vector<32x128xi1>, vector<32x128xf32>
    %c30_i32 = arith.constant 30 : i32
    %63 = tpu.dynamic_rotate %53 by %c30_i32 dim 0 : vector<32x128xf32>, i32 -> vector<32x128xf32>
    %64 = arith.maximumf %62, %63 : vector<32x128xf32>
    %65 = arith.select %37, %62, %64 : vector<32x128xi1>, vector<32x128xf32>
    %c8_i32_13 = arith.constant 8 : i32
    %66 = tpu.dynamic_rotate %65 by %c8_i32_13 dim 1 : vector<32x128xf32>, i32 -> vector<32x128xf32>
    %c1_i32_14 = arith.constant 1 : i32
    %67 = tpu.dynamic_rotate %66 by %c1_i32_14 dim 0 : vector<32x128xf32>, i32 -> vector<32x128xf32>
    %68 = arith.select %38, %21, %67 : vector<32x128xi1>, vector<32x128xf32>
    %69 = arith.truncf %68 : vector<32x128xf32> to vector<32x128xbf16>
    %c0_15 = arith.constant 0 : index
    %c0_16 = arith.constant 0 : index
    %c0_17 = arith.constant 0 : index
    %c0_18 = arith.constant 0 : index
    %70 = vector.load %arg2[%c0_15, %c0_16, %c0_17, %c0_18] : memref<3x9x128x128xbf16, #tpu.memory_space<vmem>>, vector<1x1x128x128xbf16>
    %71 = vector.shape_cast %70 : vector<1x1x128x128xbf16> to vector<128x128xbf16>
    %cst_19 = arith.constant dense<0.000000e+00> : vector<32x128xf32>
    %72 = tpu.matmul %69, %71, %cst_19 {dimension_numbers = #tpu.dot_dimension_numbers<[1], [0], [0], [1], [0, 0, 1, 1], [], []>} : vector<32x128xbf16>, vector<128x128xbf16>, vector<32x128xf32> -> vector<32x128xf32>
    %73 = arith.addf %21, %72 : vector<32x128xf32>
    %c1_i32_20 = arith.constant 1 : i32
    %74 = tpu.dynamic_rotate %65 by %c1_i32_20 dim 0 : vector<32x128xf32>, i32 -> vector<32x128xf32>
    %75 = arith.select %33, %21, %74 : vector<32x128xi1>, vector<32x128xf32>
    %76 = arith.truncf %75 : vector<32x128xf32> to vector<32x128xbf16>
    %c0_21 = arith.constant 0 : index
    %c1 = arith.constant 1 : index
    %c0_22 = arith.constant 0 : index
    %c0_23 = arith.constant 0 : index
    %77 = vector.load %arg2[%c0_21, %c1, %c0_22, %c0_23] : memref<3x9x128x128xbf16, #tpu.memory_space<vmem>>, vector<1x1x128x128xbf16>
    %78 = vector.shape_cast %77 : vector<1x1x128x128xbf16> to vector<128x128xbf16>
    %cst_24 = arith.constant dense<0.000000e+00> : vector<32x128xf32>
    %79 = tpu.matmul %76, %78, %cst_24 {dimension_numbers = #tpu.dot_dimension_numbers<[1], [0], [0], [1], [0, 0, 1, 1], [], []>} : vector<32x128xbf16>, vector<128x128xbf16>, vector<32x128xf32> -> vector<32x128xf32>
    %80 = arith.addf %73, %79 : vector<32x128xf32>
    %c120_i32_25 = arith.constant 120 : i32
    %81 = tpu.dynamic_rotate %65 by %c120_i32_25 dim 1 : vector<32x128xf32>, i32 -> vector<32x128xf32>
    %c1_i32_26 = arith.constant 1 : i32
    %82 = tpu.dynamic_rotate %81 by %c1_i32_26 dim 0 : vector<32x128xf32>, i32 -> vector<32x128xf32>
    %83 = arith.select %39, %21, %82 : vector<32x128xi1>, vector<32x128xf32>
    %84 = arith.truncf %83 : vector<32x128xf32> to vector<32x128xbf16>
    %c0_27 = arith.constant 0 : index
    %c2 = arith.constant 2 : index
    %c0_28 = arith.constant 0 : index
    %c0_29 = arith.constant 0 : index
    %85 = vector.load %arg2[%c0_27, %c2, %c0_28, %c0_29] : memref<3x9x128x128xbf16, #tpu.memory_space<vmem>>, vector<1x1x128x128xbf16>
    %86 = vector.shape_cast %85 : vector<1x1x128x128xbf16> to vector<128x128xbf16>
    %cst_30 = arith.constant dense<0.000000e+00> : vector<32x128xf32>
    %87 = tpu.matmul %84, %86, %cst_30 {dimension_numbers = #tpu.dot_dimension_numbers<[1], [0], [0], [1], [0, 0, 1, 1], [], []>} : vector<32x128xbf16>, vector<128x128xbf16>, vector<32x128xf32> -> vector<32x128xf32>
    %88 = arith.addf %80, %87 : vector<32x128xf32>
    %c8_i32_31 = arith.constant 8 : i32
    %89 = tpu.dynamic_rotate %65 by %c8_i32_31 dim 1 : vector<32x128xf32>, i32 -> vector<32x128xf32>
    %90 = arith.select %25, %21, %89 : vector<32x128xi1>, vector<32x128xf32>
    %91 = arith.truncf %90 : vector<32x128xf32> to vector<32x128xbf16>
    %c0_32 = arith.constant 0 : index
    %c3 = arith.constant 3 : index
    %c0_33 = arith.constant 0 : index
    %c0_34 = arith.constant 0 : index
    %92 = vector.load %arg2[%c0_32, %c3, %c0_33, %c0_34] : memref<3x9x128x128xbf16, #tpu.memory_space<vmem>>, vector<1x1x128x128xbf16>
    %93 = vector.shape_cast %92 : vector<1x1x128x128xbf16> to vector<128x128xbf16>
    %cst_35 = arith.constant dense<0.000000e+00> : vector<32x128xf32>
    %94 = tpu.matmul %91, %93, %cst_35 {dimension_numbers = #tpu.dot_dimension_numbers<[1], [0], [0], [1], [0, 0, 1, 1], [], []>} : vector<32x128xbf16>, vector<128x128xbf16>, vector<32x128xf32> -> vector<32x128xf32>
    %95 = arith.addf %88, %94 : vector<32x128xf32>
    %96 = arith.truncf %65 : vector<32x128xf32> to vector<32x128xbf16>
    %c0_36 = arith.constant 0 : index
    %c4 = arith.constant 4 : index
    %c0_37 = arith.constant 0 : index
    %c0_38 = arith.constant 0 : index
    %97 = vector.load %arg2[%c0_36, %c4, %c0_37, %c0_38] : memref<3x9x128x128xbf16, #tpu.memory_space<vmem>>, vector<1x1x128x128xbf16>
    %98 = vector.shape_cast %97 : vector<1x1x128x128xbf16> to vector<128x128xbf16>
    %cst_39 = arith.constant dense<0.000000e+00> : vector<32x128xf32>
    %99 = tpu.matmul %96, %98, %cst_39 {dimension_numbers = #tpu.dot_dimension_numbers<[1], [0], [0], [1], [0, 0, 1, 1], [], []>} : vector<32x128xbf16>, vector<128x128xbf16>, vector<32x128xf32> -> vector<32x128xf32>
    %100 = arith.addf %95, %99 : vector<32x128xf32>
    %c120_i32_40 = arith.constant 120 : i32
    %101 = tpu.dynamic_rotate %65 by %c120_i32_40 dim 1 : vector<32x128xf32>, i32 -> vector<32x128xf32>
    %102 = arith.select %27, %21, %101 : vector<32x128xi1>, vector<32x128xf32>
    %103 = arith.truncf %102 : vector<32x128xf32> to vector<32x128xbf16>
    %c0_41 = arith.constant 0 : index
    %c5 = arith.constant 5 : index
    %c0_42 = arith.constant 0 : index
    %c0_43 = arith.constant 0 : index
    %104 = vector.load %arg2[%c0_41, %c5, %c0_42, %c0_43] : memref<3x9x128x128xbf16, #tpu.memory_space<vmem>>, vector<1x1x128x128xbf16>
    %105 = vector.shape_cast %104 : vector<1x1x128x128xbf16> to vector<128x128xbf16>
    %cst_44 = arith.constant dense<0.000000e+00> : vector<32x128xf32>
    %106 = tpu.matmul %103, %105, %cst_44 {dimension_numbers = #tpu.dot_dimension_numbers<[1], [0], [0], [1], [0, 0, 1, 1], [], []>} : vector<32x128xbf16>, vector<128x128xbf16>, vector<32x128xf32> -> vector<32x128xf32>
    %107 = arith.addf %100, %106 : vector<32x128xf32>
    %c8_i32_45 = arith.constant 8 : i32
    %108 = tpu.dynamic_rotate %65 by %c8_i32_45 dim 1 : vector<32x128xf32>, i32 -> vector<32x128xf32>
    %c31_i32_46 = arith.constant 31 : i32
    %109 = tpu.dynamic_rotate %108 by %c31_i32_46 dim 0 : vector<32x128xf32>, i32 -> vector<32x128xf32>
    %110 = arith.select %40, %21, %109 : vector<32x128xi1>, vector<32x128xf32>
    %111 = arith.truncf %110 : vector<32x128xf32> to vector<32x128xbf16>
    %c0_47 = arith.constant 0 : index
    %c6 = arith.constant 6 : index
    %c0_48 = arith.constant 0 : index
    %c0_49 = arith.constant 0 : index
    %112 = vector.load %arg2[%c0_47, %c6, %c0_48, %c0_49] : memref<3x9x128x128xbf16, #tpu.memory_space<vmem>>, vector<1x1x128x128xbf16>
    %113 = vector.shape_cast %112 : vector<1x1x128x128xbf16> to vector<128x128xbf16>
    %cst_50 = arith.constant dense<0.000000e+00> : vector<32x128xf32>
    %114 = tpu.matmul %111, %113, %cst_50 {dimension_numbers = #tpu.dot_dimension_numbers<[1], [0], [0], [1], [0, 0, 1, 1], [], []>} : vector<32x128xbf16>, vector<128x128xbf16>, vector<32x128xf32> -> vector<32x128xf32>
    %115 = arith.addf %107, %114 : vector<32x128xf32>
    %c31_i32_51 = arith.constant 31 : i32
    %116 = tpu.dynamic_rotate %65 by %c31_i32_51 dim 0 : vector<32x128xf32>, i32 -> vector<32x128xf32>
    %117 = arith.select %35, %21, %116 : vector<32x128xi1>, vector<32x128xf32>
    %118 = arith.truncf %117 : vector<32x128xf32> to vector<32x128xbf16>
    %c0_52 = arith.constant 0 : index
    %c7 = arith.constant 7 : index
    %c0_53 = arith.constant 0 : index
    %c0_54 = arith.constant 0 : index
    %119 = vector.load %arg2[%c0_52, %c7, %c0_53, %c0_54] : memref<3x9x128x128xbf16, #tpu.memory_space<vmem>>, vector<1x1x128x128xbf16>
    %120 = vector.shape_cast %119 : vector<1x1x128x128xbf16> to vector<128x128xbf16>
    %cst_55 = arith.constant dense<0.000000e+00> : vector<32x128xf32>
    %121 = tpu.matmul %118, %120, %cst_55 {dimension_numbers = #tpu.dot_dimension_numbers<[1], [0], [0], [1], [0, 0, 1, 1], [], []>} : vector<32x128xbf16>, vector<128x128xbf16>, vector<32x128xf32> -> vector<32x128xf32>
    %122 = arith.addf %115, %121 : vector<32x128xf32>
    %c120_i32_56 = arith.constant 120 : i32
    %123 = tpu.dynamic_rotate %65 by %c120_i32_56 dim 1 : vector<32x128xf32>, i32 -> vector<32x128xf32>
    %c31_i32_57 = arith.constant 31 : i32
    %124 = tpu.dynamic_rotate %123 by %c31_i32_57 dim 0 : vector<32x128xf32>, i32 -> vector<32x128xf32>
    %125 = arith.select %41, %21, %124 : vector<32x128xi1>, vector<32x128xf32>
    %126 = arith.truncf %125 : vector<32x128xf32> to vector<32x128xbf16>
    %c0_58 = arith.constant 0 : index
    %c8 = arith.constant 8 : index
    %c0_59 = arith.constant 0 : index
    %c0_60 = arith.constant 0 : index
    %127 = vector.load %arg2[%c0_58, %c8, %c0_59, %c0_60] : memref<3x9x128x128xbf16, #tpu.memory_space<vmem>>, vector<1x1x128x128xbf16>
    %128 = vector.shape_cast %127 : vector<1x1x128x128xbf16> to vector<128x128xbf16>
    %cst_61 = arith.constant dense<0.000000e+00> : vector<32x128xf32>
    %129 = tpu.matmul %126, %128, %cst_61 {dimension_numbers = #tpu.dot_dimension_numbers<[1], [0], [0], [1], [0, 0, 1, 1], [], []>} : vector<32x128xbf16>, vector<128x128xbf16>, vector<32x128xf32> -> vector<32x128xf32>
    %130 = arith.addf %122, %129 : vector<32x128xf32>
    %131 = arith.addf %2, %130 : vector<32x128xf32>
    %c16_i32_62 = arith.constant 16 : i32
    %132 = tpu.dynamic_rotate %130 by %c16_i32_62 dim 1 : vector<32x128xf32>, i32 -> vector<32x128xf32>
    %133 = arith.maximumf %130, %132 : vector<32x128xf32>
    %134 = arith.select %23, %130, %133 : vector<32x128xi1>, vector<32x128xf32>
    %c8_i32_63 = arith.constant 8 : i32
    %135 = tpu.dynamic_rotate %130 by %c8_i32_63 dim 1 : vector<32x128xf32>, i32 -> vector<32x128xf32>
    %136 = arith.maximumf %134, %135 : vector<32x128xf32>
    %137 = arith.select %25, %134, %136 : vector<32x128xi1>, vector<32x128xf32>
    %c120_i32_64 = arith.constant 120 : i32
    %138 = tpu.dynamic_rotate %130 by %c120_i32_64 dim 1 : vector<32x128xf32>, i32 -> vector<32x128xf32>
    %139 = arith.maximumf %137, %138 : vector<32x128xf32>
    %140 = arith.select %27, %137, %139 : vector<32x128xi1>, vector<32x128xf32>
    %c112_i32_65 = arith.constant 112 : i32
    %141 = tpu.dynamic_rotate %130 by %c112_i32_65 dim 1 : vector<32x128xf32>, i32 -> vector<32x128xf32>
    %142 = arith.maximumf %140, %141 : vector<32x128xf32>
    %143 = arith.select %29, %140, %142 : vector<32x128xi1>, vector<32x128xf32>
    %c2_i32_66 = arith.constant 2 : i32
    %144 = tpu.dynamic_rotate %143 by %c2_i32_66 dim 0 : vector<32x128xf32>, i32 -> vector<32x128xf32>
    %145 = arith.maximumf %143, %144 : vector<32x128xf32>
    %146 = arith.select %31, %143, %145 : vector<32x128xi1>, vector<32x128xf32>
    %c1_i32_67 = arith.constant 1 : i32
    %147 = tpu.dynamic_rotate %143 by %c1_i32_67 dim 0 : vector<32x128xf32>, i32 -> vector<32x128xf32>
    %148 = arith.maximumf %146, %147 : vector<32x128xf32>
    %149 = arith.select %33, %146, %148 : vector<32x128xi1>, vector<32x128xf32>
    %c31_i32_68 = arith.constant 31 : i32
    %150 = tpu.dynamic_rotate %143 by %c31_i32_68 dim 0 : vector<32x128xf32>, i32 -> vector<32x128xf32>
    %151 = arith.maximumf %149, %150 : vector<32x128xf32>
    %152 = arith.select %35, %149, %151 : vector<32x128xi1>, vector<32x128xf32>
    %c30_i32_69 = arith.constant 30 : i32
    %153 = tpu.dynamic_rotate %143 by %c30_i32_69 dim 0 : vector<32x128xf32>, i32 -> vector<32x128xf32>
    %154 = arith.maximumf %152, %153 : vector<32x128xf32>
    %155 = arith.select %37, %152, %154 : vector<32x128xi1>, vector<32x128xf32>
    %c8_i32_70 = arith.constant 8 : i32
    %156 = tpu.dynamic_rotate %155 by %c8_i32_70 dim 1 : vector<32x128xf32>, i32 -> vector<32x128xf32>
    %c1_i32_71 = arith.constant 1 : i32
    %157 = tpu.dynamic_rotate %156 by %c1_i32_71 dim 0 : vector<32x128xf32>, i32 -> vector<32x128xf32>
    %158 = arith.select %38, %21, %157 : vector<32x128xi1>, vector<32x128xf32>
    %159 = arith.truncf %158 : vector<32x128xf32> to vector<32x128xbf16>
    %c1_72 = arith.constant 1 : index
    %c0_73 = arith.constant 0 : index
    %c0_74 = arith.constant 0 : index
    %c0_75 = arith.constant 0 : index
    %160 = vector.load %arg2[%c1_72, %c0_73, %c0_74, %c0_75] : memref<3x9x128x128xbf16, #tpu.memory_space<vmem>>, vector<1x1x128x128xbf16>
    %161 = vector.shape_cast %160 : vector<1x1x128x128xbf16> to vector<128x128xbf16>
    %cst_76 = arith.constant dense<0.000000e+00> : vector<32x128xf32>
    %162 = tpu.matmul %159, %161, %cst_76 {dimension_numbers = #tpu.dot_dimension_numbers<[1], [0], [0], [1], [0, 0, 1, 1], [], []>} : vector<32x128xbf16>, vector<128x128xbf16>, vector<32x128xf32> -> vector<32x128xf32>
    %163 = arith.addf %21, %162 : vector<32x128xf32>
    %c1_i32_77 = arith.constant 1 : i32
    %164 = tpu.dynamic_rotate %155 by %c1_i32_77 dim 0 : vector<32x128xf32>, i32 -> vector<32x128xf32>
    %165 = arith.select %33, %21, %164 : vector<32x128xi1>, vector<32x128xf32>
    %166 = arith.truncf %165 : vector<32x128xf32> to vector<32x128xbf16>
    %c1_78 = arith.constant 1 : index
    %c1_79 = arith.constant 1 : index
    %c0_80 = arith.constant 0 : index
    %c0_81 = arith.constant 0 : index
    %167 = vector.load %arg2[%c1_78, %c1_79, %c0_80, %c0_81] : memref<3x9x128x128xbf16, #tpu.memory_space<vmem>>, vector<1x1x128x128xbf16>
    %168 = vector.shape_cast %167 : vector<1x1x128x128xbf16> to vector<128x128xbf16>
    %cst_82 = arith.constant dense<0.000000e+00> : vector<32x128xf32>
    %169 = tpu.matmul %166, %168, %cst_82 {dimension_numbers = #tpu.dot_dimension_numbers<[1], [0], [0], [1], [0, 0, 1, 1], [], []>} : vector<32x128xbf16>, vector<128x128xbf16>, vector<32x128xf32> -> vector<32x128xf32>
    %170 = arith.addf %163, %169 : vector<32x128xf32>
    %c120_i32_83 = arith.constant 120 : i32
    %171 = tpu.dynamic_rotate %155 by %c120_i32_83 dim 1 : vector<32x128xf32>, i32 -> vector<32x128xf32>
    %c1_i32_84 = arith.constant 1 : i32
    %172 = tpu.dynamic_rotate %171 by %c1_i32_84 dim 0 : vector<32x128xf32>, i32 -> vector<32x128xf32>
    %173 = arith.select %39, %21, %172 : vector<32x128xi1>, vector<32x128xf32>
    %174 = arith.truncf %173 : vector<32x128xf32> to vector<32x128xbf16>
    %c1_85 = arith.constant 1 : index
    %c2_86 = arith.constant 2 : index
    %c0_87 = arith.constant 0 : index
    %c0_88 = arith.constant 0 : index
    %175 = vector.load %arg2[%c1_85, %c2_86, %c0_87, %c0_88] : memref<3x9x128x128xbf16, #tpu.memory_space<vmem>>, vector<1x1x128x128xbf16>
    %176 = vector.shape_cast %175 : vector<1x1x128x128xbf16> to vector<128x128xbf16>
    %cst_89 = arith.constant dense<0.000000e+00> : vector<32x128xf32>
    %177 = tpu.matmul %174, %176, %cst_89 {dimension_numbers = #tpu.dot_dimension_numbers<[1], [0], [0], [1], [0, 0, 1, 1], [], []>} : vector<32x128xbf16>, vector<128x128xbf16>, vector<32x128xf32> -> vector<32x128xf32>
    %178 = arith.addf %170, %177 : vector<32x128xf32>
    %c8_i32_90 = arith.constant 8 : i32
    %179 = tpu.dynamic_rotate %155 by %c8_i32_90 dim 1 : vector<32x128xf32>, i32 -> vector<32x128xf32>
    %180 = arith.select %25, %21, %179 : vector<32x128xi1>, vector<32x128xf32>
    %181 = arith.truncf %180 : vector<32x128xf32> to vector<32x128xbf16>
    %c1_91 = arith.constant 1 : index
    %c3_92 = arith.constant 3 : index
    %c0_93 = arith.constant 0 : index
    %c0_94 = arith.constant 0 : index
    %182 = vector.load %arg2[%c1_91, %c3_92, %c0_93, %c0_94] : memref<3x9x128x128xbf16, #tpu.memory_space<vmem>>, vector<1x1x128x128xbf16>
    %183 = vector.shape_cast %182 : vector<1x1x128x128xbf16> to vector<128x128xbf16>
    %cst_95 = arith.constant dense<0.000000e+00> : vector<32x128xf32>
    %184 = tpu.matmul %181, %183, %cst_95 {dimension_numbers = #tpu.dot_dimension_numbers<[1], [0], [0], [1], [0, 0, 1, 1], [], []>} : vector<32x128xbf16>, vector<128x128xbf16>, vector<32x128xf32> -> vector<32x128xf32>
    %185 = arith.addf %178, %184 : vector<32x128xf32>
    %186 = arith.truncf %155 : vector<32x128xf32> to vector<32x128xbf16>
    %c1_96 = arith.constant 1 : index
    %c4_97 = arith.constant 4 : index
    %c0_98 = arith.constant 0 : index
    %c0_99 = arith.constant 0 : index
    %187 = vector.load %arg2[%c1_96, %c4_97, %c0_98, %c0_99] : memref<3x9x128x128xbf16, #tpu.memory_space<vmem>>, vector<1x1x128x128xbf16>
    %188 = vector.shape_cast %187 : vector<1x1x128x128xbf16> to vector<128x128xbf16>
    %cst_100 = arith.constant dense<0.000000e+00> : vector<32x128xf32>
    %189 = tpu.matmul %186, %188, %cst_100 {dimension_numbers = #tpu.dot_dimension_numbers<[1], [0], [0], [1], [0, 0, 1, 1], [], []>} : vector<32x128xbf16>, vector<128x128xbf16>, vector<32x128xf32> -> vector<32x128xf32>
    %190 = arith.addf %185, %189 : vector<32x128xf32>
    %c120_i32_101 = arith.constant 120 : i32
    %191 = tpu.dynamic_rotate %155 by %c120_i32_101 dim 1 : vector<32x128xf32>, i32 -> vector<32x128xf32>
    %192 = arith.select %27, %21, %191 : vector<32x128xi1>, vector<32x128xf32>
    %193 = arith.truncf %192 : vector<32x128xf32> to vector<32x128xbf16>
    %c1_102 = arith.constant 1 : index
    %c5_103 = arith.constant 5 : index
    %c0_104 = arith.constant 0 : index
    %c0_105 = arith.constant 0 : index
    %194 = vector.load %arg2[%c1_102, %c5_103, %c0_104, %c0_105] : memref<3x9x128x128xbf16, #tpu.memory_space<vmem>>, vector<1x1x128x128xbf16>
    %195 = vector.shape_cast %194 : vector<1x1x128x128xbf16> to vector<128x128xbf16>
    %cst_106 = arith.constant dense<0.000000e+00> : vector<32x128xf32>
    %196 = tpu.matmul %193, %195, %cst_106 {dimension_numbers = #tpu.dot_dimension_numbers<[1], [0], [0], [1], [0, 0, 1, 1], [], []>} : vector<32x128xbf16>, vector<128x128xbf16>, vector<32x128xf32> -> vector<32x128xf32>
    %197 = arith.addf %190, %196 : vector<32x128xf32>
    %c8_i32_107 = arith.constant 8 : i32
    %198 = tpu.dynamic_rotate %155 by %c8_i32_107 dim 1 : vector<32x128xf32>, i32 -> vector<32x128xf32>
    %c31_i32_108 = arith.constant 31 : i32
    %199 = tpu.dynamic_rotate %198 by %c31_i32_108 dim 0 : vector<32x128xf32>, i32 -> vector<32x128xf32>
    %200 = arith.select %40, %21, %199 : vector<32x128xi1>, vector<32x128xf32>
    %201 = arith.truncf %200 : vector<32x128xf32> to vector<32x128xbf16>
    %c1_109 = arith.constant 1 : index
    %c6_110 = arith.constant 6 : index
    %c0_111 = arith.constant 0 : index
    %c0_112 = arith.constant 0 : index
    %202 = vector.load %arg2[%c1_109, %c6_110, %c0_111, %c0_112] : memref<3x9x128x128xbf16, #tpu.memory_space<vmem>>, vector<1x1x128x128xbf16>
    %203 = vector.shape_cast %202 : vector<1x1x128x128xbf16> to vector<128x128xbf16>
    %cst_113 = arith.constant dense<0.000000e+00> : vector<32x128xf32>
    %204 = tpu.matmul %201, %203, %cst_113 {dimension_numbers = #tpu.dot_dimension_numbers<[1], [0], [0], [1], [0, 0, 1, 1], [], []>} : vector<32x128xbf16>, vector<128x128xbf16>, vector<32x128xf32> -> vector<32x128xf32>
    %205 = arith.addf %197, %204 : vector<32x128xf32>
    %c31_i32_114 = arith.constant 31 : i32
    %206 = tpu.dynamic_rotate %155 by %c31_i32_114 dim 0 : vector<32x128xf32>, i32 -> vector<32x128xf32>
    %207 = arith.select %35, %21, %206 : vector<32x128xi1>, vector<32x128xf32>
    %208 = arith.truncf %207 : vector<32x128xf32> to vector<32x128xbf16>
    %c1_115 = arith.constant 1 : index
    %c7_116 = arith.constant 7 : index
    %c0_117 = arith.constant 0 : index
    %c0_118 = arith.constant 0 : index
    %209 = vector.load %arg2[%c1_115, %c7_116, %c0_117, %c0_118] : memref<3x9x128x128xbf16, #tpu.memory_space<vmem>>, vector<1x1x128x128xbf16>
    %210 = vector.shape_cast %209 : vector<1x1x128x128xbf16> to vector<128x128xbf16>
    %cst_119 = arith.constant dense<0.000000e+00> : vector<32x128xf32>
    %211 = tpu.matmul %208, %210, %cst_119 {dimension_numbers = #tpu.dot_dimension_numbers<[1], [0], [0], [1], [0, 0, 1, 1], [], []>} : vector<32x128xbf16>, vector<128x128xbf16>, vector<32x128xf32> -> vector<32x128xf32>
    %212 = arith.addf %205, %211 : vector<32x128xf32>
    %c120_i32_120 = arith.constant 120 : i32
    %213 = tpu.dynamic_rotate %155 by %c120_i32_120 dim 1 : vector<32x128xf32>, i32 -> vector<32x128xf32>
    %c31_i32_121 = arith.constant 31 : i32
    %214 = tpu.dynamic_rotate %213 by %c31_i32_121 dim 0 : vector<32x128xf32>, i32 -> vector<32x128xf32>
    %215 = arith.select %41, %21, %214 : vector<32x128xi1>, vector<32x128xf32>
    %216 = arith.truncf %215 : vector<32x128xf32> to vector<32x128xbf16>
    %c1_122 = arith.constant 1 : index
    %c8_123 = arith.constant 8 : index
    %c0_124 = arith.constant 0 : index
    %c0_125 = arith.constant 0 : index
    %217 = vector.load %arg2[%c1_122, %c8_123, %c0_124, %c0_125] : memref<3x9x128x128xbf16, #tpu.memory_space<vmem>>, vector<1x1x128x128xbf16>
    %218 = vector.shape_cast %217 : vector<1x1x128x128xbf16> to vector<128x128xbf16>
    %cst_126 = arith.constant dense<0.000000e+00> : vector<32x128xf32>
    %219 = tpu.matmul %216, %218, %cst_126 {dimension_numbers = #tpu.dot_dimension_numbers<[1], [0], [0], [1], [0, 0, 1, 1], [], []>} : vector<32x128xbf16>, vector<128x128xbf16>, vector<32x128xf32> -> vector<32x128xf32>
    %220 = arith.addf %212, %219 : vector<32x128xf32>
    %221 = arith.addf %131, %220 : vector<32x128xf32>
    %c16_i32_127 = arith.constant 16 : i32
    %222 = tpu.dynamic_rotate %220 by %c16_i32_127 dim 1 : vector<32x128xf32>, i32 -> vector<32x128xf32>
    %223 = arith.maximumf %220, %222 : vector<32x128xf32>
    %224 = arith.select %23, %220, %223 : vector<32x128xi1>, vector<32x128xf32>
    %c8_i32_128 = arith.constant 8 : i32
    %225 = tpu.dynamic_rotate %220 by %c8_i32_128 dim 1 : vector<32x128xf32>, i32 -> vector<32x128xf32>
    %226 = arith.maximumf %224, %225 : vector<32x128xf32>
    %227 = arith.select %25, %224, %226 : vector<32x128xi1>, vector<32x128xf32>
    %c120_i32_129 = arith.constant 120 : i32
    %228 = tpu.dynamic_rotate %220 by %c120_i32_129 dim 1 : vector<32x128xf32>, i32 -> vector<32x128xf32>
    %229 = arith.maximumf %227, %228 : vector<32x128xf32>
    %230 = arith.select %27, %227, %229 : vector<32x128xi1>, vector<32x128xf32>
    %c112_i32_130 = arith.constant 112 : i32
    %231 = tpu.dynamic_rotate %220 by %c112_i32_130 dim 1 : vector<32x128xf32>, i32 -> vector<32x128xf32>
    %232 = arith.maximumf %230, %231 : vector<32x128xf32>
    %233 = arith.select %29, %230, %232 : vector<32x128xi1>, vector<32x128xf32>
    %c2_i32_131 = arith.constant 2 : i32
    %234 = tpu.dynamic_rotate %233 by %c2_i32_131 dim 0 : vector<32x128xf32>, i32 -> vector<32x128xf32>
    %235 = arith.maximumf %233, %234 : vector<32x128xf32>
    %236 = arith.select %31, %233, %235 : vector<32x128xi1>, vector<32x128xf32>
    %c1_i32_132 = arith.constant 1 : i32
    %237 = tpu.dynamic_rotate %233 by %c1_i32_132 dim 0 : vector<32x128xf32>, i32 -> vector<32x128xf32>
    %238 = arith.maximumf %236, %237 : vector<32x128xf32>
    %239 = arith.select %33, %236, %238 : vector<32x128xi1>, vector<32x128xf32>
    %c31_i32_133 = arith.constant 31 : i32
    %240 = tpu.dynamic_rotate %233 by %c31_i32_133 dim 0 : vector<32x128xf32>, i32 -> vector<32x128xf32>
    %241 = arith.maximumf %239, %240 : vector<32x128xf32>
    %242 = arith.select %35, %239, %241 : vector<32x128xi1>, vector<32x128xf32>
    %c30_i32_134 = arith.constant 30 : i32
    %243 = tpu.dynamic_rotate %233 by %c30_i32_134 dim 0 : vector<32x128xf32>, i32 -> vector<32x128xf32>
    %244 = arith.maximumf %242, %243 : vector<32x128xf32>
    %245 = arith.select %37, %242, %244 : vector<32x128xi1>, vector<32x128xf32>
    %c8_i32_135 = arith.constant 8 : i32
    %246 = tpu.dynamic_rotate %245 by %c8_i32_135 dim 1 : vector<32x128xf32>, i32 -> vector<32x128xf32>
    %c1_i32_136 = arith.constant 1 : i32
    %247 = tpu.dynamic_rotate %246 by %c1_i32_136 dim 0 : vector<32x128xf32>, i32 -> vector<32x128xf32>
    %248 = arith.select %38, %21, %247 : vector<32x128xi1>, vector<32x128xf32>
    %249 = arith.truncf %248 : vector<32x128xf32> to vector<32x128xbf16>
    %c2_137 = arith.constant 2 : index
    %c0_138 = arith.constant 0 : index
    %c0_139 = arith.constant 0 : index
    %c0_140 = arith.constant 0 : index
    %250 = vector.load %arg2[%c2_137, %c0_138, %c0_139, %c0_140] : memref<3x9x128x128xbf16, #tpu.memory_space<vmem>>, vector<1x1x128x128xbf16>
    %251 = vector.shape_cast %250 : vector<1x1x128x128xbf16> to vector<128x128xbf16>
    %cst_141 = arith.constant dense<0.000000e+00> : vector<32x128xf32>
    %252 = tpu.matmul %249, %251, %cst_141 {dimension_numbers = #tpu.dot_dimension_numbers<[1], [0], [0], [1], [0, 0, 1, 1], [], []>} : vector<32x128xbf16>, vector<128x128xbf16>, vector<32x128xf32> -> vector<32x128xf32>
    %253 = arith.addf %21, %252 : vector<32x128xf32>
    %c1_i32_142 = arith.constant 1 : i32
    %254 = tpu.dynamic_rotate %245 by %c1_i32_142 dim 0 : vector<32x128xf32>, i32 -> vector<32x128xf32>
    %255 = arith.select %33, %21, %254 : vector<32x128xi1>, vector<32x128xf32>
    %256 = arith.truncf %255 : vector<32x128xf32> to vector<32x128xbf16>
    %c2_143 = arith.constant 2 : index
    %c1_144 = arith.constant 1 : index
    %c0_145 = arith.constant 0 : index
    %c0_146 = arith.constant 0 : index
    %257 = vector.load %arg2[%c2_143, %c1_144, %c0_145, %c0_146] : memref<3x9x128x128xbf16, #tpu.memory_space<vmem>>, vector<1x1x128x128xbf16>
    %258 = vector.shape_cast %257 : vector<1x1x128x128xbf16> to vector<128x128xbf16>
    %cst_147 = arith.constant dense<0.000000e+00> : vector<32x128xf32>
    %259 = tpu.matmul %256, %258, %cst_147 {dimension_numbers = #tpu.dot_dimension_numbers<[1], [0], [0], [1], [0, 0, 1, 1], [], []>} : vector<32x128xbf16>, vector<128x128xbf16>, vector<32x128xf32> -> vector<32x128xf32>
    %260 = arith.addf %253, %259 : vector<32x128xf32>
    %c120_i32_148 = arith.constant 120 : i32
    %261 = tpu.dynamic_rotate %245 by %c120_i32_148 dim 1 : vector<32x128xf32>, i32 -> vector<32x128xf32>
    %c1_i32_149 = arith.constant 1 : i32
    %262 = tpu.dynamic_rotate %261 by %c1_i32_149 dim 0 : vector<32x128xf32>, i32 -> vector<32x128xf32>
    %263 = arith.select %39, %21, %262 : vector<32x128xi1>, vector<32x128xf32>
    %264 = arith.truncf %263 : vector<32x128xf32> to vector<32x128xbf16>
    %c2_150 = arith.constant 2 : index
    %c2_151 = arith.constant 2 : index
    %c0_152 = arith.constant 0 : index
    %c0_153 = arith.constant 0 : index
    %265 = vector.load %arg2[%c2_150, %c2_151, %c0_152, %c0_153] : memref<3x9x128x128xbf16, #tpu.memory_space<vmem>>, vector<1x1x128x128xbf16>
    %266 = vector.shape_cast %265 : vector<1x1x128x128xbf16> to vector<128x128xbf16>
    %cst_154 = arith.constant dense<0.000000e+00> : vector<32x128xf32>
    %267 = tpu.matmul %264, %266, %cst_154 {dimension_numbers = #tpu.dot_dimension_numbers<[1], [0], [0], [1], [0, 0, 1, 1], [], []>} : vector<32x128xbf16>, vector<128x128xbf16>, vector<32x128xf32> -> vector<32x128xf32>
    %268 = arith.addf %260, %267 : vector<32x128xf32>
    %c8_i32_155 = arith.constant 8 : i32
    %269 = tpu.dynamic_rotate %245 by %c8_i32_155 dim 1 : vector<32x128xf32>, i32 -> vector<32x128xf32>
    %270 = arith.select %25, %21, %269 : vector<32x128xi1>, vector<32x128xf32>
    %271 = arith.truncf %270 : vector<32x128xf32> to vector<32x128xbf16>
    %c2_156 = arith.constant 2 : index
    %c3_157 = arith.constant 3 : index
    %c0_158 = arith.constant 0 : index
    %c0_159 = arith.constant 0 : index
    %272 = vector.load %arg2[%c2_156, %c3_157, %c0_158, %c0_159] : memref<3x9x128x128xbf16, #tpu.memory_space<vmem>>, vector<1x1x128x128xbf16>
    %273 = vector.shape_cast %272 : vector<1x1x128x128xbf16> to vector<128x128xbf16>
    %cst_160 = arith.constant dense<0.000000e+00> : vector<32x128xf32>
    %274 = tpu.matmul %271, %273, %cst_160 {dimension_numbers = #tpu.dot_dimension_numbers<[1], [0], [0], [1], [0, 0, 1, 1], [], []>} : vector<32x128xbf16>, vector<128x128xbf16>, vector<32x128xf32> -> vector<32x128xf32>
    %275 = arith.addf %268, %274 : vector<32x128xf32>
    %276 = arith.truncf %245 : vector<32x128xf32> to vector<32x128xbf16>
    %c2_161 = arith.constant 2 : index
    %c4_162 = arith.constant 4 : index
    %c0_163 = arith.constant 0 : index
    %c0_164 = arith.constant 0 : index
    %277 = vector.load %arg2[%c2_161, %c4_162, %c0_163, %c0_164] : memref<3x9x128x128xbf16, #tpu.memory_space<vmem>>, vector<1x1x128x128xbf16>
    %278 = vector.shape_cast %277 : vector<1x1x128x128xbf16> to vector<128x128xbf16>
    %cst_165 = arith.constant dense<0.000000e+00> : vector<32x128xf32>
    %279 = tpu.matmul %276, %278, %cst_165 {dimension_numbers = #tpu.dot_dimension_numbers<[1], [0], [0], [1], [0, 0, 1, 1], [], []>} : vector<32x128xbf16>, vector<128x128xbf16>, vector<32x128xf32> -> vector<32x128xf32>
    %280 = arith.addf %275, %279 : vector<32x128xf32>
    %c120_i32_166 = arith.constant 120 : i32
    %281 = tpu.dynamic_rotate %245 by %c120_i32_166 dim 1 : vector<32x128xf32>, i32 -> vector<32x128xf32>
    %282 = arith.select %27, %21, %281 : vector<32x128xi1>, vector<32x128xf32>
    %283 = arith.truncf %282 : vector<32x128xf32> to vector<32x128xbf16>
    %c2_167 = arith.constant 2 : index
    %c5_168 = arith.constant 5 : index
    %c0_169 = arith.constant 0 : index
    %c0_170 = arith.constant 0 : index
    %284 = vector.load %arg2[%c2_167, %c5_168, %c0_169, %c0_170] : memref<3x9x128x128xbf16, #tpu.memory_space<vmem>>, vector<1x1x128x128xbf16>
    %285 = vector.shape_cast %284 : vector<1x1x128x128xbf16> to vector<128x128xbf16>
    %cst_171 = arith.constant dense<0.000000e+00> : vector<32x128xf32>
    %286 = tpu.matmul %283, %285, %cst_171 {dimension_numbers = #tpu.dot_dimension_numbers<[1], [0], [0], [1], [0, 0, 1, 1], [], []>} : vector<32x128xbf16>, vector<128x128xbf16>, vector<32x128xf32> -> vector<32x128xf32>
    %287 = arith.addf %280, %286 : vector<32x128xf32>
    %c8_i32_172 = arith.constant 8 : i32
    %288 = tpu.dynamic_rotate %245 by %c8_i32_172 dim 1 : vector<32x128xf32>, i32 -> vector<32x128xf32>
    %c31_i32_173 = arith.constant 31 : i32
    %289 = tpu.dynamic_rotate %288 by %c31_i32_173 dim 0 : vector<32x128xf32>, i32 -> vector<32x128xf32>
    %290 = arith.select %40, %21, %289 : vector<32x128xi1>, vector<32x128xf32>
    %291 = arith.truncf %290 : vector<32x128xf32> to vector<32x128xbf16>
    %c2_174 = arith.constant 2 : index
    %c6_175 = arith.constant 6 : index
    %c0_176 = arith.constant 0 : index
    %c0_177 = arith.constant 0 : index
    %292 = vector.load %arg2[%c2_174, %c6_175, %c0_176, %c0_177] : memref<3x9x128x128xbf16, #tpu.memory_space<vmem>>, vector<1x1x128x128xbf16>
    %293 = vector.shape_cast %292 : vector<1x1x128x128xbf16> to vector<128x128xbf16>
    %cst_178 = arith.constant dense<0.000000e+00> : vector<32x128xf32>
    %294 = tpu.matmul %291, %293, %cst_178 {dimension_numbers = #tpu.dot_dimension_numbers<[1], [0], [0], [1], [0, 0, 1, 1], [], []>} : vector<32x128xbf16>, vector<128x128xbf16>, vector<32x128xf32> -> vector<32x128xf32>
    %295 = arith.addf %287, %294 : vector<32x128xf32>
    %c31_i32_179 = arith.constant 31 : i32
    %296 = tpu.dynamic_rotate %245 by %c31_i32_179 dim 0 : vector<32x128xf32>, i32 -> vector<32x128xf32>
    %297 = arith.select %35, %21, %296 : vector<32x128xi1>, vector<32x128xf32>
    %298 = arith.truncf %297 : vector<32x128xf32> to vector<32x128xbf16>
    %c2_180 = arith.constant 2 : index
    %c7_181 = arith.constant 7 : index
    %c0_182 = arith.constant 0 : index
    %c0_183 = arith.constant 0 : index
    %299 = vector.load %arg2[%c2_180, %c7_181, %c0_182, %c0_183] : memref<3x9x128x128xbf16, #tpu.memory_space<vmem>>, vector<1x1x128x128xbf16>
    %300 = vector.shape_cast %299 : vector<1x1x128x128xbf16> to vector<128x128xbf16>
    %cst_184 = arith.constant dense<0.000000e+00> : vector<32x128xf32>
    %301 = tpu.matmul %298, %300, %cst_184 {dimension_numbers = #tpu.dot_dimension_numbers<[1], [0], [0], [1], [0, 0, 1, 1], [], []>} : vector<32x128xbf16>, vector<128x128xbf16>, vector<32x128xf32> -> vector<32x128xf32>
    %302 = arith.addf %295, %301 : vector<32x128xf32>
    %c120_i32_185 = arith.constant 120 : i32
    %303 = tpu.dynamic_rotate %245 by %c120_i32_185 dim 1 : vector<32x128xf32>, i32 -> vector<32x128xf32>
    %c31_i32_186 = arith.constant 31 : i32
    %304 = tpu.dynamic_rotate %303 by %c31_i32_186 dim 0 : vector<32x128xf32>, i32 -> vector<32x128xf32>
    %305 = arith.select %41, %21, %304 : vector<32x128xi1>, vector<32x128xf32>
    %306 = arith.truncf %305 : vector<32x128xf32> to vector<32x128xbf16>
    %c2_187 = arith.constant 2 : index
    %c8_188 = arith.constant 8 : index
    %c0_189 = arith.constant 0 : index
    %c0_190 = arith.constant 0 : index
    %307 = vector.load %arg2[%c2_187, %c8_188, %c0_189, %c0_190] : memref<3x9x128x128xbf16, #tpu.memory_space<vmem>>, vector<1x1x128x128xbf16>
    %308 = vector.shape_cast %307 : vector<1x1x128x128xbf16> to vector<128x128xbf16>
    %cst_191 = arith.constant dense<0.000000e+00> : vector<32x128xf32>
    %309 = tpu.matmul %306, %308, %cst_191 {dimension_numbers = #tpu.dot_dimension_numbers<[1], [0], [0], [1], [0, 0, 1, 1], [], []>} : vector<32x128xbf16>, vector<128x128xbf16>, vector<32x128xf32> -> vector<32x128xf32>
    %310 = arith.addf %302, %309 : vector<32x128xf32>
    %311 = arith.addf %221, %310 : vector<32x128xf32>
    %c0_192 = arith.constant 0 : index
    %c0_193 = arith.constant 0 : index
    %312 = vector.load %arg3[%c0_192, %c0_193] : memref<32x128xf32, #tpu.memory_space<vmem>>, vector<32x128xf32>
    tpu.vector_store %arg3[%c0_192, %c0_193], %311 {strides = array<i32>} : memref<32x128xf32, #tpu.memory_space<vmem>>, vector<32x128xf32>,
    return
  }
  func.func @transform_0(%arg0: i32) -> (i32, i32) {
    %c0_i32 = arith.constant 0 : i32
    %c0_i32_0 = arith.constant 0 : i32
    return %arg0, %c0_i32 : i32, i32
  }
  func.func @transform_1(%arg0: i32) -> (i32, i32, i32, i32) {
    %c0_i32 = arith.constant 0 : i32
    %c0_i32_0 = arith.constant 0 : i32
    %c0_i32_1 = arith.constant 0 : i32
    %c0_i32_2 = arith.constant 0 : i32
    %c0_i32_3 = arith.constant 0 : i32
    return %c0_i32, %c0_i32_0, %c0_i32_1, %c0_i32_2 : i32, i32, i32, i32
  }
  func.func @transform_2(%arg0: i32) -> (i32, i32) {
    %c0_i32 = arith.constant 0 : i32
    %c0_i32_0 = arith.constant 0 : i32
    return %arg0, %c0_i32 : i32, i32
  }
}

</mosaic_0001>

<bundles_post_ra>
// kernel: tpu_custom_call.1
= control target key start
LH: loop header
LB: loop body
LE: loop exit
PB: predicated region body
PF: predicated region fallthrough
CT: control target
= control target key end

     0   :  { %7 = vsyncpa [#allocation3], 0  ;;  %s7586_s0 = inlined_call_operand.hbm [shape: f32[64,128], index: 0, kind: input, shape index: {}]   ;;  %s7587_s1 = inlined_call_operand.hbm [shape: bf16[3,9,128,128], index: 1, kind: input, shape index: {}]   ;;  %s7588_s2 = inlined_call_operand.hbm [shape: f32[64,128], index: 2, kind: output, shape index: {}]  }
   0x1   :  { %9 = vsyncpa [#allocation3 + $0x1], 0 }
   0x2   :  { %10 = vsyncpa [#allocation6], 0 }
   0x3   :  { %11 = vsyncpa [#allocation4], 0 }
   0x4   :  { %13 = vsyncpa [#allocation4 + $0x1], 0  ;;  %s6171_s9 = smov 0   ;;  %s6173_s10 = smov 0  }
   0x5   :  { %s6175_s11 = smov 0   ;;  %s6177_s12 = smov 0  }
   0x6 LB: > { %s6192_s13 = sadd.s32 4294967295, %s6141_s12   ;;  %s4283_s14 = sadd.s32 4294967294, %s6141_s12   ;;  %s6141_s12 = sphi %s6177_s12, %s7910_s12   ;;  %s6137_s11 = sphi %s6175_s11, %s7909_s11   ;;  %s6133_s10 = sphi %s6173_s10, %s7908_s10   ;;  %s6129_s9 = sphi %s6171_s9, %s7907_s9  }
   0x7   : > { %p39_p0 = scmp.ne.s32.totalorder %s6133_s10, %s6129_s9  ;;  %p7589_p1 = scmp.eq.s32.totalorder %s6192_s13, 0 }
   0x8   : > { %p90_p3 = scmp.eq.s32.totalorder %s4283_s14, 1  ;;  %p4284_p5 = scmp.ge.s32.totalorder %s6141_s12, 1 }
   0x9   : > { %p6201_p4 = por %p7589_p1, %p39_p0  ;;  %p97_p7 = scmp.lt.s32.totalorder %s6141_s12, 3 }
   0xa   : > { %p6206_p6 = por %p90_p3, %p39_p0  ;;  %s6143_s18 = smov [#allocation5]  }
   0xb   : > { %s7649_s15 = scalar_select %p6201_p4, 1, 0 }
   0xc   : > { %s7650_s16 = scalar_select %p6206_p6, 1, 0 }
   0xd   : > { %p6211_p8 = pnand %p4284_p5, %p97_p7  ;;  %s109_s19 = sshll.u32 %s6143_s18, 4  ;;  %s110_s19 = int_to_ptr.vmem [resolvable:$true] %s109_s19 }
   0xe   : > { %s6225_s21 = sadd.s32 1, %s6141_s12   ;;  %s26_s22 = sadd.s32 1, %s6137_s11 }
   0xf   : > { %s7651_s17 = scalar_select %p6211_p8, 1, 0 }
  0x10   : > { %p5563_p9 = pneg %p6211_p8  ;;  %s23_s23 = ssub.s32 %s6141_s12, %s6225_s21 }
  0x11   : > { %s6030_s24 = scalar_lea.vmem %s110_s19, 27648  ;;  %p6038_p5 = scmp.lt.s32.totalorder %s110_s19, %s110_s19 }
  0x12   : > { %p6220_p11 = pnand %p5563_p9, %p7589_p1  ;;  %p6031_p13 = scmp.ne.s32.totalorder %s110_s19, %s6030_s24 }
  0x13   : > { %p6039_p7 = scmp.lt.s32.totalorder %s6030_s24, %s6030_s24 }
  0x14   : > { %p6021_p12 = pneg %p6220_p11 }
  0x15   : > { %p6040_p10 = por %p6039_p7, %p6038_p5 }
  0x16   : > { %p6033_p0 = pnand %p6031_p13, %p6021_p12 }
  0x18   : > { %p6034_p3 = pneg %p6033_p0 }
  0x1a   : > { %p6041_p2 = pnand %p6040_p10, %p6034_p3 }
  0x1c   : > { %6044 = shalt.err (!%p6041_p2)
}
  0x1d   : > { %s6144_s25 = smov 64   ;;  %s6145_s26 = smov 4  }
  0x1e   : > { %5566 = dma.hbm_to_vmem [thread:$0]  (!%p6220_p11), %s7587_s1, 27648, %s110_s19, [#allocation6], %s6144_s25, %s6144_s25, %s6145_s26  }
  0x1f   : > { %p24_p9 = scmp.eq.s32.totalorder %s23_s23, 0  ;;  %p33_p12 = scmp.ne.s32.totalorder %s6137_s11, %s6133_s10 }
  0x20   : > { %p34_p10 = scmp.eq.s32.totalorder %s6141_s12, 0  ;;  %p5576_p2 = scmp.lt.s32.totalorder %s6141_s12, 2 }
  0x21   : > { %s6242_s29 = scalar_select %p24_p9, %s6137_s11, %s26_s22  }
  0x22   : > { %p35_p13 = por %p34_p10, %p33_p12  ;;  %p7653_p0 = scmp.eq.s32.totalorder %s6192_s13, 1 }
  0x23   : > { %s123_s3 = sand.u32 1, %s6137_s11   ;;  %s4743_s4 = sshll.u32 %s6141_s12, 9 }
  0x24   : > { %p6246_p3 = por %p7653_p0, %p33_p12  ;;  %s4287_s5 = sshll.u32 %s123_s3, 5 }
  0x25   : > { %s6255_s8 = scalar_lea.hbm %s7586_s0, %s4743_s4  ;;  %s127_s14 = scalar_lea.vmem [#allocation2], %s4287_s5 }
  0x26   : > { %s7654_s30 = scalar_select %p6246_p3, 1, 0 }
  0x27   : > { %s134_s18 = sshll.u32 %s127_s14, 4  ;;  %p6257_p11 = pnand %p5576_p2, %p35_p13  ;;  %s6261_s18 = int_to_ptr.vmem [resolvable:$true] %s134_s18 }
  0x28   : > { %s6263_s20 = scalar_lea.sflag [#allocation3], %s123_s3  ;;  %s6045_s22 = scalar_lea.hbm %s6255_s8, 512 }
  0x29   : > { %p6046_p5 = scmp.ne.s32.totalorder %s6255_s8, %s6045_s22  ;;  %p6047_p7 = pneg %p6257_p11 }
  0x2a   : > { %s6050_s25 = scalar_lea.hbm %s7586_s0, 1024  ;;  %p6051_p10 = scmp.lt.s32.totalorder %s6255_s8, %s7586_s0 }
  0x2b   : > { %p6048_p9 = pnand %p6047_p7, %p6046_p5  ;;  %p6052_p2 = scmp.lt.s32.totalorder %s6050_s25, %s6045_s22 }
  0x2d   : > { %p6049_p12 = pneg %p6048_p9  ;;  %p6053_p13 = por %p6052_p2, %p6051_p10 }
  0x2f   : > { %p6054_p0 = pnand %p6053_p13, %p6049_p12 }
  0x31   : > { %6057 = shalt.err (!%p6054_p0)
}
  0x32   : > { %s6058_s28 = scalar_lea.vmem %s6261_s18, 512  ;;  %s6146_s3 = smov [#allocation2]  }
  0x33   : > { %p6059_p1 = scmp.ne.s32.totalorder %s6261_s18, %s6058_s28  ;;  %s6063_s4 = sshll.u32 %s6146_s3, 4  ;;  %s6064_s4 = int_to_ptr.vmem [resolvable:$false] %s6063_s4 }
  0x34   : > { %s6065_s5 = scalar_lea.vmem %s6064_s4, 1024  ;;  %p6066_p9 = scmp.lt.s32.totalorder %s6261_s18, %s6064_s4 }
  0x35   : > { %p6061_p6 = pnand %p6059_p1, %p6047_p7  ;;  %p6067_p3 = scmp.lt.s32.totalorder %s6065_s5, %s6058_s28 }
  0x37   : > { %p6062_p5 = pneg %p6061_p6  ;;  %p6068_p4 = por %p6067_p3, %p6066_p9 }
  0x39   : > { %p6069_p8 = pnand %p6068_p4, %p6062_p5 }
  0x3b   : > { %6072 = shalt.err (!%p6069_p8)
}
  0x3c   : > { %s6147_s6 = smov 128   ;;  %s6148_s7 = smov 8  }
  0x3d   : > { %5570 = dma.hbm_to_vmem [thread:$0]  (!%p6257_p11), %s6255_s8, 512, %s6261_s18, %s6263_s20, %s6147_s6, %s6147_s6, %s6148_s7  }
  0x3e   : > { %p7656_p1 = scmp.ne.s32.totalorder %s7651_s17, 0 }
  0x40   : > { %146 = sbr.rel (%p7656_p1) target bundleno = 1830 (0x726), region = 28 }
  0x45   : > { %s6287_s14 = sand.u32 1, %s6133_s10   ;;  %p7657_p4 = scmp.ne.s32.totalorder %s7649_s15, 0 }
  0x46   : > { %s4291_s22 = sshll.u32 %s6287_s14, 5  ;;  %s149_s23 = scalar_lea.sflag [#allocation3], %s6287_s14 }
  0x47   : > { %s152_s24 = scalar_lea.vmem [#allocation2], %s4291_s22 }
  0x48   : > { %6116 = dma.done.wait (%p7657_p4), %s149_s23, 512  }
  0x49   : > { %6118 = vsyncadd (%p7657_p4), %s149_s23, 4294966784  ;;  %p7658_p6 = scmp.eq.s32.totalorder %s6192_s13, 0 }
  0x4b   : > { %6120 = dma.done.wait (%p7658_p6), [#allocation6], 27648   ;;  %p7659_p8 = pmov %p7658_p6 }
  0x4c   : > { %v180_v0 = vld [vmem:[%s152_s24] sm:$0xff]  ;;  %v181_v1 = vld [vmem:[%s152_s24 + $0x8] sm:$0xff]  ;;  %v182_v2 = vld [vmem:[%s152_s24 + $0x10] sm:$0xff]  ;;  %s6149_s15 = smov 16   ;;  %s6150_s17 = smov 8   ;;  %v188_v22 = vlaneseq }
  0x4d   : > { %6122 = vsyncadd (%p7659_p8), [#allocation6], 4294939648  ;;  %v6301_v3 = vmax.f32 %v180_v0, 0.0  ;;  %v6303_v4 = vmax.f32 %v181_v1, 0.0  ;;  %v183_v5 = vld [vmem:[%s152_s24 + $0x18] sm:$0xff]  ;;  %v6305_v6 = vmax.f32 %v182_v2, 0.0 }
  0x4e   : > { %v6307_v7 = vmax.f32 %v183_v5, 0.0  ;;  %v5802_v8 = vld [vmem:[#allocation5 + $0x78] sm:$0xff]   ;;  %v5803_v10 = vld [vmem:[#allocation5 + $0x70] sm:$0xff]   ;;  %v5804_v12 = vld [vmem:[#allocation5 + $0x68] sm:$0xff]   ;;  %s6151_s8 = smov 120   ;;  %s6152_s18 = smov 112  }
  0x4f   : > { %7660 = vst [vmem:[#allocation11_spill] sm:$0xff] %v6301_v3  ;;  %7661 = vst [vmem:[#allocation12_spill] sm:$0xff] %v6303_v4  ;;  %v5622_v9 = vpack.i.bf16 %v6303_v4, %v6301_v3  ;;  %5015 = vmatprep.subr.bf16.mxu0 %v5802_v8  ;;  %v5805_v13 = vld [vmem:[#allocation5 + $0x60] sm:$0xff]   ;;  %v5806_v14 = vld [vmem:[#allocation5 + $0x58] sm:$0xff]   ;;  %v6321_v23 = vshrl.u32 %v188_v22, 7  ;;  %v6323_v25 = vand.u32 127, %v188_v22 }
  0x50   : > { %7662 = vst [vmem:[#allocation13_spill] sm:$0xff] %v6305_v6  ;;  %7663 = vst [vmem:[#allocation14_spill] sm:$0xff] %v6307_v7  ;;  %v5627_v11 = vpack.i.bf16 %v6307_v7, %v6305_v6  ;;  %5016 = vmatpush3.bf16.msra.mxu0 %v5802_v8  ;;  %v5807_v15 = vld [vmem:[#allocation5 + $0x50] sm:$0xff]   ;;  %v5808_v16 = vld [vmem:[#allocation5 + $0x48] sm:$0xff]   ;;  %s176_s19 = scalar_lea.vmem [#allocation7], %s4291_s22  ;;  %s4744_s25 = sshll.u32 %s6192_s13, 9 }
  0x51   : > { %5623 = vrot.lane.b32.xlu0 %v5622_v9, %s6149_s15  ;;  %5633 = vrot.lane.b32.xlu1 %v5622_v9, %s6150_s17  ;;  %v5809_v17 = vld [vmem:[#allocation5 + $0x40] sm:$0xff]   ;;  %v5810_v18 = vld [vmem:[#allocation5 + $0x38] sm:$0xff]   ;;  %v5811_v19 = vld [vmem:[#allocation5 + $0x30] sm:$0xff]   ;;  %v6326_v26 = vadd.s32 16, %v6321_v23  ;;  %v199_v28 = vand.u32 15, %v6321_v23  ;;  %v6331_v30 = vadd.s32 24, %v6321_v23  ;;  %s7542_s28 = scalar_lea.hbm %s7588_s2, %s4744_s25 }
  0x52   : > { %5017 = vmatprep.subr.bf16.mxu0 %v5803_v10  ;;  %v5812_v20 = vld [vmem:[#allocation5 + $0xb8] sm:$0xff]   ;;  %5035 = vmatprep.subr.bf16.mxu1 %v5810_v18  ;;  %v5813_v21 = vld [vmem:[#allocation5 + $0x28] sm:$0xff]   ;;  %v5815_v24 = vld [vmem:[#allocation5 + $0x20] sm:$0xff]   ;;  %v6334_v31 = vadd.s32 8, %v6321_v23  ;;  %vm7596_vm0 = vcmp.lt.s32.totalorder %v6323_v25, 16  ;;  %vm7602_vm1 = vcmp.lt.s32.totalorder %v6323_v25, 8 }
  0x53   : > { %5036 = vmatpush3.bf16.msra.mxu1 %v5810_v18  ;;  %v5817_v27 = vld [vmem:[#allocation5 + $0x18] sm:$0xff]   ;;  %v213_v29 = vand.u32 15, %v6326_v26  ;;  %v5819_v32 = vld [vmem:[#allocation5 + $0x10] sm:$0xff]   ;;  %v220_v33 = vand.u32 15, %v6331_v30  ;;  %v5821_v35 = vld [vmem:[#allocation5 + $0x8] sm:$0xff]   ;;  %vm7601_vm2 = vcmp.ge.s32.totalorder %v6323_v25, 120 }
  0x54   : > { %5018 = vmatpush3.bf16.msra.mxu0 %v5803_v10  ;;  %5037 = vmatprep.subr.bf16.mxu1 %v5811_v19  ;;  %v206_v34 = vand.u32 15, %v6334_v31  ;;  %vm7595_vm3 = vcmp.ge.s32.totalorder %v6323_v25, 112  ;;  %vm7594_vm4 = vcmp.lt.s32.totalorder %v6321_v23, 2  ;;  %vm7600_vm5 = vcmp.lt.s32.totalorder %v6321_v23, 1  ;;  %s4200_s20 = sshll.u32 %s176_s19, 4  ;;  %s4187_s3 = scalar_lea.sflag [#allocation4], %s6287_s14  ;;  %s7537_s20 = int_to_ptr.vmem [resolvable:$true] %s4200_s20 }
  0x55   : > { %5628 = vrot.lane.b32.xlu0 %v5627_v11, %s6149_s15  ;;  %5638 = vrot.lane.b32.xlu1 %v5627_v11, %s6150_s17  ;;  %vm7599_vm6 = vcmp.lt.s32.totalorder %v6321_v23, 7  ;;  %vm6375_vm7 = vcmp.lt.s32.totalorder %v199_v28, 2  ;;  %vm6381_vm8 = vcmp.lt.s32.totalorder %v213_v29, 2  ;;  %vm6403_vm9 = vcmp.lt.s32.totalorder %v199_v28, 1  ;;  %s6073_s13 = scalar_lea.vmem %s7537_s20, 512  ;;  %p7904_p11 = scmp.ne.s32.totalorder %s7654_s30, 0 }
  0x56   : > { %5019 = vmatprep.subr.bf16.mxu0 %v5804_v12  ;;  %vm6409_vm10 = vcmp.lt.s32.totalorder %v213_v29, 1  ;;  %vm7593_vm11 = vcmp.lt.s32.totalorder %v6321_v23, 6  ;;  %vm6420_vm12 = vcmp.ge.s32.totalorder %v220_v33, 15  ;;  %vm6426_vm13 = vcmp.ge.s32.totalorder %v206_v34, 15  ;;  %p6074_p3 = scmp.ne.s32.totalorder %s7537_s20, %s6073_s13  ;;  %s6154_s4 = smov [#allocation7]  }
  0x57   : > { %5038 = vmatpush3.bf16.msra.mxu1 %v5811_v19  ;;  %v7674_v26 = vmov 0  ;;  %vm6439_vm14 = vcmp.ge.s32.totalorder %v220_v33, 14  ;;  %vm6445_vm15 = vcmp.ge.s32.totalorder %v206_v34, 14  ;;  %s6077_s5 = sshll.u32 %s6154_s4, 4  ;;  %s6078_s5 = int_to_ptr.vmem [resolvable:$false] %s6077_s5 }
  0x58   : > { %5020 = vmatpush3.bf16.msra.mxu0 %v5804_v12  ;;  %5039 = vmatprep.subr.bf16.mxu1 %v5813_v21  ;;  %v7675_v26 = vsel %vm6426_vm13, 4294967295, %v7674_v26  ;;  %p6075_p7 = pnand %p6074_p3, %p7904_p11  ;;  %s6079_s6 = scalar_lea.vmem %s6078_s5, 1024 }
  0x59   : > { %5643 = vrot.lane.b32.xlu0 %v5622_v9, %s6151_s8  ;;  %5648 = vrot.lane.b32.xlu1 %v5627_v11, %s6151_s8  ;;  %p6080_p10 = scmp.lt.s32.totalorder %s7537_s20, %s6078_s5  ;;  %p6081_p2 = scmp.lt.s32.totalorder %s6079_s6, %s6073_s13 }
  0x5a   : > { %5021 = vmatprep.subr.bf16.mxu0 %v5805_v13  ;;  %p6076_p12 = pneg %p6075_p7 }
  0x5b   : > { %5040 = vmatpush3.bf16.msra.mxu1 %v5813_v21  ;;  %p6082_p13 = por %p6081_p2, %p6080_p10 }
  0x5c   : > { %5022 = vmatpush3.bf16.msra.mxu0 %v5805_v13  ;;  %5041 = vmatprep.subr.bf16.mxu1 %v5815_v24 }
  0x5d   : > { %5653 = vrot.lane.b32.xlu0 %v5622_v9, %s6152_s18  ;;  %5658 = vrot.lane.b32.xlu1 %v5627_v11, %s6152_s18  ;;  %p6083_p0 = pnand %p6082_p13, %p6076_p12 }
  0x5e   : > { %5023 = vmatprep.subr.bf16.mxu0 %v5806_v14 }
  0x5f   : > { %5042 = vmatpush3.bf16.msra.mxu1 %v5815_v24 }
  0x60   : > { %5024 = vmatpush3.bf16.msra.mxu0 %v5806_v14  ;;  %5043 = vmatprep.subr.bf16.mxu1 %v5817_v27 }
  0x61   : > { %5025 = vmatprep.subr.bf16.mxu0 %v5807_v15 }
  0x63   : > { %5044 = vmatpush3.bf16.msra.mxu1 %v5817_v27 }
  0x64   : > { %5026 = vmatpush3.bf16.msra.mxu0 %v5807_v15  ;;  %5045 = vmatprep.subr.bf16.mxu1 %v5819_v32 }
  0x65   : > { %5027 = vmatprep.subr.bf16.mxu0 %v5808_v16 }
  0x67   : > { %5046 = vmatpush3.bf16.msra.mxu1 %v5819_v32  ;;  %v7666_v32 = vmov 0 }
  0x68   : > { %5028 = vmatpush3.bf16.msra.mxu0 %v5808_v16  ;;  %5047 = vmatprep.subr.bf16.mxu1 %v5821_v35  ;;  %v7667_v32 = vsel %vm6381_vm8, 4294967295, %v7666_v32 }
  0x69   : > { %5029 = vmatprep.subr.bf16.mxu0 %v5809_v17 }
  0x6b   : > { %5048 = vmatpush3.bf16.msra.mxu1 %v5821_v35 }
  0x6c   : > { %5030 = vmatpush3.bf16.msra.mxu0 %v5809_v17 }
  0x6d   : > { %5055 = vmatprep.subr.bf16.mxu0 %v5812_v20 }
  0xc3   : > { %v5624_v36 = vpop.permute.xlu0 %5623  ;;  %v5634_v37 = vpop.permute.xlu1 %5633 }
  0xc4   : > { %v5626_v38 = vunpack.i.h.bf16 %v5624_v36  ;;  %v5625_v39 = vunpack.i.l.bf16 %v5624_v36  ;;  %v5636_v42 = vunpack.i.h.bf16 %v5634_v37  ;;  %v5635_v43 = vunpack.i.l.bf16 %v5634_v37 }
  0xc6   : > { %v288_v40 = vmax.f32 %v6303_v4, %v5626_v38  ;;  %v287_v41 = vmax.f32 %v6301_v3, %v5625_v39 }
  0xc7   : > { %v5629_v44 = vpop.permute.xlu0 %5628  ;;  %v5639_v45 = vpop.permute.xlu1 %5638 }
  0xc8   : > { %v291_v46 = vsel %vm7596_vm0, %v6301_v3, %v287_v41  ;;  %v292_v47 = vsel %vm7596_vm0, %v6303_v4, %v288_v40  ;;  %v5631_v48 = vunpack.i.h.bf16 %v5629_v44  ;;  %v5630_v49 = vunpack.i.l.bf16 %v5629_v44 }
  0xc9   : > { %v303_v50 = vmax.f32 %v291_v46, %v5635_v43  ;;  %v304_v51 = vmax.f32 %v292_v47, %v5636_v42  ;;  %v5641_v54 = vunpack.i.h.bf16 %v5639_v45  ;;  %v5640_v55 = vunpack.i.l.bf16 %v5639_v45 }
  0xca   : > { %v290_v52 = vmax.f32 %v6307_v7, %v5631_v48  ;;  %v289_v53 = vmax.f32 %v6305_v6, %v5630_v49  ;;  %v7668_v45 = vmov 0 }
  0xcb   : > { %v5644_v56 = vpop.permute.xlu0 %5643  ;;  %v307_v57 = vsel %vm7602_vm1, %v291_v46, %v303_v50  ;;  %v308_v58 = vsel %vm7602_vm1, %v292_v47, %v304_v51  ;;  %v5649_v59 = vpop.permute.xlu1 %5648  ;;  %v7669_v45 = vsel %vm6403_vm9, 4294967295, %v7668_v45  ;;  %v7670_v46 = vmov 0 }
  0xcc   : > { %v293_v60 = vsel %vm7596_vm0, %v6305_v6, %v289_v53  ;;  %v294_v61 = vsel %vm7596_vm0, %v6307_v7, %v290_v52  ;;  %v5646_v62 = vunpack.i.h.bf16 %v5644_v56  ;;  %v5645_v63 = vunpack.i.l.bf16 %v5644_v56 }
  0xcd   : > { %v305_v0 = vmax.f32 %v293_v60, %v5640_v55  ;;  %v306_v1 = vmax.f32 %v294_v61, %v5641_v54  ;;  %v5651_v2 = vunpack.i.h.bf16 %v5649_v59  ;;  %v5650_v5 = vunpack.i.l.bf16 %v5649_v59 }
  0xce   : > { %v319_v8 = vmax.f32 %v307_v57, %v5645_v63  ;;  %v320_v9 = vmax.f32 %v308_v58, %v5646_v62  ;;  %v7671_v46 = vsel %vm6409_vm10, 4294967295, %v7670_v46 }
  0xcf   : > { %v309_v10 = vsel %vm7602_vm1, %v293_v60, %v305_v0  ;;  %v310_v11 = vsel %vm7602_vm1, %v294_v61, %v306_v1  ;;  %v5654_v12 = vpop.permute.xlu0 %5653  ;;  %v5659_v13 = vpop.permute.xlu1 %5658  ;;  %v7676_v60 = vmov 0  ;;  %v7678_v61 = vmov 0 }
  0xd0   : > { %v321_v14 = vmax.f32 %v309_v10, %v5650_v5  ;;  %v322_v15 = vmax.f32 %v310_v11, %v5651_v2  ;;  %v5656_v16 = vunpack.i.h.bf16 %v5654_v12  ;;  %v5655_v17 = vunpack.i.l.bf16 %v5654_v12 }
  0xd1   : > { %v323_v18 = vsel %vm7601_vm2, %v307_v57, %v319_v8  ;;  %v324_v19 = vsel %vm7601_vm2, %v308_v58, %v320_v9  ;;  %v5661_v20 = vunpack.i.h.bf16 %v5659_v13  ;;  %v5660_v21 = vunpack.i.l.bf16 %v5659_v13 }
  0xd2   : > { %v335_v22 = vmax.f32 %v323_v18, %v5655_v17  ;;  %v336_v24 = vmax.f32 %v324_v19, %v5656_v16  ;;  %v325_v35 = vsel %vm7601_vm2, %v309_v10, %v321_v14  ;;  %v326_v36 = vsel %vm7601_vm2, %v310_v11, %v322_v15 }
  0xd3   : > { %v337_v37 = vmax.f32 %v325_v35, %v5660_v21  ;;  %v338_v38 = vmax.f32 %v326_v36, %v5661_v20  ;;  %v7677_v60 = vsel %vm6439_vm14, 4294967295, %v7676_v60  ;;  %v7679_v61 = vsel %vm6445_vm15, 4294967295, %v7678_v61 }
  0xd4   : > { %v6391_v39 = vsel %vm7595_vm3, %v323_v18, %v335_v22  ;;  %v6395_v40 = vsel %vm7595_vm3, %v324_v19, %v336_v24 }
  0xd5   : > { %v343_v41 = vrot.slane %v6391_v39, 6  ;;  %v344_v42 = vrot.slane %v6395_v40, 6  ;;  %v360_v43 = vrot.slane %v6391_v39, 7  ;;  %v361_v44 = vrot.slane %v6395_v40, 7 }
  0xd6   : > { %v377_v47 = vrot.slane %v6391_v39, 1  ;;  %v378_v48 = vrot.slane %v6395_v40, 1  ;;  %v394_v49 = vrot.slane %v6391_v39, 2  ;;  %v395_v50 = vrot.slane %v6395_v40, 2 }
  0xd7   : > { %v350_v29 = vsel %vm7594_vm4, %v343_v41, %v344_v42  ;;  %v341_v51 = vsel %vm7595_vm3, %v325_v35, %v337_v37  ;;  %v342_v52 = vsel %vm7595_vm3, %v326_v36, %v338_v38  ;;  %v367_v62 = vsel %vm7600_vm5, %v360_v43, %v361_v44 }
  0xd8   : > { %v353_v53 = vmax.f32 %v6395_v40, %v350_v29  ;;  %v345_v54 = vrot.slane %v341_v51, 6  ;;  %v346_v55 = vrot.slane %v342_v52, 6  ;;  %v362_v56 = vrot.slane %v341_v51, 7 }
  0xd9   : > { %v363_v57 = vrot.slane %v342_v52, 7  ;;  %v379_v58 = vrot.slane %v341_v51, 1  ;;  %v380_v59 = vrot.slane %v342_v52, 1  ;;  %v396_v13 = vrot.slane %v341_v51, 2 }
  0xda   : > { %v348_v63 = vsel %vm7594_vm4, %v345_v54, %v346_v55  ;;  %v349_v0 = vsel %vm7594_vm4, %v344_v42, %v345_v54  ;;  %v351_v30 = vsel %vm7594_vm4, %v346_v55, %v343_v41  ;;  %v370_v33 = vmax.f32 %v353_v53, %v367_v62  ;;  %v5823_v41 = vld [vmem:[#allocation5] sm:$0xff]   ;;  %v6513_v55 = vld [vmem:[#allocation5 + $0xf8] sm:$0xff]   ;;  %vm4306_vm4 = vmneg %vm6409_vm10 }
  0xdb   : > { %v352_v1 = vmax.f32 %v6391_v39, %v351_v30  ;;  %v354_v31 = vmax.f32 %v341_v51, %v349_v0  ;;  %v355_v34 = vmax.f32 %v342_v52, %v348_v63  ;;  %v365_v2 = vsel %vm7600_vm5, %v362_v56, %v363_v57  ;;  %5049 = vmatprep.subr.bf16.mxu1 %v5823_v41 }
  0xdc   : > { %v366_v5 = vsel %vm7600_vm5, %v361_v44, %v362_v56  ;;  %v368_v8 = vsel %vm7600_vm5, %v363_v57, %v360_v43  ;;  %v385_v9 = vsel %vm7599_vm6, %v380_v59, %v377_v47  ;;  %v397_v16 = vrot.slane %v342_v52, 2  ;;  %5050 = vmatpush3.bf16.msra.mxu1 %v5823_v41 }
  0xdd   : > { %v356_v10 = vsel %vm6375_vm7, %v6391_v39, %v352_v1  ;;  %v358_v11 = vsel %vm6381_vm8, %v341_v51, %v354_v31  ;;  %v372_v12 = vmax.f32 %v355_v34, %v365_v2  ;;  %v383_v17 = vsel %vm7599_vm6, %v378_v48, %v379_v58  ;;  %5075 = vmatprep.subr.bf16.mxu1 %v6513_v55 }
  0xde   : > { %v369_v14 = vmax.f32 %v356_v10, %v368_v8  ;;  %v371_v15 = vmax.f32 %v358_v11, %v366_v5  ;;  %v384_v18 = vsel %vm7599_vm6, %v377_v47, %v378_v48  ;;  %v382_v19 = vsel %vm7599_vm6, %v379_v58, %v380_v59 }
  0xdf   : > { %v389_v20 = vmax.f32 %v372_v12, %v385_v9  ;;  %v387_v21 = vmax.f32 %v370_v33, %v383_v17  ;;  %v402_v24 = vsel %vm7593_vm11, %v397_v16, %v394_v49  ;;  %v400_v36 = vsel %vm7593_vm11, %v395_v50, %v396_v13  ;;  %v6018_v17 = vld [vmem:[#allocation5 + $0xb8] sm:$0xff]  }
  0xe0   : > { %v375_v22 = vsel %vm6409_vm10, %v358_v11, %v371_v15  ;;  %v373_v35 = vsel %vm6403_vm9, %v356_v10, %v369_v14  ;;  %v399_v42 = vsel %vm7593_vm11, %v396_v13, %v397_v16  ;;  %v401_v44 = vsel %vm7593_vm11, %v394_v49, %v395_v50  ;;  %vm4302_vm11 = vmneg %vm6403_vm9  ;;  %v5814_v11 = vld [vmem:[#allocation5 + $0xb0] sm:$0xff]  }
  0xe1   : > { %v388_v37 = vmax.f32 %v375_v22, %v382_v19  ;;  %v393_v38 = vsel %vm6420_vm12, %v372_v12, %v389_v20  ;;  %v386_v39 = vmax.f32 %v373_v35, %v384_v18  ;;  %v391_v40 = vsel %vm6426_vm13, %v370_v33, %v387_v21  ;;  %v5816_v18 = vld [vmem:[#allocation5 + $0xa8] sm:$0xff]   ;;  %v5818_v19 = vld [vmem:[#allocation5 + $0xa0] sm:$0xff]   ;;  %v5820_v20 = vld [vmem:[#allocation5 + $0x98] sm:$0xff]  }
  0xe2   : > { %v406_v43 = vmax.f32 %v393_v38, %v402_v24  ;;  %v404_v47 = vmax.f32 %v391_v40, %v400_v36  ;;  %vm7597_vm3 = vmmov 1   ;;  %v7680_v33 = vmov 0  ;;  %v5822_v21 = vld [vmem:[#allocation5 + $0x90] sm:$0xff]   ;;  %v5824_v22 = vld [vmem:[#allocation5 + $0x88] sm:$0xff]   ;;  %v5825_v24 = vld [vmem:[#allocation5 + $0x80] sm:$0xff]  }
  0xe3   : > { %v6493_v48 = vmax.f32 %v388_v37, %v399_v42  ;;  %v6495_v29 = vmax.f32 %v386_v39, %v401_v44  ;;  %vm6532_vm0 = vmpackc.low %vm7597_vm3, %vm4302_vm11  ;;  %v7682_v8 = vmov 0  ;;  %v6577_v35 = vld [vmem:[#allocation5 + $0x138] sm:$0xff]   ;;  %v5861_v42 = vld [vmem:[#allocation5 + $0x1e8] sm:$0xff]  }
  0xe4   : > { %v6499_v51 = vsel %vm6439_vm14, %v393_v38, %v406_v43  ;;  %v6503_v52 = vsel %vm6445_vm15, %v391_v40, %v404_v47  ;;  %v7681_v33 = vsel %vm6532_vm0, 4294967295, %v7680_v33  ;;  %vm6547_vm11 = vmpackc.low %vm7597_vm3, %vm4306_vm4 }
  0xe5   : > { %v5667_v53 = vpack.i.bf16 %v6493_v48, %v6499_v51  ;;  %v1317_v49 = vrot.slane %v6499_v51, 1  ;;  %v5662_v50 = vpack.i.bf16 %v6503_v52, %v6495_v29  ;;  %v449_v54 = vrot.slane %v6495_v29, 7  ;;  %vm6584_vm4 = vmor %vm7602_vm1, %vm6403_vm9 }
  0xe6   : > { %v450_v56 = vrot.slane %v6503_v52, 7  ;;  %v452_v57 = vrot.slane %v6499_v51, 7  ;;  %v451_v58 = vrot.slane %v6493_v48, 7  ;;  %v938_v59 = vpack.c.bf16 %v6503_v52, %v6495_v29  ;;  %vm6592_vm3 = vmor %vm7602_vm1, %vm6409_vm10 }
  0xe7   : > { %5668 = vrot.lane.b32.xlu1 %v5667_v53, %s6150_s17  ;;  %5663 = vrot.lane.b32.xlu0 %v5662_v50, %s6150_s17  ;;  %v939_v62 = vpack.c.bf16 %v6499_v51, %v6493_v48  ;;  %v1314_v63 = vrot.slane %v6495_v29, 1  ;;  %v1315_v1 = vrot.slane %v6503_v52, 1  ;;  %v1316_v31 = vrot.slane %v6493_v48, 1  ;;  %vm4324_vm2 = vmneg %vm6592_vm3  ;;  %v5838_v29 = vld [vmem:[#allocation5 + $0x110] sm:$0xff]   ;;  %v5837_v52 = vld [vmem:[#allocation5 + $0xc8] sm:$0xff]  }
  0xe8   : > { %v455_v0 = vsel %vm7600_vm5, %v449_v54, %v450_v56  ;;  %v456_v30 = vsel %vm7600_vm5, %v452_v57, %v449_v54  ;;  %v453_v2 = vsel %vm7600_vm5, %v451_v58, %v452_v57  ;;  %v454_v5 = vsel %vm7600_vm5, %v450_v56, %v451_v58  ;;  %vm4319_vm5 = vmneg %vm6584_vm4  ;;  %v5852_v48 = vld [vmem:[#allocation5 + $0x198] sm:$0xff]   ;;  %v5851_v51 = vld [vmem:[#allocation5 + $0x150] sm:$0xff]  }
  0xe9   : > { %v4304_v34 = vpack.c.bf16 %v455_v0, %v456_v30  ;;  %v7683_v8 = vsel %vm6547_vm11, 4294967295, %v7682_v8  ;;  %v6553_v9 = vsel %vm7599_vm6, %v1317_v49, %v1314_v63  ;;  %v4308_v10 = vpack.c.bf16 %v453_v2, %v454_v5  ;;  %v5973_v57 = vld [vmem:[#allocation5 + $0x568] sm:$0xff]  }
  0xea   : > { %v6557_v12 = vsel %vm7599_vm6, %v1315_v1, %v1316_v31  ;;  %v6561_v13 = vsel %vm7599_vm6, %v1314_v63, %v1315_v1  ;;  %v6565_v14 = vsel %vm7599_vm6, %v1316_v31, %v1317_v49  ;;  %vm6602_vm6 = vmneg %vm7602_vm1  ;;  %v7692_v30 = vmov 0 }
  0xeb   : > { %5031 = vmatprep.mubr.msk.bf16.mxu0 %vm6532_vm0, %v4304_v34  ;;  %5678 = vrot.lane.b32.xlu1 %v5667_v53, %s6151_s8  ;;  %vm6622_vm1 = vmpackc.low %vm6602_vm6, %vm4319_vm5  ;;  %vm7694_vm5 = vcmp.ge.s32.totalorder %v6323_v25, 120 }
  0xec   : > { %5673 = vrot.lane.b32.xlu0 %v5662_v50, %s6151_s8  ;;  %5032 = vmatmul.mubr.msk.bf16.vlgmr.msra.gmra.mxu0 %vm6547_vm11, %v4308_v10  ;;  %vm6633_vm3 = vmpackc.low %vm6602_vm6, %vm4324_vm2  ;;  %vm7697_vm2 = vcmp.lt.s32.totalorder %v6321_v23, 1 }
  0xed   : > { %5056 = vmatpush3.bf16.msra.mxu0 %v6018_v17  ;;  %v7693_v30 = vsel %vm6633_vm3, 4294967295, %v7692_v30  ;;  %vm6645_vm4 = vmor %vm7694_vm5, %vm6403_vm9 }
  0xee   : > { %5057 = vmatprep.subr.bf16.mxu0 %v5814_v11  ;;  %vm7698_vm11 = vmmov %vm7694_vm5 }
  0xef   : > { %vm6659_vm0 = vmor %vm7698_vm11, %vm6409_vm10 }
  0xf0   : > { %vm7701_vm5 = vmmov %vm7697_vm2 }
  0xf1   : > { %5058 = vmatpush3.bf16.msra.mxu0 %v5814_v11  ;;  %vm7702_vm15 = vmmov %vm7698_vm11 }
  0xf2   : > { %5059 = vmatprep.subr.bf16.mxu0 %v5816_v18  ;;  %vm6669_vm14 = vmneg %vm7702_vm15 }
  0xf3   : > { %vm7706_vm11 = vmmov %vm7701_vm5 }
  0xf4   : > { %vm4337_vm10 = vmneg %vm6645_vm4 }
  0xf5   : > { %5060 = vmatpush3.bf16.msra.mxu0 %v5816_v18  ;;  %vm7707_vm15 = vmmov %vm7701_vm5 }
  0xf6   : > { %5061 = vmatprep.subr.bf16.mxu0 %v5818_v19  ;;  %vm7708_vm9 = vmmov %vm7701_vm5 }
  0xf9   : > { %5062 = vmatpush3.bf16.msra.mxu0 %v5818_v19  ;;  %v7715_v19 = vmov 0 }
  0xfa   : > { %5063 = vmatprep.subr.bf16.mxu0 %v5820_v20 }
  0xfd   : > { %5064 = vmatpush3.bf16.msra.mxu0 %v5820_v20 }
  0xfe   : > { %5065 = vmatprep.subr.bf16.mxu0 %v5822_v21 }
 0x101   : > { %5066 = vmatpush3.bf16.msra.mxu0 %v5822_v21 }
 0x102   : > { %5067 = vmatprep.subr.bf16.mxu0 %v5824_v22 }
 0x105   : > { %5068 = vmatpush3.bf16.msra.mxu0 %v5824_v22 }
 0x106   : > { %5069 = vmatprep.subr.bf16.mxu0 %v5825_v24 }
 0x109   : > { %5070 = vmatpush3.bf16.msra.mxu0 %v5825_v24 }
 0x10a   : > { %5095 = vmatprep.subr.bf16.mxu0 %v6577_v35 }
 0x159   : > { %v5669_v37 = vpop.permute.xlu1 %5668  ;;  %v5664_v38 = vpop.permute.xlu0 %5663 }
 0x15a   : > { %v6596_v40 = vunpack.i.h.bf16 %v5664_v38  ;;  %v6598_v41 = vunpack.i.l.bf16 %v5664_v38  ;;  %v6606_v43 = vunpack.i.l.bf16 %v5669_v37  ;;  %v6610_v44 = vunpack.i.h.bf16 %v5669_v37 }
 0x15c   : > { %v420_v47 = vrot.slane %v6596_v40, 7  ;;  %v419_v53 = vrot.slane %v6598_v41, 7  ;;  %v422_v58 = vrot.slane %v6606_v43, 7  ;;  %v421_v1 = vrot.slane %v6610_v44, 7 }
 0x15d   : > { %v5679_v49 = vpop.permute.xlu1 %5678 }
 0x15e   : > { %v6616_v50 = vunpack.i.h.bf16 %v5679_v49  ;;  %v6618_v54 = vunpack.i.l.bf16 %v5679_v49  ;;  %v5674_v56 = vpop.permute.xlu0 %5673  ;;  %v425_v18 = vsel %vm7697_vm2, %v419_v53, %v420_v47  ;;  %vm7705_vm2 = vcmp.lt.s32.totalorder %v6321_v23, 7 }
 0x15f   : > { %v6627_v63 = vunpack.i.h.bf16 %v5674_v56  ;;  %v6629_v0 = vunpack.i.l.bf16 %v5674_v56  ;;  %v426_v39 = vsel %vm7701_vm5, %v422_v58, %v419_v53  ;;  %v423_v56 = vsel %vm7707_vm15, %v421_v1, %v422_v58  ;;  %vm7712_vm15 = vmmov %vm7708_vm9 }
 0x160   : > { %v684_v31 = vrot.slane %v6616_v50, 7  ;;  %v1448_v34 = vrot.slane %v6616_v50, 1  ;;  %v685_v2 = vrot.slane %v6618_v54, 7  ;;  %v4388_v10 = vpack.c.bf16 %v6618_v54, %v6616_v50 }
 0x161   : > { %v1449_v11 = vrot.slane %v6618_v54, 1  ;;  %v683_v17 = vrot.slane %v6627_v63, 7  ;;  %v1447_v21 = vrot.slane %v6627_v63, 1  ;;  %v682_v22 = vrot.slane %v6629_v0, 7  ;;  %v5862_v54 = vld [vmem:[#allocation5 + $0x230] sm:$0xff]  }
 0x162   : > { %v686_v20 = vsel %vm7701_vm5, %v684_v31, %v685_v2  ;;  %v1446_v38 = vrot.slane %v6629_v0, 1  ;;  %v4321_v49 = vpack.c.bf16 %v425_v18, %v426_v39  ;;  %v424_v16 = vsel %vm7708_vm9, %v420_v47, %v421_v1  ;;  %vm6697_vm5 = vmpackc.low %vm6602_vm6, %vm6602_vm6  ;;  %v5827_v1 = vld [vmem:[#allocation5 + $0xf0] sm:$0xff]   ;;  %v5836_v39 = vld [vmem:[#allocation5 + $0x118] sm:$0xff]  }
 0x163   : > { %v6675_v36 = vsel %vm7705_vm2, %v1448_v34, %v1449_v11  ;;  %v687_v37 = vsel %vm7706_vm11, %v683_v17, %v684_v31  ;;  %vm4342_vm2 = vmneg %vm6659_vm0  ;;  %vm7709_vm11 = vcmp.lt.s32.totalorder %v6321_v23, 7  ;;  %v4326_v15 = vpack.c.bf16 %v423_v56, %v424_v16  ;;  %v5841_v56 = vld [vmem:[#allocation5 + $0x100] sm:$0xff]  }
 0x164   : > { %v6692_v31 = vsel %vm7709_vm11, %v1449_v11, %v1446_v38  ;;  %v7710_v53 = vmov 0  ;;  %v688_v58 = vsel %vm7712_vm15, %v682_v22, %v683_v17  ;;  %v689_v47 = vsel %vm7708_vm9, %v685_v2, %v682_v22  ;;  %5051 = vmatprep.mubr.msk.bf16.mxu1 %vm6622_vm1, %v4321_v49  ;;  %vm6716_vm0 = vmpackc.low %vm6669_vm14, %vm4337_vm10  ;;  %v5839_v49 = vld [vmem:[#allocation5 + $0xc0] sm:$0xff]  }
 0x165   : > { %v7711_v53 = vsel %vm6697_vm5, 4294967295, %v7710_v53  ;;  %v4357_v18 = vpack.c.bf16 %v6596_v40, %v6598_v41  ;;  %v4344_v11 = vpack.c.bf16 %v686_v20, %v687_v37  ;;  %v4440_v16 = vpack.c.bf16 %v6692_v31, %v6675_v36  ;;  %5052 = vmatmul.mubr.msk.bf16.vlgmr.msra.gmra.mxu1 %vm6633_vm3, %v4326_v15  ;;  %vm6724_vm11 = vmpackc.low %vm6669_vm14, %vm4342_vm2  ;;  %v5830_v15 = vld [vmem:[#allocation5 + $0x130] sm:$0xff]   ;;  %v5829_v37 = vld [vmem:[#allocation5 + $0xe8] sm:$0xff]  }
 0x166   : > { %v7713_v17 = vmov 0  ;;  %v4339_v2 = vpack.c.bf16 %v688_v58, %v689_v47  ;;  %v7716_v19 = vsel %vm6724_vm11, 4294967295, %v7715_v19  ;;  %vm7717_vm15 = vcmp.lt.s32.totalorder %v6321_v23, 7  ;;  %5076 = vmatpush3.bf16.msra.mxu1 %v6513_v55  ;;  %v5832_v55 = vld [vmem:[#allocation5 + $0x128] sm:$0xff]   ;;  %v5842_v58 = vld [vmem:[#allocation5 + $0x178] sm:$0xff]   ;;  %vm6763_vm9 = vmpackc.low %vm6669_vm14, %vm6669_vm14 }
 0x167   : > { %v7714_v17 = vsel %vm6716_vm0, 4294967295, %v7713_v17  ;;  %v6730_v5 = vsel %vm7717_vm15, %v1447_v21, %v1448_v34  ;;  %vm7718_vm4 = vmmov %vm7717_vm15  ;;  %5091 = vmatprep.mubr.msk.bf16.mxu1 %vm6697_vm5, %v4357_v18  ;;  %5077 = vmatprep.subr.bf16.mxu1 %v5827_v1  ;;  %v5831_v34 = vld [vmem:[#allocation5 + $0xe0] sm:$0xff]   ;;  %v1184_v47 = vrot.slane %v6610_v44, 1  ;;  %v1182_v18 = vrot.slane %v6598_v41, 1 }
 0x168   : > { %v6734_v20 = vsel %vm7718_vm4, %v1446_v38, %v1447_v21  ;;  %5071 = vmatprep.mubr.msk.bf16.mxu0 %vm6716_vm0, %v4339_v2  ;;  %v5834_v21 = vld [vmem:[#allocation5 + $0x120] sm:$0xff]   ;;  %v5833_v38 = vld [vmem:[#allocation5 + $0xd8] sm:$0xff]   ;;  %vm7719_vm10 = vcmp.lt.s32.totalorder %v6323_v25, 8  ;;  %vm7733_vm0 = vmmov 1   ;;  %vm7736_vm3 = vcmp.lt.s32.totalorder %v6321_v23, 7 }
 0x169   : > { %v4435_v22 = vpack.c.bf16 %v6730_v5, %v6734_v20  ;;  %5072 = vmatmul.mubr.msk.bf16.vlgmr.msra.gmra.mxu0 %vm6724_vm11, %v4344_v11  ;;  %vm6756_vm2 = vmor %vm7719_vm10, %vm6426_vm13  ;;  %v1185_v11 = vrot.slane %v6606_v43, 1  ;;  %v7738_v41 = vmov 0  ;;  %v7742_v50 = vmov 0  ;;  %v5867_v5 = vld [vmem:[#allocation5 + $0x1d0] sm:$0xff]  }
 0x16a   : > { %5096 = vmatpush3.bf16.msra.mxu0 %v6577_v35  ;;  %5111 = vmatprep.mubr.bf16.mxu0 %v938_v59  ;;  %v5835_v35 = vld [vmem:[#allocation5 + $0xd0] sm:$0xff]   ;;  %v5840_v59 = vld [vmem:[#allocation5 + $0x108] sm:$0xff]   ;;  %vm4398_vm15 = vmneg %vm6756_vm2 }
 0x16b   : > { %5078 = vmatpush3.bf16.msra.mxu1 %v5827_v1  ;;  %5097 = vmatprep.subr.bf16.mxu0 %v5830_v15  ;;  %v1183_v1 = vrot.slane %v6596_v40, 1  ;;  %v4362_v40 = vpack.c.bf16 %v6606_v43, %v6610_v44  ;;  %vm7724_vm10 = vmmov %vm7718_vm4  ;;  %v7734_v43 = vmov 0  ;;  %v5870_v20 = vld [vmem:[#allocation5 + $0x210] sm:$0xff]  }
 0x16c   : > { %5079 = vmatprep.subr.bf16.mxu1 %v5829_v37  ;;  %vm6787_vm2 = vmpackc.low %vm4398_vm15, %vm6602_vm6 }
 0x16d   : > { %vm4416_vm15 = vmneg %vm6426_vm13 }
 0x16e   : > { %5098 = vmatpush3.bf16.msra.mxu0 %v5830_v15  ;;  %v5843_v15 = vld [vmem:[#allocation5 + $0x170] sm:$0xff]  }
 0x16f   : > { %5080 = vmatpush3.bf16.msra.mxu1 %v5829_v37  ;;  %5099 = vmatprep.subr.bf16.mxu0 %v5832_v55  ;;  %v5844_v37 = vld [vmem:[#allocation5 + $0x1b8] sm:$0xff]  }
 0x170   : > { %5081 = vmatprep.subr.bf16.mxu1 %v5831_v34 }
 0x172   : > { %5100 = vmatpush3.bf16.msra.mxu0 %v5832_v55  ;;  %v4383_v55 = vpack.c.bf16 %v6627_v63, %v6629_v0  ;;  %v7725_v63 = vmov 0  ;;  %v5846_v0 = vld [vmem:[#allocation5 + $0x1b0] sm:$0xff]  }
 0x173   : > { %5082 = vmatpush3.bf16.msra.mxu1 %v5831_v34  ;;  %5101 = vmatprep.subr.bf16.mxu0 %v5834_v21  ;;  %v1187_v34 = vsel %vm7718_vm4, %v1183_v1, %v1184_v47  ;;  %v7726_v63 = vsel %vm6787_vm2, 4294967295, %v7725_v63  ;;  %vm7727_vm4 = vcmp.lt.s32.totalorder %v6323_v25, 8 }
 0x174   : > { %5083 = vmatprep.subr.bf16.mxu1 %v5833_v38 }
 0x176   : > { %5102 = vmatpush3.bf16.msra.mxu0 %v5834_v21  ;;  %v1188_v21 = vsel %vm7724_vm10, %v1182_v18, %v1183_v1  ;;  %v5857_v1 = vld [vmem:[#allocation5 + $0x180] sm:$0xff]   ;;  %vm6803_vm10 = vmor %vm7727_vm4, %vm6420_vm12 }
 0x177   : > { %5084 = vmatpush3.bf16.msra.mxu1 %v5833_v38  ;;  %5103 = vmatprep.subr.bf16.mxu0 %v5836_v39  ;;  %v4401_v38 = vpack.c.bf16 %v1187_v34, %v1188_v21  ;;  %vm4403_vm4 = vmneg %vm6803_vm10  ;;  %v5859_v21 = vld [vmem:[#allocation5 + $0x1f0] sm:$0xff]   ;;  %vm7745_vm10 = vcmp.ge.s32.totalorder %v6323_v25, 120 }
 0x178   : > { %5085 = vmatprep.subr.bf16.mxu1 %v5835_v35 }
 0x17a   : > { %5104 = vmatpush3.bf16.msra.mxu0 %v5836_v39  ;;  %v5845_v39 = vld [vmem:[#allocation5 + $0x168] sm:$0xff]  }
 0x17b   : > { %5086 = vmatpush3.bf16.msra.mxu1 %v5835_v35  ;;  %5105 = vmatprep.subr.bf16.mxu0 %v5838_v29  ;;  %v5848_v35 = vld [vmem:[#allocation5 + $0x1a8] sm:$0xff]  }
 0x17c   : > { %5087 = vmatprep.subr.bf16.mxu1 %v5837_v52 }
 0x17e   : > { %5106 = vmatpush3.bf16.msra.mxu0 %v5838_v29  ;;  %v5847_v29 = vld [vmem:[#allocation5 + $0x160] sm:$0xff]  }
 0x17f   : > { %5088 = vmatpush3.bf16.msra.mxu1 %v5837_v52  ;;  %5107 = vmatprep.subr.bf16.mxu0 %v5840_v59  ;;  %v5850_v52 = vld [vmem:[#allocation5 + $0x1a0] sm:$0xff]  }
 0x180   : > { %5089 = vmatprep.subr.bf16.mxu1 %v5839_v49 }
 0x182   : > { %5108 = vmatpush3.bf16.msra.mxu0 %v5840_v59  ;;  %v5849_v59 = vld [vmem:[#allocation5 + $0x158] sm:$0xff]  }
 0x183   : > { %5090 = vmatpush3.bf16.msra.mxu1 %v5839_v49  ;;  %5109 = vmatprep.subr.bf16.mxu0 %v5841_v56  ;;  %v5853_v49 = vld [vmem:[#allocation5 + $0x148] sm:$0xff]  }
 0x184   : > { %5115 = vmatprep.subr.bf16.mxu1 %v5842_v58 }
 0x186   : > { %5092 = vmatmul.mubr.msk.bf16.vlgmr.msra.gmra.mxu1 %vm6697_vm5, %v4362_v40  ;;  %5110 = vmatpush3.bf16.msra.mxu0 %v5841_v56  ;;  %v5856_v56 = vld [vmem:[#allocation5 + $0x188] sm:$0xff]   ;;  %v5858_v40 = vld [vmem:[#allocation5 + $0x1f8] sm:$0xff]   ;;  %vm6816_vm5 = vmpackc.low %vm4416_vm15, %vm7733_vm0 }
 0x187   : > { %5116 = vmatpush3.bf16.msra.mxu1 %v5842_v58  ;;  %5131 = vmatprep.mubr.msk.bf16.mxu1 %vm6763_vm9, %v4383_v55  ;;  %v5855_v58 = vld [vmem:[#allocation5 + $0x140] sm:$0xff]   ;;  %v7735_v43 = vsel %vm6816_vm5, 4294967295, %v7734_v43  ;;  %v1186_v55 = vsel %vm7736_vm3, %v1184_v47, %v1185_v11  ;;  %v7741_v47 = vpack.c.bf16 %v6557_v12, %v6561_v13  ;;  %v5864_v12 = vld [vmem:[#allocation5 + $0x228] sm:$0xff]  }
 0x188   : > { %5117 = vmatprep.subr.bf16.mxu1 %v5843_v15  ;;  %5135 = vmatprep.subr.bf16.mxu0 %v5844_v37  ;;  %v5863_v13 = vld [vmem:[#allocation5 + $0x1e0] sm:$0xff]  }
 0x189   : > { %5112 = vmatmul.mubr.bf16.vlgmr.msra.gmra.mxu0 %v939_v62  ;;  %v5854_v62 = vld [vmem:[#allocation5 + $0x190] sm:$0xff]  }
 0x18a   : > { %5136 = vmatpush3.bf16.msra.mxu0 %v5844_v37  ;;  %5151 = vmatprep.mubr.msk.bf16.mxu0 %vm6787_vm2, %v4401_v38  ;;  %vm7730_vm2 = vcmp.ge.s32.totalorder %v6323_v25, 120  ;;  %v5868_v38 = vld [vmem:[#allocation5 + $0x218] sm:$0xff]  }
 0x18b   : > { %5118 = vmatpush3.bf16.msra.mxu1 %v5843_v15  ;;  %5137 = vmatprep.subr.bf16.mxu0 %v5846_v0  ;;  %vm6811_vm11 = vmor %vm7730_vm2, %vm6426_vm13 }
 0x18c   : > { %5119 = vmatprep.subr.bf16.mxu1 %v5845_v39  ;;  %vm7737_vm2 = vmmov %vm7736_vm3 }
 0x18d   : > { %v1189_v34 = vsel %vm7737_vm2, %v1185_v11, %v1182_v18  ;;  %vm4432_vm15 = vmneg %vm6811_vm11  ;;  %v5865_v18 = vld [vmem:[#allocation5 + $0x1d8] sm:$0xff]  }
 0x18e   : > { %5138 = vmatpush3.bf16.msra.mxu0 %v5846_v0  ;;  %v5860_v0 = vld [vmem:[#allocation5 + $0x238] sm:$0xff]   ;;  %vm6839_vm3 = vmpackc.low %vm4403_vm4, %vm6602_vm6  ;;  %v4406_v44 = vpack.c.bf16 %v1189_v34, %v1186_v55 }
 0x18f   : > { %5120 = vmatpush3.bf16.msra.mxu1 %v5845_v39  ;;  %5139 = vmatprep.subr.bf16.mxu0 %v5848_v35  ;;  %v7739_v41 = vsel %vm6839_vm3, 4294967295, %v7738_v41  ;;  %vm6850_vm11 = vmpackc.low %vm4432_vm15, %vm6669_vm14  ;;  %v5872_v39 = vld [vmem:[#allocation5 + $0x208] sm:$0xff]  }
 0x190   : > { %5121 = vmatprep.subr.bf16.mxu1 %v5847_v29  ;;  %7740 = vst [vmem:[#allocation15_spill] sm:$0xff] %v7739_v41  ;;  %v7743_v50 = vsel %vm6850_vm11, 4294967295, %v7742_v50  ;;  %vm4420_vm6 = vmneg %vm6420_vm12 }
 0x191   : > { %7744 = vst [vmem:[#allocation16_spill] sm:$0xff] %v7743_v50  ;;  %vm278_vm4 = vmor %vm7745_vm10, %vm6420_vm12 }
 0x192   : > { %5140 = vmatpush3.bf16.msra.mxu0 %v5848_v35  ;;  %v5871_v35 = vld [vmem:[#allocation5 + $0x1c0] sm:$0xff]   ;;  %vm6868_vm2 = vmpackc.low %vm4420_vm6, %vm7733_vm0 }
 0x193   : > { %5122 = vmatpush3.bf16.msra.mxu1 %v5847_v29  ;;  %5141 = vmatprep.subr.bf16.mxu0 %v5850_v52  ;;  %v5873_v29 = vld [vmem:[#allocation5 + $0x200] sm:$0xff]   ;;  %vm4437_vm15 = vmneg %vm278_vm4  ;;  %vm7761_vm4 = vcmp.lt.s32.totalorder %v6323_v25, 8 }
 0x194   : > { %5123 = vmatprep.subr.bf16.mxu1 %v5849_v59 }
 0x196   : > { %5142 = vmatpush3.bf16.msra.mxu0 %v5850_v52  ;;  %v7746_v52 = vmov 0 }
 0x197   : > { %5124 = vmatpush3.bf16.msra.mxu1 %v5849_v59  ;;  %5143 = vmatprep.subr.bf16.mxu0 %v5852_v48  ;;  %v7747_v52 = vsel %vm6868_vm2, 4294967295, %v7746_v52  ;;  %v7749_v59 = vpack.c.bf16 %v6553_v9, %v6565_v14 }
 0x198   : > { %5125 = vmatprep.subr.bf16.mxu1 %v5851_v51  ;;  %7748 = vst [vmem:[#allocation17_spill] sm:$0xff] %v7747_v52  ;;  %v7890_v2 = vld [vmem:[#allocation16_spill] sm:$0xff] }
 0x19a   : > { %5144 = vmatpush3.bf16.msra.mxu0 %v5852_v48  ;;  %v7750_v48 = vmov 0 }
 0x19b   : > { %5126 = vmatpush3.bf16.msra.mxu1 %v5851_v51  ;;  %5145 = vmatprep.subr.bf16.mxu0 %v5854_v62 }
 0x19c   : > { %5127 = vmatprep.subr.bf16.mxu1 %v5853_v49 }
 0x19e   : > { %5146 = vmatpush3.bf16.msra.mxu0 %v5854_v62 }
 0x19f   : > { %5128 = vmatpush3.bf16.msra.mxu1 %v5853_v49  ;;  %5147 = vmatprep.subr.bf16.mxu0 %v5856_v56 }
 0x1a0   : > { %5129 = vmatprep.subr.bf16.mxu1 %v5855_v58 }
 0x1a2   : > { %5148 = vmatpush3.bf16.msra.mxu0 %v5856_v56 }
 0x1a3   : > { %5130 = vmatpush3.bf16.msra.mxu1 %v5855_v58  ;;  %5149 = vmatprep.subr.bf16.mxu0 %v5857_v1 }
 0x1a4   : > { %5155 = vmatprep.subr.bf16.mxu1 %v5858_v40 }
 0x1a6   : > { %5132 = vmatmul.mubr.msk.bf16.vlgmr.msra.gmra.mxu1 %vm6763_vm9, %v4388_v10  ;;  %5150 = vmatpush3.bf16.msra.mxu0 %v5857_v1  ;;  %v5866_v10 = vld [vmem:[#allocation5 + $0x220] sm:$0xff]  }
 0x1a7   : > { %5156 = vmatpush3.bf16.msra.mxu1 %v5858_v40  ;;  %5171 = vmatprep.mubr.msk.bf16.mxu1 %vm6816_vm5, %v7741_v47 }
 0x1a8   : > { %5157 = vmatprep.subr.bf16.mxu1 %v5859_v21  ;;  %5175 = vmatprep.subr.bf16.mxu0 %v5860_v0 }
 0x1a9   : > { %5152 = vmatmul.mubr.msk.bf16.vlgmr.msra.gmra.mxu0 %vm6839_vm3, %v4406_v44 }
 0x1aa   : > { %5176 = vmatpush3.bf16.msra.mxu0 %v5860_v0  ;;  %5191 = vmatprep.mubr.msk.bf16.mxu0 %vm6850_vm11, %v4435_v22  ;;  %v5869_v22 = vld [vmem:[#allocation5 + $0x1c8] sm:$0xff]   ;;  %vm6879_vm11 = vmpackc.low %vm4437_vm15, %vm6669_vm14  ;;  %vm7757_vm14 = vcmp.lt.s32.totalorder %v6323_v25, 16 }
 0x1ab   : > { %5158 = vmatpush3.bf16.msra.mxu1 %v5859_v21  ;;  %5177 = vmatprep.subr.bf16.mxu0 %v5862_v54  ;;  %v7751_v48 = vsel %vm6879_vm11, 4294967295, %v7750_v48  ;;  %vm7758_vm0 = vmmov %vm7757_vm14 }
 0x1ac   : > { %5159 = vmatprep.subr.bf16.mxu1 %v5861_v42  ;;  %7752 = vst [vmem:[#allocation18_spill] sm:$0xff] %v7751_v48  ;;  %v5033_v51 = vpop.f32.mrf.mxu0  ;;  %vm7759_vm6 = vmmov %vm7758_vm0 }
 0x1ad   : > { %vm7760_vm10 = vmmov %vm7758_vm0 }
 0x1ae   : > { %5178 = vmatpush3.bf16.msra.mxu0 %v5862_v54  ;;  %v562_v62 = vpop.f32.mrf.mxu0  ;;  %vm7762_vm15 = vmmov %vm7761_vm4 }
 0x1af   : > { %5160 = vmatpush3.bf16.msra.mxu1 %v5861_v42  ;;  %5179 = vmatprep.subr.bf16.mxu0 %v5864_v12 }
 0x1b0   : > { %5161 = vmatprep.subr.bf16.mxu1 %v5863_v13  ;;  %v5034_v49 = vpop.f32.mrf.mxu0 }
 0x1b2   : > { %5180 = vmatpush3.bf16.msra.mxu0 %v5864_v12  ;;  %v565_v14 = vpop.f32.mrf.mxu0 }
 0x1b3   : > { %5162 = vmatpush3.bf16.msra.mxu1 %v5863_v13  ;;  %5181 = vmatprep.subr.bf16.mxu0 %v5866_v10 }
 0x1b4   : > { %5163 = vmatprep.subr.bf16.mxu1 %v5865_v18 }
 0x1b6   : > { %5182 = vmatpush3.bf16.msra.mxu0 %v5866_v10 }
 0x1b7   : > { %5164 = vmatpush3.bf16.msra.mxu1 %v5865_v18  ;;  %5183 = vmatprep.subr.bf16.mxu0 %v5868_v38 }
 0x1b8   : > { %5165 = vmatprep.subr.bf16.mxu1 %v5867_v5 }
 0x1ba   : > { %5184 = vmatpush3.bf16.msra.mxu0 %v5868_v38 }
 0x1bb   : > { %5166 = vmatpush3.bf16.msra.mxu1 %v5867_v5  ;;  %5185 = vmatprep.subr.bf16.mxu0 %v5870_v20 }
 0x1bc   : > { %5167 = vmatprep.subr.bf16.mxu1 %v5869_v22 }
 0x1be   : > { %5186 = vmatpush3.bf16.msra.mxu0 %v5870_v20 }
 0x1bf   : > { %5168 = vmatpush3.bf16.msra.mxu1 %v5869_v22  ;;  %5187 = vmatprep.subr.bf16.mxu0 %v5872_v39 }
 0x1c0   : > { %5169 = vmatprep.subr.bf16.mxu1 %v5871_v35 }
 0x1c2   : > { %5188 = vmatpush3.bf16.msra.mxu0 %v5872_v39 }
 0x1c3   : > { %5170 = vmatpush3.bf16.msra.mxu1 %v5871_v35  ;;  %5189 = vmatprep.subr.bf16.mxu0 %v5873_v29 }
 0x1c6   : > { %5172 = vmatmul.mubr.msk.bf16.vlgmr.msra.gmra.mxu1 %vm6868_vm2, %v7749_v59  ;;  %5190 = vmatpush3.bf16.msra.mxu0 %v5873_v29 }
 0x1c9   : > { %5192 = vmatmul.mubr.msk.bf16.vlgmr.msra.gmra.mxu0 %vm6879_vm11, %v4440_v16 }
 0x225   : > { %v5053_v9 = vpop.f32.mrf.mxu1 }
 0x226   : > { %v668_v12 = vadd.f32 %v5053_v9, %v5033_v51 }
 0x227   : > { %v659_v58 = vpop.f32.mrf.mxu1 }
 0x228   : > { %v660_v18 = vadd.f32 %v659_v58, %v562_v62 }
 0x229   : > { %v5073_v56 = vpop.f32.mrf.mxu0  ;;  %v5054_v11 = vpop.f32.mrf.mxu1 }
 0x22a   : > { %v671_v13 = vadd.f32 %v5054_v11, %v5034_v49  ;;  %v812_v38 = vadd.f32 %v5073_v56, %v668_v12 }
 0x22b   : > { %v795_v1 = vpop.f32.mrf.mxu0  ;;  %v662_v40 = vpop.f32.mrf.mxu1 }
 0x22c   : > { %v663_v5 = vadd.f32 %v662_v40, %v565_v14  ;;  %v810_v39 = vadd.f32 %v795_v1, %v660_v18  ;;  %v5883_v18 = vld [vmem:[#allocation5 + $0x270] sm:$0xff]  }
 0x22d   : > { %v5074_v24 = vpop.f32.mrf.mxu0 }
 0x22e   : > { %v813_v20 = vadd.f32 %v5074_v24, %v671_v13  ;;  %v5881_v13 = vld [vmem:[#allocation5 + $0x280] sm:$0xff]  }
 0x22f   : > { %v798_v37 = vpop.f32.mrf.mxu0 }
 0x230   : > { %v811_v35 = vadd.f32 %v798_v37, %v663_v5  ;;  %v5885_v5 = vld [vmem:[#allocation5 + $0x268] sm:$0xff]  }
 0x246   : > { %v5093_v15 = vpop.f32.mrf.mxu1 }
 0x247   : > { %v936_v29 = vadd.f32 %v5093_v15, %v812_v38  ;;  %v6908_v38 = vld [vmem:[#allocation5 + $0x2f8] sm:$0xff]  }
 0x248   : > { %v919_v34 = vpop.f32.mrf.mxu1 }
 0x249   : > { %v5113_v55 = vpop.f32.mrf.mxu0  ;;  %v934_v7 = vadd.f32 %v919_v34, %v810_v39  ;;  %v5891_v39 = vld [vmem:[#allocation5 + $0x250] sm:$0xff]  }
 0x24a   : > { %v5094_v36 = vpop.f32.mrf.mxu1  ;;  %v1056_v3 = vadd.f32 %v5113_v55, %v936_v29 }
 0x24b   : > { %v1039_v21 = vpop.f32.mrf.mxu0  ;;  %v937_v59 = vadd.f32 %v5094_v36, %v813_v20  ;;  %v5887_v20 = vld [vmem:[#allocation5 + $0x260] sm:$0xff]  }
 0x24c   : > { %v922_v0 = vpop.f32.mrf.mxu1  ;;  %v1054_v41 = vadd.f32 %v1039_v21, %v934_v7 }
 0x24d   : > { %v5114_v31 = vpop.f32.mrf.mxu0  ;;  %v935_v6 = vadd.f32 %v922_v0, %v811_v35  ;;  %v5893_v35 = vld [vmem:[#allocation5 + $0x248] sm:$0xff]  }
 0x24e   : > { %v1057_v48 = vadd.f32 %v5114_v31, %v937_v59  ;;  %v5874_v31 = vld [vmem:[#allocation5 + $0x2b8] sm:$0xff]  }
 0x24f   : > { %v1042_v44 = vpop.f32.mrf.mxu0  ;;  %5195 = vmatprep.subr.bf16.mxu1 %v5874_v31 }
 0x250   : > { %v1055_v51 = vadd.f32 %v1042_v44, %v935_v6  ;;  %5196 = vmatpush3.bf16.msra.mxu1 %v5874_v31  ;;  %v5877_v44 = vld [vmem:[#allocation5 + $0x2a0] sm:$0xff]  }
 0x266   : > { %v5133_v16 = vpop.f32.mrf.mxu1 }
 0x267   : > { %v1180_v49 = vadd.f32 %v5133_v16, %v1056_v3  ;;  %v5876_v16 = vld [vmem:[#allocation5 + $0x2a8] sm:$0xff]  }
 0x268   : > { %v1163_v54 = vpop.f32.mrf.mxu1 }
 0x269   : > { %v5153_v47 = vpop.f32.mrf.mxu0  ;;  %v1178_v14 = vadd.f32 %v1163_v54, %v1054_v41  ;;  %v5879_v54 = vld [vmem:[#allocation5 + $0x290] sm:$0xff]  }
 0x26a   : > { %v5134_v10 = vpop.f32.mrf.mxu1  ;;  %v1312_v58 = vadd.f32 %v5153_v47, %v1180_v49  ;;  %v5878_v47 = vld [vmem:[#allocation5 + $0x298] sm:$0xff]  }
 0x26b   : > { %v1295_v42 = vpop.f32.mrf.mxu0  ;;  %v1181_v9 = vadd.f32 %v5134_v10, %v1057_v48  ;;  %v5882_v10 = vld [vmem:[#allocation5 + $0x278] sm:$0xff]  }
 0x26c   : > { %v1166_v4 = vpop.f32.mrf.mxu1  ;;  %v1310_v15 = vadd.f32 %v1295_v42, %v1178_v14  ;;  %v5880_v42 = vld [vmem:[#allocation5 + $0x288] sm:$0xff]   ;;  %5215 = vmatprep.subr.bf16.mxu0 %v5882_v10 }
 0x26d   : > { %v5154_v22 = vpop.f32.mrf.mxu0  ;;  %v1179_v11 = vadd.f32 %v1166_v4, %v1055_v51  ;;  %5216 = vmatpush3.bf16.msra.mxu0 %v5882_v10 }
 0x26e   : > { %v1313_v1 = vadd.f32 %v5154_v22, %v1181_v9  ;;  %5217 = vmatprep.subr.bf16.mxu0 %v5883_v18  ;;  %v5889_v22 = vld [vmem:[#allocation5 + $0x258] sm:$0xff]  }
 0x26f   : > { %v1298_v50 = vpop.f32.mrf.mxu0 }
 0x270   : > { %v1311_v37 = vadd.f32 %v1298_v50, %v1179_v11 }
 0x271   : > { %5218 = vmatpush3.bf16.msra.mxu0 %v5883_v18 }
 0x272   : > { %5219 = vmatprep.subr.bf16.mxu0 %v5885_v5 }
 0x275   : > { %5220 = vmatpush3.bf16.msra.mxu0 %v5885_v5 }
 0x276   : > { %5221 = vmatprep.subr.bf16.mxu0 %v5887_v20 }
 0x279   : > { %5222 = vmatpush3.bf16.msra.mxu0 %v5887_v20 }
 0x27a   : > { %5223 = vmatprep.subr.bf16.mxu0 %v5889_v22 }
 0x27d   : > { %5224 = vmatpush3.bf16.msra.mxu0 %v5889_v22 }
 0x27e   : > { %5225 = vmatprep.subr.bf16.mxu0 %v5891_v39 }
 0x281   : > { %5226 = vmatpush3.bf16.msra.mxu0 %v5891_v39 }
 0x282   : > { %5227 = vmatprep.subr.bf16.mxu0 %v5893_v35 }
 0x285   : > { %5228 = vmatpush3.bf16.msra.mxu0 %v5893_v35 }
 0x286   : > { %v5173_v52 = vpop.f32.mrf.mxu1 }
 0x287   : > { %v1444_v34 = vadd.f32 %v5173_v52, %v1312_v58  ;;  %v5875_v52 = vld [vmem:[#allocation5 + $0x2b0] sm:$0xff]  }
 0x288   : > { %v1427_v62 = vpop.f32.mrf.mxu1  ;;  %5197 = vmatprep.subr.bf16.mxu1 %v5875_v52 }
 0x289   : > { %v5193_v56 = vpop.f32.mrf.mxu0  ;;  %v1442_v12 = vadd.f32 %v1427_v62, %v1310_v15  ;;  %5198 = vmatpush3.bf16.msra.mxu1 %v5875_v52 }
 0x28a   : > { %v5174_v24 = vpop.f32.mrf.mxu1  ;;  %v6888_v7 = vadd.f32 %v5193_v56, %v1444_v34  ;;  %5199 = vmatprep.subr.bf16.mxu1 %v5876_v16 }
 0x28b   : > { %v1559_v40 = vpop.f32.mrf.mxu0  ;;  %v1445_v55 = vadd.f32 %v5174_v24, %v1313_v1 }
 0x28c   : > { %v1430_v36 = vpop.f32.mrf.mxu1  ;;  %7753 = vst [vmem:[#allocation19_spill] sm:$0xff] %v6888_v7  ;;  %v6892_v4 = vadd.f32 %v1559_v40, %v1442_v12 }
 0x28d   : > { %v5194_v0 = vpop.f32.mrf.mxu0  ;;  %v1443_v3 = vadd.f32 %v1430_v36, %v1311_v37  ;;  %5200 = vmatpush3.bf16.msra.mxu1 %v5876_v16 }
 0x28e   : > { %v6890_v6 = vadd.f32 %v5194_v0, %v1445_v55  ;;  %7755 = vst [vmem:[#allocation21_spill] sm:$0xff] %v6892_v4  ;;  %5201 = vmatprep.subr.bf16.mxu1 %v5877_v44 }
 0x28f   : > { %v1562_v41 = vpop.f32.mrf.mxu0 }
 0x290   : > { %7754 = vst [vmem:[#allocation20_spill] sm:$0xff] %v6890_v6  ;;  %v6894_v48 = vadd.f32 %v1562_v41, %v1443_v3  ;;  %v5682_v50 = vpack.i.bf16 %v6890_v6, %v6888_v7 }
 0x291   : > { %5202 = vmatpush3.bf16.msra.mxu1 %v5877_v44 }
 0x292   : > { %7756 = vst [vmem:[#allocation22_spill] sm:$0xff] %v6894_v48  ;;  %5683 = vrot.lane.b32.xlu1 %v5682_v50, %s6149_s15  ;;  %v5697_v21 = vpack.i.bf16 %v6894_v48, %v6892_v4  ;;  %5203 = vmatprep.subr.bf16.mxu1 %v5878_v47 }
 0x294   : > { %5698 = vrot.lane.b32.xlu0 %v5697_v21, %s6149_s15 }
 0x295   : > { %5204 = vmatpush3.bf16.msra.mxu1 %v5878_v47 }
 0x296   : > { %5688 = vrot.lane.b32.xlu1 %v5682_v50, %s6150_s17  ;;  %5205 = vmatprep.subr.bf16.mxu1 %v5879_v54 }
 0x298   : > { %5703 = vrot.lane.b32.xlu0 %v5697_v21, %s6150_s17 }
 0x299   : > { %5206 = vmatpush3.bf16.msra.mxu1 %v5879_v54 }
 0x29a   : > { %5693 = vrot.lane.b32.xlu1 %v5682_v50, %s6151_s8  ;;  %5207 = vmatprep.subr.bf16.mxu1 %v5880_v42 }
 0x29c   : > { %5708 = vrot.lane.b32.xlu0 %v5697_v21, %s6151_s8 }
 0x29d   : > { %5208 = vmatpush3.bf16.msra.mxu1 %v5880_v42 }
 0x29e   : > { %5718 = vrot.lane.b32.xlu1 %v5682_v50, %s6152_s18  ;;  %5209 = vmatprep.subr.bf16.mxu1 %v5881_v13 }
 0x2a0   : > { %5713 = vrot.lane.b32.xlu0 %v5697_v21, %s6152_s18 }
 0x2a1   : > { %5210 = vmatpush3.bf16.msra.mxu1 %v5881_v13 }
 0x2a2   : > { %5235 = vmatprep.subr.bf16.mxu1 %v6908_v38 }
 0x304   : > { %v5684_v29 = vpop.permute.xlu1 %5683 }
 0x305   : > { %v5686_v59 = vunpack.i.h.bf16 %v5684_v29  ;;  %v5685_v51 = vunpack.i.l.bf16 %v5684_v29 }
 0x306   : > { %v5699_v49 = vpop.permute.xlu0 %5698 }
 0x307   : > { %v1593_v9 = vmax.f32 %v6890_v6, %v5686_v59  ;;  %v1592_v62 = vmax.f32 %v6888_v7, %v5685_v51  ;;  %v5701_v56 = vunpack.i.h.bf16 %v5699_v49  ;;  %v5700_v14 = vunpack.i.l.bf16 %v5699_v49 }
 0x308   : > { %v5689_v58 = vpop.permute.xlu1 %5688 }
 0x309   : > { %v1591_v11 = vmax.f32 %v6894_v48, %v5701_v56  ;;  %v1590_v1 = vmax.f32 %v6892_v4, %v5700_v14  ;;  %v5691_v24 = vunpack.i.h.bf16 %v5689_v58  ;;  %v5690_v40 = vunpack.i.l.bf16 %v5689_v58 }
 0x30a   : > { %v1596_v15 = vsel %vm7757_vm14, %v6888_v7, %v1592_v62  ;;  %v1597_v37 = vsel %vm7758_vm0, %v6890_v6, %v1593_v9  ;;  %v5704_v34 = vpop.permute.xlu0 %5703  ;;  %vm7763_vm14 = vmmov %vm7761_vm4 }
 0x30b   : > { %v1608_v55 = vmax.f32 %v1596_v15, %v5690_v40  ;;  %v1609_v36 = vmax.f32 %v1597_v37, %v5691_v24  ;;  %v5706_v31 = vunpack.i.h.bf16 %v5704_v34  ;;  %v5705_v0 = vunpack.i.l.bf16 %v5704_v34  ;;  %vm7764_vm0 = vmmov %vm7761_vm4 }
 0x30c   : > { %v1594_v12 = vsel %vm7759_vm6, %v6892_v4, %v1590_v1  ;;  %v1595_v3 = vsel %vm7760_vm10, %v6894_v48, %v1591_v11  ;;  %v5694_v41 = vpop.permute.xlu1 %5693  ;;  %vm7765_vm6 = vcmp.ge.s32.totalorder %v6323_v25, 120 }
 0x30d   : > { %v1606_v50 = vmax.f32 %v1594_v12, %v5705_v0  ;;  %v1607_v52 = vmax.f32 %v1595_v3, %v5706_v31  ;;  %v5696_v21 = vunpack.i.h.bf16 %v5694_v41  ;;  %v5695_v16 = vunpack.i.l.bf16 %v5694_v41  ;;  %vm7766_vm10 = vmmov %vm7765_vm6 }
 0x30e   : > { %v1612_v44 = vsel %vm7761_vm4, %v1596_v15, %v1608_v55  ;;  %v1613_v47 = vsel %vm7762_vm15, %v1597_v37, %v1609_v36  ;;  %v5709_v54 = vpop.permute.xlu0 %5708  ;;  %vm7767_vm4 = vmmov %vm7765_vm6 }
 0x30f   : > { %v1624_v42 = vmax.f32 %v1612_v44, %v5695_v16  ;;  %v1625_v13 = vmax.f32 %v1613_v47, %v5696_v21  ;;  %v5711_v10 = vunpack.i.h.bf16 %v5709_v54  ;;  %v5710_v18 = vunpack.i.l.bf16 %v5709_v54  ;;  %vm7768_vm15 = vmmov %vm7767_vm4 }
 0x310   : > { %v1610_v5 = vsel %vm7763_vm14, %v1594_v12, %v1606_v50  ;;  %v1611_v20 = vsel %vm7764_vm0, %v1595_v3, %v1607_v52  ;;  %v5719_v22 = vpop.permute.xlu1 %5718  ;;  %vm7769_vm14 = vcmp.ge.s32.totalorder %v6323_v25, 112 }
 0x311   : > { %v1622_v39 = vmax.f32 %v1610_v5, %v5710_v18  ;;  %v1623_v35 = vmax.f32 %v1611_v20, %v5711_v10  ;;  %v5721_v29 = vunpack.i.h.bf16 %v5719_v22  ;;  %v5720_v59 = vunpack.i.l.bf16 %v5719_v22  ;;  %vm7770_vm0 = vmmov %vm7769_vm14 }
 0x312   : > { %v1628_v51 = vsel %vm7765_vm6, %v1612_v44, %v1624_v42  ;;  %v1629_v49 = vsel %vm7766_vm10, %v1613_v47, %v1625_v13  ;;  %v5714_v9 = vpop.permute.xlu0 %5713  ;;  %vm7771_vm6 = vcmp.lt.s32.totalorder %v6321_v23, 2  ;;  %vm7772_vm10 = vmmov %vm7770_vm0 }
 0x313   : > { %v1640_v62 = vmax.f32 %v1628_v51, %v5720_v59  ;;  %v1641_v56 = vmax.f32 %v1629_v49, %v5721_v29  ;;  %v5716_v14 = vunpack.i.h.bf16 %v5714_v9  ;;  %v5715_v58 = vunpack.i.l.bf16 %v5714_v9 }
 0x314   : > { %v1626_v11 = vsel %vm7767_vm4, %v1610_v5, %v1622_v39  ;;  %v1627_v1 = vsel %vm7768_vm15, %v1611_v20, %v1623_v35  ;;  %vm7773_vm4 = vmmov %vm7770_vm0  ;;  %vm7774_vm15 = vcmp.lt.s32.totalorder %v6321_v23, 1 }
 0x315   : > { %v1644_v24 = vsel %vm7769_vm14, %v1628_v51, %v1640_v62  ;;  %v1645_v40 = vsel %vm7770_vm0, %v1629_v49, %v1641_v56  ;;  %v1638_v15 = vmax.f32 %v1626_v11, %v5715_v58  ;;  %v1639_v37 = vmax.f32 %v1627_v1, %v5716_v14  ;;  %vm7775_vm14 = vmmov %vm7771_vm6 }
 0x316   : > { %v1648_v34 = vrot.slane %v1644_v24, 6  ;;  %v1649_v55 = vrot.slane %v1645_v40, 6  ;;  %v1664_v36 = vrot.slane %v1644_v24, 7  ;;  %v1665_v31 = vrot.slane %v1645_v40, 7  ;;  %vm7776_vm0 = vmmov %vm7771_vm6 }
 0x317   : > { %v1680_v0 = vrot.slane %v1644_v24, 1  ;;  %v1681_v12 = vrot.slane %v1645_v40, 1  ;;  %v1696_v41 = vrot.slane %v1644_v24, 2  ;;  %v1642_v50 = vsel %vm7772_vm10, %v1626_v11, %v1638_v15  ;;  %vm7778_vm10 = vmmov %vm7774_vm15 }
 0x318   : > { %v1650_v3 = vsel %vm7771_vm6, %v1648_v34, %v1649_v55  ;;  %v1643_v52 = vsel %vm7773_vm4, %v1627_v1, %v1639_v37  ;;  %v1697_v16 = vrot.slane %v1645_v40, 2  ;;  %v1646_v44 = vrot.slane %v1642_v50, 6  ;;  %vm7777_vm6 = vmmov %vm7776_vm0 }
 0x319   : > { %v1657_v21 = vmax.f32 %v1645_v40, %v1650_v3  ;;  %v1647_v47 = vrot.slane %v1643_v52, 6  ;;  %v1666_v54 = vsel %vm7774_vm15, %v1664_v36, %v1665_v31  ;;  %v1662_v42 = vrot.slane %v1642_v50, 7  ;;  %vm7779_vm4 = vmmov %vm7778_vm10 }
 0x31a   : > { %v1663_v13 = vrot.slane %v1643_v52, 7  ;;  %v1679_v10 = vrot.slane %v1643_v52, 1  ;;  %v1653_v20 = vsel %vm7777_vm6, %v1649_v55, %v1646_v44  ;;  %v1678_v22 = vrot.slane %v1642_v50, 1  ;;  %vm7780_vm15 = vmmov %vm7779_vm4 }
 0x31b   : > { %v1651_v18 = vsel %vm7775_vm14, %v1647_v47, %v1648_v34  ;;  %v1652_v5 = vsel %vm7776_vm0, %v1646_v44, %v1647_v47  ;;  %v1673_v39 = vmax.f32 %v1657_v21, %v1666_v54  ;;  %v1654_v35 = vmax.f32 %v1642_v50, %v1653_v20  ;;  %v5895_v47 = vld [vmem:[#allocation5 + $0x240] sm:$0xff]  }
 0x31c   : > { %v1655_v29 = vmax.f32 %v1643_v52, %v1652_v5  ;;  %v1656_v59 = vmax.f32 %v1644_v24, %v1651_v18  ;;  %v1667_v51 = vsel %vm7778_vm10, %v1663_v13, %v1664_v36  ;;  %v1668_v49 = vsel %vm7779_vm4, %v1662_v42, %v1663_v13  ;;  %5229 = vmatprep.subr.bf16.mxu0 %v5895_v47 }
 0x31d   : > { %v1669_v9 = vsel %vm7780_vm15, %v1665_v31, %v1662_v42  ;;  %vm7781_vm14 = vcmp.lt.s32.totalorder %v6321_v23, 7  ;;  %v1658_v56 = vsel %vm6375_vm7, %v1642_v50, %v1654_v35  ;;  %v1694_v11 = vrot.slane %v1642_v50, 2  ;;  %5230 = vmatpush3.bf16.msra.mxu0 %v5895_v47  ;;  %v5896_v47 = vld [vmem:[#allocation5 + $0x2c8] sm:$0xff]  }
 0x31e   : > { %v1683_v62 = vsel %vm7781_vm14, %v1679_v10, %v1680_v0  ;;  %v1660_v14 = vsel %vm6381_vm8, %v1644_v24, %v1656_v59  ;;  %v1671_v58 = vmax.f32 %v1655_v29, %v1668_v49  ;;  %v1670_v1 = vmax.f32 %v1658_v56, %v1669_v9  ;;  %vm7782_vm0 = vmmov %vm7781_vm14 }
 0x31f   : > { %v1672_v40 = vmax.f32 %v1660_v14, %v1667_v51  ;;  %v1695_v15 = vrot.slane %v1643_v52, 2  ;;  %v1685_v37 = vsel %vm7782_vm0, %v1681_v12, %v1678_v22  ;;  %vm7783_vm6 = vmmov %vm7782_vm0  ;;  %vm7785_vm4 = vnez %v7669_v45  ;;  %v7015_v51 = vld [vmem:[#allocation5 + $0x338] sm:$0xff]  }
 0x320   : > { %v1682_v34 = vsel %vm7783_vm6, %v1680_v0, %v1681_v12  ;;  %vm7784_vm10 = vmmov %vm7782_vm0  ;;  %v1689_v36 = vmax.f32 %v1673_v39, %v1685_v37  ;;  %v1687_v31 = vmax.f32 %v1671_v58, %v1683_v62  ;;  %v1674_v3 = vsel %vm7785_vm4, %v1658_v56, %v1670_v1  ;;  %5255 = vmatprep.subr.bf16.mxu0 %v7015_v51 }
 0x321   : > { %v1684_v55 = vsel %vm7784_vm10, %v1678_v22, %v1679_v10  ;;  %vm7786_vm15 = vnez %v7671_v46  ;;  %vm7787_vm14 = vcmp.lt.s32.totalorder %v6321_v23, 6  ;;  %vm7792_vm10 = vnez %v7679_v61 }
 0x322   : > { %v1676_v24 = vsel %vm7786_vm15, %v1660_v14, %v1672_v40  ;;  %v1701_v50 = vsel %vm7787_vm14, %v1697_v16, %v1694_v11  ;;  %vm7788_vm8 = vmmov %vm7787_vm14  ;;  %v1693_v0 = vsel %vm6420_vm12, %v1673_v39, %v1689_v36  ;;  %v1686_v12 = vmax.f32 %v1674_v3, %v1684_v55  ;;  %v5886_v36 = vld [vmem:[#allocation5 + $0x2f0] sm:$0xff]  }
 0x323   : > { %v1699_v52 = vsel %vm7788_vm8, %v1695_v15, %v1696_v41  ;;  %v1688_v21 = vmax.f32 %v1676_v24, %v1682_v34  ;;  %v1691_v44 = vsel %vm6426_vm13, %v1671_v58, %v1687_v31  ;;  %vm7789_vm0 = vmmov %vm7788_vm8  ;;  %v1705_v42 = vmax.f32 %v1693_v0, %v1701_v50 }
 0x324   : > { %v1698_v54 = vsel %vm7789_vm0, %v1696_v41, %v1697_v16  ;;  %vm7790_vm6 = vmmov %vm7789_vm0  ;;  %v1703_v10 = vmax.f32 %v1691_v44, %v1699_v52  ;;  %vm7791_vm8 = vnez %v7677_v60  ;;  %vm7793_vm14 = vcmp.lt.s32.totalorder %v6321_v23, 1 }
 0x325   : > { %v1700_v13 = vsel %vm7790_vm6, %v1694_v11, %v1695_v15  ;;  %v6995_v18 = vmax.f32 %v1688_v21, %v1698_v54  ;;  %v7001_v20 = vsel %vm7791_vm8, %v1693_v0, %v1705_v42  ;;  %vm7794_vm0 = vmmov %vm7793_vm14  ;;  %vm7797_vm8 = vcmp.lt.s32.totalorder %v6321_v23, 7  ;;  %v5888_v21 = vld [vmem:[#allocation5 + $0x2e8] sm:$0xff]   ;;  %v5890_v0 = vld [vmem:[#allocation5 + $0x2e0] sm:$0xff]  }
 0x326   : > { %v6997_v5 = vmax.f32 %v1686_v12, %v1700_v13  ;;  %v7005_v22 = vsel %vm7792_vm10, %v1691_v44, %v1703_v10  ;;  %v2617_v16 = vrot.slane %v7001_v20, 1  ;;  %v1752_v59 = vrot.slane %v7001_v20, 7  ;;  %vm7795_vm6 = vmmov %vm7794_vm0  ;;  %v5892_v12 = vld [vmem:[#allocation5 + $0x2d8] sm:$0xff]   ;;  %v5894_v44 = vld [vmem:[#allocation5 + $0x2d0] sm:$0xff]  }
 0x327   : > { %v5727_v41 = vpack.i.bf16 %v6995_v18, %v7001_v20  ;;  %v1750_v29 = vrot.slane %v7005_v22, 7  ;;  %v1751_v49 = vrot.slane %v6995_v18, 7  ;;  %v2615_v11 = vrot.slane %v7005_v22, 1  ;;  %vm7796_vm10 = vmmov %vm7794_vm0  ;;  %v5897_v54 = vld [vmem:[#allocation5 + $0x2c0] sm:$0xff]  }
 0x328   : > { %v5722_v39 = vpack.i.bf16 %v7005_v22, %v6997_v5  ;;  %v1749_v35 = vrot.slane %v6997_v5, 7  ;;  %v2238_v9 = vpack.c.bf16 %v7005_v22, %v6997_v5  ;;  %v2614_v56 = vrot.slane %v6997_v5, 1  ;;  %v5910_v5 = vld [vmem:[#allocation5 + $0x350] sm:$0xff]   ;;  %v5909_v22 = vld [vmem:[#allocation5 + $0x308] sm:$0xff]  }
 0x329   : > { %5728 = vrot.lane.b32.xlu1 %v5727_v41, %s6150_s17  ;;  %v2616_v1 = vrot.slane %v6995_v18, 1  ;;  %v1753_v15 = vsel %vm7795_vm6, %v1751_v49, %v1752_v59  ;;  %v1754_v37 = vsel %vm7796_vm10, %v1750_v29, %v1751_v49  ;;  %vm7801_vm10 = vnez %v7681_v33  ;;  %v5962_v33 = vld [vmem:[#allocation5 + $0x520] sm:$0xff]  }
 0x32a   : > { %5723 = vrot.lane.b32.xlu0 %v5722_v39, %s6150_s17  ;;  %v1755_v14 = vsel %vm7793_vm14, %v1749_v35, %v1750_v29  ;;  %v1756_v58 = vsel %vm7794_vm0, %v1752_v59, %v1749_v35  ;;  %v7038_v34 = vsel %vm7797_vm8, %v2617_v16, %v2614_v56  ;;  %v4456_v55 = vpack.c.bf16 %v1753_v15, %v1754_v37  ;;  %vm7798_vm14 = vmmov %vm7797_vm8 }
 0x32b   : > { %v4452_v40 = vpack.c.bf16 %v1755_v14, %v1756_v58  ;;  %v7042_v31 = vsel %vm7798_vm14, %v2615_v11, %v2616_v1  ;;  %vm7799_vm0 = vmmov %vm7797_vm8  ;;  %vm7802_vm8 = vnez %v7683_v8 }
 0x32c   : > { %v7046_v3 = vsel %vm7799_vm0, %v2614_v56, %v2615_v11  ;;  %vm7800_vm13 = vmmov %vm7799_vm0 }
 0x32d   : > { %v7050_v24 = vsel %vm7800_vm13, %v2616_v1, %v2617_v16  ;;  %5211 = vmatprep.mubr.msk.bf16.mxu1 %vm7801_vm10, %v4452_v40  ;;  %5738 = vrot.lane.b32.xlu1 %v5727_v41, %s6151_s8  ;;  %vm7803_vm13 = vmmov %vm7795_vm6 }
 0x32e   : > { %5733 = vrot.lane.b32.xlu0 %v5722_v39, %s6151_s8  ;;  %5212 = vmatmul.mubr.msk.bf16.vlgmr.msra.gmra.mxu1 %vm7802_vm8, %v4456_v55  ;;  %vm7804_vm14 = vmmov %vm7795_vm6 }
 0x32f   : > { %5236 = vmatpush3.bf16.msra.mxu1 %v6908_v38  ;;  %v5900_v38 = vld [vmem:[#allocation5 + $0x378] sm:$0xff]   ;;  %vm7806_vm8 = vmmov %vm7795_vm6 }
 0x330   : > { %5237 = vmatprep.subr.bf16.mxu1 %v5886_v36 }
 0x333   : > { %5238 = vmatpush3.bf16.msra.mxu1 %v5886_v36 }
 0x334   : > { %5239 = vmatprep.subr.bf16.mxu1 %v5888_v21 }
 0x337   : > { %5240 = vmatpush3.bf16.msra.mxu1 %v5888_v21 }
 0x338   : > { %5241 = vmatprep.subr.bf16.mxu1 %v5890_v0 }
 0x33b   : > { %5242 = vmatpush3.bf16.msra.mxu1 %v5890_v0 }
 0x33c   : > { %5243 = vmatprep.subr.bf16.mxu1 %v5892_v12 }
 0x33f   : > { %5244 = vmatpush3.bf16.msra.mxu1 %v5892_v12 }
 0x340   : > { %5245 = vmatprep.subr.bf16.mxu1 %v5894_v44 }
 0x343   : > { %5246 = vmatpush3.bf16.msra.mxu1 %v5894_v44 }
 0x344   : > { %5247 = vmatprep.subr.bf16.mxu1 %v5896_v47 }
 0x347   : > { %5248 = vmatpush3.bf16.msra.mxu1 %v5896_v47 }
 0x348   : > { %5249 = vmatprep.subr.bf16.mxu1 %v5897_v54 }
 0x34b   : > { %5250 = vmatpush3.bf16.msra.mxu1 %v5897_v54 }
 0x34c   : > { %5275 = vmatprep.subr.bf16.mxu1 %v5900_v38 }
 0x39b   : > { %v5729_v42 = vpop.permute.xlu1 %5728 }
 0x39c   : > { %v5724_v13 = vpop.permute.xlu0 %5723  ;;  %v7063_v10 = vunpack.i.h.bf16 %v5729_v42  ;;  %v7065_v41 = vunpack.i.l.bf16 %v5729_v42 }
 0x39d   : > { %v7067_v16 = vunpack.i.h.bf16 %v5724_v13  ;;  %v7069_v39 = vunpack.i.l.bf16 %v5724_v13 }
 0x39e   : > { %v1720_v35 = vrot.slane %v7063_v10, 7  ;;  %v1721_v29 = vrot.slane %v7065_v41, 7 }
 0x39f   : > { %v1719_v59 = vrot.slane %v7067_v16, 7  ;;  %v5739_v49 = vpop.permute.xlu1 %5738  ;;  %v1718_v56 = vrot.slane %v7069_v39, 7 }
 0x3a0   : > { %v7075_v14 = vunpack.i.h.bf16 %v5739_v49  ;;  %v5734_v58 = vpop.permute.xlu0 %5733  ;;  %v7077_v11 = vunpack.i.l.bf16 %v5739_v49  ;;  %v1722_v40 = vsel %vm7803_vm13, %v1720_v35, %v1721_v29  ;;  %vm7805_vm13 = vmmov %vm7795_vm6 }
 0x3a1   : > { %v7079_v1 = vunpack.i.h.bf16 %v5734_v58  ;;  %v1723_v15 = vsel %vm7795_vm6, %v1719_v59, %v1720_v35  ;;  %v7093_v47 = vunpack.i.l.bf16 %v5734_v58  ;;  %v1724_v54 = vsel %vm7804_vm14, %v1718_v56, %v1719_v59  ;;  %vm7807_vm14 = vmmov %vm7799_vm0 }
 0x3a2   : > { %v1984_v37 = vrot.slane %v7075_v14, 7  ;;  %v2748_v55 = vrot.slane %v7075_v14, 1  ;;  %v1985_v36 = vrot.slane %v7077_v11, 7  ;;  %v2749_v0 = vrot.slane %v7077_v11, 1 }
 0x3a3   : > { %v1983_v12 = vrot.slane %v7079_v1, 7  ;;  %v2747_v44 = vrot.slane %v7079_v1, 1  ;;  %v4474_v42 = vpack.c.bf16 %v1722_v40, %v1723_v15  ;;  %v1725_v35 = vsel %vm7805_vm13, %v1721_v29, %v1718_v56  ;;  %vm7808_vm13 = vmmov %vm7795_vm6 }
 0x3a4   : > { %v7099_v13 = vsel %vm7799_vm0, %v2748_v55, %v2749_v0  ;;  %v1986_v49 = vsel %vm7795_vm6, %v1984_v37, %v1985_v36  ;;  %v1982_v58 = vrot.slane %v7093_v47, 7  ;;  %v2746_v50 = vrot.slane %v7093_v47, 1 }
 0x3a5   : > { %v1987_v52 = vsel %vm7806_vm8, %v1983_v12, %v1984_v37  ;;  %v4469_v21 = vpack.c.bf16 %v1724_v54, %v1725_v35  ;;  %v7111_v59 = vsel %vm7807_vm14, %v2747_v44, %v2748_v55  ;;  %v4505_v40 = vpack.c.bf16 %v7067_v16, %v7069_v39  ;;  %vm7809_vm8 = vmmov %vm7795_vm6  ;;  %v5899_v37 = vld [vmem:[#allocation5 + $0x330] sm:$0xff]  }
 0x3a6   : > { %v7117_v29 = vsel %vm7799_vm0, %v2749_v0, %v2746_v50  ;;  %v1988_v56 = vsel %vm7808_vm13, %v1982_v58, %v1983_v12  ;;  %v1989_v15 = vsel %vm7809_vm8, %v1985_v36, %v1982_v58  ;;  %v4492_v62 = vpack.c.bf16 %v1986_v49, %v1987_v52  ;;  %vm7810_vm6 = vmmov %vm7799_vm0  ;;  %v5902_v52 = vld [vmem:[#allocation5 + $0x370] sm:$0xff]   ;;  %v5901_v36 = vld [vmem:[#allocation5 + $0x328] sm:$0xff]  }
 0x3a7   : > { %v4588_v54 = vpack.c.bf16 %v7117_v29, %v7099_v13  ;;  %5231 = vmatprep.mubr.msk.bf16.mxu0 %vm6622_vm1, %v4469_v21  ;;  %v4487_v55 = vpack.c.bf16 %v1988_v56, %v1989_v15  ;;  %v7129_v35 = vsel %vm7810_vm6, %v2746_v50, %v2747_v44  ;;  %vm7811_vm14 = vnez %v7693_v30  ;;  %v5903_v50 = vld [vmem:[#allocation5 + $0x320] sm:$0xff]   ;;  %v5905_v12 = vld [vmem:[#allocation5 + $0x318] sm:$0xff]   ;;  %v5976_v30 = vld [vmem:[#allocation5 + $0x5a8] sm:$0xff]  }
 0x3a8   : > { %5232 = vmatmul.mubr.msk.bf16.vlgmr.msra.gmra.mxu0 %vm7811_vm14, %v4474_v42  ;;  %v4583_v0 = vpack.c.bf16 %v7111_v59, %v7129_v35  ;;  %vm7812_vm0 = vnez %v7711_v53  ;;  %vm7813_vm13 = vnez %v7714_v17  ;;  %vm7814_vm8 = vnez %v7716_v19  ;;  %v5906_v21 = vld [vmem:[#allocation5 + $0x360] sm:$0xff]   ;;  %v5914_v49 = vld [vmem:[#allocation5 + $0x3b8] sm:$0xff]   ;;  %v5939_v59 = vld [vmem:[#allocation5 + $0x410] sm:$0xff]  }
 0x3a9   : > { %5256 = vmatpush3.bf16.msra.mxu0 %v7015_v51  ;;  %5271 = vmatprep.mubr.msk.bf16.mxu0 %vm7812_vm0, %v4505_v40  ;;  %v5904_v51 = vld [vmem:[#allocation5 + $0x368] sm:$0xff]   ;;  %v5911_v44 = vld [vmem:[#allocation5 + $0x300] sm:$0xff]   ;;  %v2484_v58 = vrot.slane %v7063_v10, 1  ;;  %v2483_v40 = vrot.slane %v7067_v16, 1  ;;  %v2482_v56 = vrot.slane %v7069_v39, 1  ;;  %v4510_v15 = vpack.c.bf16 %v7065_v41, %v7063_v10  ;;  %v5934_v39 = vld [vmem:[#allocation5 + $0x470] sm:$0xff]  }
 0x3aa   : > { %5251 = vmatprep.mubr.msk.bf16.mxu1 %vm7813_vm13, %v4487_v55  ;;  %5257 = vmatprep.subr.bf16.mxu0 %v5899_v37  ;;  %v5913_v42 = vld [vmem:[#allocation5 + $0x340] sm:$0xff]   ;;  %v5916_v55 = vld [vmem:[#allocation5 + $0x3f8] sm:$0xff]   ;;  %v7820_v10 = vpack.c.bf16 %v7042_v31, %v7046_v3  ;;  %v5936_v31 = vld [vmem:[#allocation5 + $0x468] sm:$0xff]  }
 0x3ab   : > { %5252 = vmatmul.mubr.msk.bf16.vlgmr.msra.gmra.mxu1 %vm7814_vm8, %v4492_v62  ;;  %v5908_v62 = vld [vmem:[#allocation5 + $0x358] sm:$0xff]   ;;  %vm7815_vm8 = vmmov %vm7810_vm6  ;;  %v5935_v3 = vld [vmem:[#allocation5 + $0x420] sm:$0xff]  }
 0x3ac   : > { %5276 = vmatpush3.bf16.msra.mxu1 %v5900_v38  ;;  %5291 = vmatprep.mubr.bf16.mxu1 %v2238_v9  ;;  %v5907_v38 = vld [vmem:[#allocation5 + $0x310] sm:$0xff]   ;;  %v5912_v9 = vld [vmem:[#allocation5 + $0x348] sm:$0xff]   ;;  %v2488_v16 = vsel %vm7815_vm8, %v2482_v56, %v2483_v40  ;;  %vm7817_vm8 = vnez %v7726_v63  ;;  %v5978_v17 = vld [vmem:[#allocation5 + $0x5a0] sm:$0xff]  }
 0x3ad   : > { %5258 = vmatpush3.bf16.msra.mxu0 %v5899_v37  ;;  %5277 = vmatprep.subr.bf16.mxu1 %v5902_v52  ;;  %v5915_v37 = vld [vmem:[#allocation5 + $0x3b0] sm:$0xff]   ;;  %v5992_v53 = vld [vmem:[#allocation5 + $0x628] sm:$0xff]  }
 0x3ae   : > { %5259 = vmatprep.subr.bf16.mxu0 %v5901_v36  ;;  %v5942_v35 = vld [vmem:[#allocation5 + $0x450] sm:$0xff]  }
 0x3b0   : > { %5278 = vmatpush3.bf16.msra.mxu1 %v5902_v52  ;;  %v4531_v52 = vpack.c.bf16 %v7079_v1, %v7093_v47  ;;  %v5917_v47 = vld [vmem:[#allocation5 + $0x3a8] sm:$0xff]  }
 0x3b1   : > { %5260 = vmatpush3.bf16.msra.mxu0 %v5901_v36  ;;  %5279 = vmatprep.subr.bf16.mxu1 %v5904_v51  ;;  %v2487_v36 = vsel %vm7810_vm6, %v2483_v40, %v2484_v58  ;;  %v5930_v40 = vld [vmem:[#allocation5 + $0x438] sm:$0xff]  }
 0x3b2   : > { %5261 = vmatprep.subr.bf16.mxu0 %v5903_v50  ;;  %v4549_v1 = vpack.c.bf16 %v2487_v36, %v2488_v16  ;;  %v5937_v16 = vld [vmem:[#allocation5 + $0x418] sm:$0xff]  }
 0x3b4   : > { %5280 = vmatpush3.bf16.msra.mxu1 %v5904_v51  ;;  %v5918_v51 = vld [vmem:[#allocation5 + $0x3f0] sm:$0xff]  }
 0x3b5   : > { %5262 = vmatpush3.bf16.msra.mxu0 %v5903_v50  ;;  %5281 = vmatprep.subr.bf16.mxu1 %v5906_v21  ;;  %v7816_v50 = vpack.c.bf16 %v7001_v20, %v6995_v18  ;;  %v5924_v18 = vld [vmem:[#allocation5 + $0x3d8] sm:$0xff]   ;;  %v5923_v20 = vld [vmem:[#allocation5 + $0x390] sm:$0xff]  }
 0x3b6   : > { %5263 = vmatprep.subr.bf16.mxu0 %v5905_v12 }
 0x3b8   : > { %5282 = vmatpush3.bf16.msra.mxu1 %v5906_v21  ;;  %v5920_v21 = vld [vmem:[#allocation5 + $0x3e8] sm:$0xff]  }
 0x3b9   : > { %5264 = vmatpush3.bf16.msra.mxu0 %v5905_v12  ;;  %5283 = vmatprep.subr.bf16.mxu1 %v5908_v62  ;;  %v5919_v12 = vld [vmem:[#allocation5 + $0x3a0] sm:$0xff]  }
 0x3ba   : > { %5265 = vmatprep.subr.bf16.mxu0 %v5907_v38 }
 0x3bc   : > { %5284 = vmatpush3.bf16.msra.mxu1 %v5908_v62  ;;  %v5922_v62 = vld [vmem:[#allocation5 + $0x3e0] sm:$0xff]  }
 0x3bd   : > { %5266 = vmatpush3.bf16.msra.mxu0 %v5907_v38  ;;  %5285 = vmatprep.subr.bf16.mxu1 %v5910_v5  ;;  %v5921_v38 = vld [vmem:[#allocation5 + $0x398] sm:$0xff]  }
 0x3be   : > { %5267 = vmatprep.subr.bf16.mxu0 %v5909_v22 }
 0x3c0   : > { %5286 = vmatpush3.bf16.msra.mxu1 %v5910_v5  ;;  %v5926_v5 = vld [vmem:[#allocation5 + $0x3d0] sm:$0xff]  }
 0x3c1   : > { %5268 = vmatpush3.bf16.msra.mxu0 %v5909_v22  ;;  %5287 = vmatprep.subr.bf16.mxu1 %v5912_v9  ;;  %v5925_v22 = vld [vmem:[#allocation5 + $0x388] sm:$0xff]  }
 0x3c2   : > { %5269 = vmatprep.subr.bf16.mxu0 %v5911_v44 }
 0x3c4   : > { %5288 = vmatpush3.bf16.msra.mxu1 %v5912_v9  ;;  %v5928_v9 = vld [vmem:[#allocation5 + $0x3c8] sm:$0xff]  }
 0x3c5   : > { %5270 = vmatpush3.bf16.msra.mxu0 %v5911_v44  ;;  %5289 = vmatprep.subr.bf16.mxu1 %v5913_v42  ;;  %v5927_v44 = vld [vmem:[#allocation5 + $0x380] sm:$0xff]  }
 0x3c6   : > { %5295 = vmatprep.subr.bf16.mxu0 %v5914_v49 }
 0x3c8   : > { %5272 = vmatmul.mubr.msk.bf16.vlgmr.msra.gmra.mxu0 %vm7812_vm0, %v4510_v15  ;;  %5290 = vmatpush3.bf16.msra.mxu1 %v5913_v42  ;;  %v5929_v42 = vld [vmem:[#allocation5 + $0x3c0] sm:$0xff]  }
 0x3c9   : > { %5296 = vmatpush3.bf16.msra.mxu0 %v5914_v49  ;;  %5311 = vmatprep.mubr.msk.bf16.mxu0 %vm6763_vm9, %v4531_v52  ;;  %v2485_v49 = vrot.slane %v7065_v41, 1  ;;  %v5932_v52 = vld [vmem:[#allocation5 + $0x478] sm:$0xff]   ;;  %v7819_v41 = vpack.c.bf16 %v7077_v11, %v7075_v14  ;;  %v7822_v14 = vld [vmem:[#allocation16_spill] sm:$0xff]  ;;  %v5938_v11 = vld [vmem:[#allocation5 + $0x460] sm:$0xff]  }
 0x3ca   : > { %5297 = vmatprep.subr.bf16.mxu0 %v5915_v37  ;;  %5315 = vmatprep.subr.bf16.mxu1 %v5916_v55 }
 0x3cb   : > { %5292 = vmatmul.mubr.bf16.vlgmr.msra.gmra.mxu1 %v7816_v50  ;;  %v2486_v15 = vsel %vm7810_vm6, %v2484_v58, %v2485_v49  ;;  %v5933_v58 = vld [vmem:[#allocation5 + $0x428] sm:$0xff]   ;;  %v5945_v50 = vld [vmem:[#allocation5 + $0x440] sm:$0xff]  }
 0x3cc   : > { %5316 = vmatpush3.bf16.msra.mxu1 %v5916_v55  ;;  %5331 = vmatprep.mubr.msk.bf16.mxu1 %vm7817_vm8, %v4549_v1  ;;  %vm7818_vm8 = vmmov %vm7810_vm6  ;;  %v5931_v55 = vld [vmem:[#allocation5 + $0x430] sm:$0xff]   ;;  %v5944_v1 = vld [vmem:[#allocation5 + $0x448] sm:$0xff]   ;;  %vm7827_vm6 = vcmp.lt.s32.totalorder %v6323_v25, 16 }
 0x3cd   : > { %5298 = vmatpush3.bf16.msra.mxu0 %v5915_v37  ;;  %5317 = vmatprep.subr.bf16.mxu1 %v5918_v51  ;;  %v2489_v37 = vsel %vm7818_vm8, %v2485_v49, %v2482_v56  ;;  %vm7823_vm8 = vnez %v7822_v14 }
 0x3ce   : > { %5299 = vmatprep.subr.bf16.mxu0 %v5917_v47  ;;  %v4554_v36 = vpack.c.bf16 %v2489_v37, %v2486_v15 }
 0x3d0   : > { %5318 = vmatpush3.bf16.msra.mxu1 %v5918_v51  ;;  %v5940_v51 = vld [vmem:[#allocation5 + $0x458] sm:$0xff]  }
 0x3d1   : > { %5300 = vmatpush3.bf16.msra.mxu0 %v5917_v47  ;;  %5319 = vmatprep.subr.bf16.mxu1 %v5920_v21  ;;  %v5943_v47 = vld [vmem:[#allocation5 + $0x400] sm:$0xff]  }
 0x3d2   : > { %5301 = vmatprep.subr.bf16.mxu0 %v5919_v12 }
 0x3d4   : > { %5320 = vmatpush3.bf16.msra.mxu1 %v5920_v21  ;;  %v7824_v21 = vpack.c.bf16 %v7038_v34, %v7050_v24 }
 0x3d5   : > { %5302 = vmatpush3.bf16.msra.mxu0 %v5919_v12  ;;  %5321 = vmatprep.subr.bf16.mxu1 %v5922_v62 }
 0x3d6   : > { %5303 = vmatprep.subr.bf16.mxu0 %v5921_v38 }
 0x3d8   : > { %5322 = vmatpush3.bf16.msra.mxu1 %v5922_v62 }
 0x3d9   : > { %5304 = vmatpush3.bf16.msra.mxu0 %v5921_v38  ;;  %5323 = vmatprep.subr.bf16.mxu1 %v5924_v18 }
 0x3da   : > { %5305 = vmatprep.subr.bf16.mxu0 %v5923_v20 }
 0x3dc   : > { %5324 = vmatpush3.bf16.msra.mxu1 %v5924_v18 }
 0x3dd   : > { %5306 = vmatpush3.bf16.msra.mxu0 %v5923_v20  ;;  %5325 = vmatprep.subr.bf16.mxu1 %v5926_v5 }
 0x3de   : > { %5307 = vmatprep.subr.bf16.mxu0 %v5925_v22 }
 0x3e0   : > { %5326 = vmatpush3.bf16.msra.mxu1 %v5926_v5 }
 0x3e1   : > { %5308 = vmatpush3.bf16.msra.mxu0 %v5925_v22  ;;  %5327 = vmatprep.subr.bf16.mxu1 %v5928_v9 }
 0x3e2   : > { %5309 = vmatprep.subr.bf16.mxu0 %v5927_v44 }
 0x3e4   : > { %5328 = vmatpush3.bf16.msra.mxu1 %v5928_v9 }
 0x3e5   : > { %5310 = vmatpush3.bf16.msra.mxu0 %v5927_v44  ;;  %5329 = vmatprep.subr.bf16.mxu1 %v5929_v42 }
 0x3e6   : > { %5335 = vmatprep.subr.bf16.mxu0 %v5930_v40 }
 0x3e8   : > { %5312 = vmatmul.mubr.msk.bf16.vlgmr.msra.gmra.mxu0 %vm6763_vm9, %v7819_v41  ;;  %5330 = vmatpush3.bf16.msra.mxu1 %v5929_v42 }
 0x3e9   : > { %5336 = vmatpush3.bf16.msra.mxu0 %v5930_v40  ;;  %5351 = vmatprep.mubr.msk.bf16.mxu0 %vm6816_vm5, %v7820_v10 }
 0x3ea   : > { %5337 = vmatprep.subr.bf16.mxu0 %v5931_v55  ;;  %5355 = vmatprep.subr.bf16.mxu1 %v5932_v52 }
 0x3eb   : > { %5332 = vmatmul.mubr.msk.bf16.vlgmr.msra.gmra.mxu1 %vm6839_vm3, %v4554_v36  ;;  %vm7839_vm3 = vcmp.ge.s32.totalorder %v6323_v25, 112 }
 0x3ec   : > { %5356 = vmatpush3.bf16.msra.mxu1 %v5932_v52  ;;  %5371 = vmatprep.mubr.msk.bf16.mxu1 %vm7823_vm8, %v4583_v0  ;;  %v5941_v0 = vld [vmem:[#allocation5 + $0x408] sm:$0xff]   ;;  %vm7840_vm5 = vmmov %vm7839_vm3 }
 0x3ed   : > { %5338 = vmatpush3.bf16.msra.mxu0 %v5931_v55  ;;  %5357 = vmatprep.subr.bf16.mxu1 %v5934_v39 }
 0x3ee   : > { %5339 = vmatprep.subr.bf16.mxu0 %v5933_v58  ;;  %v5213_v38 = vpop.f32.mrf.mxu1 }
 0x3f0   : > { %5358 = vmatpush3.bf16.msra.mxu1 %v5934_v39  ;;  %v1862_v18 = vpop.f32.mrf.mxu1 }
 0x3f1   : > { %5340 = vmatpush3.bf16.msra.mxu0 %v5933_v58  ;;  %5359 = vmatprep.subr.bf16.mxu1 %v5936_v31 }
 0x3f2   : > { %5341 = vmatprep.subr.bf16.mxu0 %v5935_v3  ;;  %v5214_v20 = vpop.f32.mrf.mxu1 }
 0x3f4   : > { %5360 = vmatpush3.bf16.msra.mxu1 %v5936_v31  ;;  %v1865_v22 = vpop.f32.mrf.mxu1 }
 0x3f5   : > { %5342 = vmatpush3.bf16.msra.mxu0 %v5935_v3  ;;  %5361 = vmatprep.subr.bf16.mxu1 %v5938_v11 }
 0x3f6   : > { %5343 = vmatprep.subr.bf16.mxu0 %v5937_v16 }
 0x3f8   : > { %5362 = vmatpush3.bf16.msra.mxu1 %v5938_v11 }
 0x3f9   : > { %5344 = vmatpush3.bf16.msra.mxu0 %v5937_v16  ;;  %5363 = vmatprep.subr.bf16.mxu1 %v5940_v51 }
 0x3fa   : > { %5345 = vmatprep.subr.bf16.mxu0 %v5939_v59 }
 0x3fc   : > { %5364 = vmatpush3.bf16.msra.mxu1 %v5940_v51 }
 0x3fd   : > { %5346 = vmatpush3.bf16.msra.mxu0 %v5939_v59  ;;  %5365 = vmatprep.subr.bf16.mxu1 %v5942_v35 }
 0x3fe   : > { %5347 = vmatprep.subr.bf16.mxu0 %v5941_v0 }
 0x400   : > { %5366 = vmatpush3.bf16.msra.mxu1 %v5942_v35 }
 0x401   : > { %5348 = vmatpush3.bf16.msra.mxu0 %v5941_v0  ;;  %5367 = vmatprep.subr.bf16.mxu1 %v5944_v1 }
 0x402   : > { %5349 = vmatprep.subr.bf16.mxu0 %v5943_v47 }
 0x404   : > { %5368 = vmatpush3.bf16.msra.mxu1 %v5944_v1 }
 0x405   : > { %5350 = vmatpush3.bf16.msra.mxu0 %v5943_v47  ;;  %5369 = vmatprep.subr.bf16.mxu1 %v5945_v50 }
 0x408   : > { %5352 = vmatmul.mubr.msk.bf16.vlgmr.msra.gmra.mxu0 %vm6868_vm2, %v7824_v21  ;;  %5370 = vmatpush3.bf16.msra.mxu1 %v5945_v50  ;;  %vm7829_vm2 = vmmov %vm7827_vm6 }
 0x409   : > { %vm7830_vm8 = vmmov %vm7829_vm2 }
 0x40b   : > { %5372 = vmatmul.mubr.msk.bf16.vlgmr.msra.gmra.mxu1 %vm6879_vm11, %v4588_v54  ;;  %vm7828_vm11 = vmmov %vm7827_vm6 }
 0x468   : > { %v5233_v5 = vpop.f32.mrf.mxu0 }
 0x469   : > { %v1968_v31 = vadd.f32 %v5233_v5, %v5213_v38 }
 0x46a   : > { %v1959_v44 = vpop.f32.mrf.mxu0 }
 0x46b   : > { %v5253_v9 = vpop.f32.mrf.mxu1  ;;  %v1960_v16 = vadd.f32 %v1959_v44, %v1862_v18 }
 0x46c   : > { %v5234_v49 = vpop.f32.mrf.mxu0  ;;  %v2112_v51 = vadd.f32 %v5253_v9, %v1968_v31  ;;  %v5952_v31 = vld [vmem:[#allocation5 + $0x4c8] sm:$0xff]  }
 0x46d   : > { %v2095_v42 = vpop.f32.mrf.mxu1  ;;  %v1971_v3 = vadd.f32 %v5234_v49, %v5214_v20 }
 0x46e   : > { %v1962_v24 = vpop.f32.mrf.mxu0  ;;  %v2110_v1 = vadd.f32 %v2095_v42, %v1960_v16  ;;  %v5955_v16 = vld [vmem:[#allocation5 + $0x4b0] sm:$0xff]  }
 0x46f   : > { %v5254_v34 = vpop.f32.mrf.mxu1  ;;  %v1963_v59 = vadd.f32 %v1962_v24, %v1865_v22  ;;  %v5946_v24 = vld [vmem:[#allocation5 + $0x4f8] sm:$0xff]  }
 0x470   : > { %v2113_v35 = vadd.f32 %v5254_v34, %v1971_v3  ;;  %5375 = vmatprep.subr.bf16.mxu0 %v5946_v24  ;;  %v5953_v3 = vld [vmem:[#allocation5 + $0x4c0] sm:$0xff]  }
 0x471   : > { %v2098_v15 = vpop.f32.mrf.mxu1  ;;  %5376 = vmatpush3.bf16.msra.mxu0 %v5946_v24 }
 0x472   : > { %v2111_v47 = vadd.f32 %v2098_v15, %v1963_v59  ;;  %v5957_v59 = vld [vmem:[#allocation5 + $0x4a8] sm:$0xff]  }
 0x488   : > { %v5273_v40 = vpop.f32.mrf.mxu0 }
 0x489   : > { %v2236_v50 = vadd.f32 %v5273_v40, %v2112_v51  ;;  %v7225_v51 = vld [vmem:[#allocation5 + $0x538] sm:$0xff]  }
 0x48a   : > { %v2219_v55 = vpop.f32.mrf.mxu0 }
 0x48b   : > { %v5293_v37 = vpop.f32.mrf.mxu1  ;;  %v2234_v6 = vadd.f32 %v2219_v55, %v2110_v1  ;;  %v5963_v1 = vld [vmem:[#allocation5 + $0x490] sm:$0xff]  }
 0x48c   : > { %v5274_v13 = vpop.f32.mrf.mxu0  ;;  %v2356_v4 = vadd.f32 %v5293_v37, %v2236_v50 }
 0x48d   : > { %v2339_v52 = vpop.f32.mrf.mxu1  ;;  %v2237_v21 = vadd.f32 %v5274_v13, %v2113_v35  ;;  %v5959_v35 = vld [vmem:[#allocation5 + $0x4a0] sm:$0xff]  }
 0x48e   : > { %v2222_v41 = vpop.f32.mrf.mxu0  ;;  %v2354_v56 = vadd.f32 %v2339_v52, %v2234_v6 }
 0x48f   : > { %v5294_v29 = vpop.f32.mrf.mxu1  ;;  %v2235_v7 = vadd.f32 %v2222_v41, %v2111_v47  ;;  %v5965_v47 = vld [vmem:[#allocation5 + $0x488] sm:$0xff]  }
 0x490   : > { %v2357_v62 = vadd.f32 %v5294_v29, %v2237_v21 }
 0x491   : > { %v2342_v36 = vpop.f32.mrf.mxu1 }
 0x492   : > { %v2355_v38 = vadd.f32 %v2342_v36, %v2235_v7  ;;  %v5948_v36 = vld [vmem:[#allocation5 + $0x4e8] sm:$0xff]  }
 0x4a8   : > { %v5313_v54 = vpop.f32.mrf.mxu0 }
 0x4a9   : > { %v2480_v20 = vadd.f32 %v5313_v54, %v2356_v4 }
 0x4aa   : > { %v2463_v39 = vpop.f32.mrf.mxu0 }
 0x4ab   : > { %v5333_v10 = vpop.f32.mrf.mxu1  ;;  %v2478_v22 = vadd.f32 %v2463_v39, %v2354_v56  ;;  %v5947_v56 = vld [vmem:[#allocation5 + $0x4f0] sm:$0xff]   ;;  %v5950_v39 = vld [vmem:[#allocation5 + $0x4d8] sm:$0xff]  }
 0x4ac   : > { %v5314_v11 = vpop.f32.mrf.mxu0  ;;  %v2612_v44 = vadd.f32 %v5333_v10, %v2480_v20  ;;  %5377 = vmatprep.subr.bf16.mxu0 %v5947_v56  ;;  %v5949_v10 = vld [vmem:[#allocation5 + $0x4e0] sm:$0xff]  }
 0x4ad   : > { %v2595_v58 = vpop.f32.mrf.mxu1  ;;  %v2481_v5 = vadd.f32 %v5314_v11, %v2357_v62  ;;  %5378 = vmatpush3.bf16.msra.mxu0 %v5947_v56  ;;  %v5954_v11 = vld [vmem:[#allocation5 + $0x4b8] sm:$0xff]  }
 0x4ae   : > { %v2466_v48 = vpop.f32.mrf.mxu0  ;;  %v2610_v15 = vadd.f32 %v2595_v58, %v2478_v22  ;;  %5379 = vmatprep.subr.bf16.mxu0 %v5948_v36  ;;  %v5951_v58 = vld [vmem:[#allocation5 + $0x4d0] sm:$0xff]   ;;  %5395 = vmatprep.subr.bf16.mxu1 %v5954_v11 }
 0x4af   : > { %v5334_v0 = vpop.f32.mrf.mxu1  ;;  %v2479_v49 = vadd.f32 %v2466_v48, %v2355_v38  ;;  %5396 = vmatpush3.bf16.msra.mxu1 %v5954_v11 }
 0x4b0   : > { %v2613_v42 = vadd.f32 %v5334_v0, %v2481_v5  ;;  %5397 = vmatprep.subr.bf16.mxu1 %v5955_v16  ;;  %v5961_v0 = vld [vmem:[#allocation5 + $0x498] sm:$0xff]  }
 0x4b1   : > { %v2598_v14 = vpop.f32.mrf.mxu1  ;;  %5380 = vmatpush3.bf16.msra.mxu0 %v5948_v36 }
 0x4b2   : > { %v2611_v55 = vadd.f32 %v2598_v14, %v2479_v49  ;;  %5381 = vmatprep.subr.bf16.mxu0 %v5949_v10 }
 0x4b3   : > { %5398 = vmatpush3.bf16.msra.mxu1 %v5955_v16 }
 0x4b4   : > { %5399 = vmatprep.subr.bf16.mxu1 %v5957_v59 }
 0x4b5   : > { %5382 = vmatpush3.bf16.msra.mxu0 %v5949_v10 }
 0x4b6   : > { %5383 = vmatprep.subr.bf16.mxu0 %v5950_v39 }
 0x4b7   : > { %5400 = vmatpush3.bf16.msra.mxu1 %v5957_v59 }
 0x4b8   : > { %5401 = vmatprep.subr.bf16.mxu1 %v5959_v35 }
 0x4b9   : > { %5384 = vmatpush3.bf16.msra.mxu0 %v5950_v39 }
 0x4ba   : > { %5385 = vmatprep.subr.bf16.mxu0 %v5951_v58 }
 0x4bb   : > { %5402 = vmatpush3.bf16.msra.mxu1 %v5959_v35 }
 0x4bc   : > { %5403 = vmatprep.subr.bf16.mxu1 %v5961_v0 }
 0x4bd   : > { %5386 = vmatpush3.bf16.msra.mxu0 %v5951_v58 }
 0x4be   : > { %5387 = vmatprep.subr.bf16.mxu0 %v5952_v31 }
 0x4bf   : > { %5404 = vmatpush3.bf16.msra.mxu1 %v5961_v0 }
 0x4c0   : > { %5405 = vmatprep.subr.bf16.mxu1 %v5963_v1 }
 0x4c1   : > { %5388 = vmatpush3.bf16.msra.mxu0 %v5952_v31 }
 0x4c2   : > { %5389 = vmatprep.subr.bf16.mxu0 %v5953_v3 }
 0x4c3   : > { %5406 = vmatpush3.bf16.msra.mxu1 %v5963_v1 }
 0x4c4   : > { %5407 = vmatprep.subr.bf16.mxu1 %v5965_v47 }
 0x4c5   : > { %5390 = vmatpush3.bf16.msra.mxu0 %v5953_v3 }
 0x4c6   : > { %5415 = vmatprep.subr.bf16.mxu0 %v7225_v51 }
 0x4c7   : > { %5408 = vmatpush3.bf16.msra.mxu1 %v5965_v47 }
 0x4c8   : > { %v5353_v12 = vpop.f32.mrf.mxu0 }
 0x4c9   : > { %v2744_v37 = vadd.f32 %v5353_v12, %v2612_v44 }
 0x4ca   : > { %v2727_v18 = vpop.f32.mrf.mxu0 }
 0x4cb   : > { %v5373_v9 = vpop.f32.mrf.mxu1  ;;  %v2742_v7 = vadd.f32 %v2727_v18, %v2610_v15 }
 0x4cc   : > { %v5354_v34 = vpop.f32.mrf.mxu0  ;;  %v7205_v6 = vadd.f32 %v5373_v9, %v2744_v37 }
 0x4cd   : > { %v2859_v40 = vpop.f32.mrf.mxu1  ;;  %v2745_v13 = vadd.f32 %v5354_v34, %v2613_v42 }
 0x4ce   : > { %v2730_v29 = vpop.f32.mrf.mxu0  ;;  %v7209_v52 = vadd.f32 %v2859_v40, %v2742_v7 }
 0x4cf   : > { %v5374_v41 = vpop.f32.mrf.mxu1  ;;  %v2743_v4 = vadd.f32 %v2730_v29, %v2611_v55 }
 0x4d0   : > { %v7207_v62 = vadd.f32 %v5374_v41, %v2745_v13 }
 0x4d1   : > { %v2862_v48 = vpop.f32.mrf.mxu1 }
 0x4d2   : > { %v7211_v54 = vadd.f32 %v2862_v48, %v2743_v4  ;;  %v5742_v14 = vpack.i.bf16 %v7207_v62, %v7205_v6 }
 0x4d4   : > { %5743 = vrot.lane.b32.xlu1 %v5742_v14, %s6149_s15  ;;  %v5757_v12 = vpack.i.bf16 %v7211_v54, %v7209_v52 }
 0x4d6   : > { %5758 = vrot.lane.b32.xlu0 %v5757_v12, %s6149_s15 }
 0x4d8   : > { %5748 = vrot.lane.b32.xlu1 %v5742_v14, %s6150_s17 }
 0x4da   : > { %5763 = vrot.lane.b32.xlu0 %v5757_v12, %s6150_s17 }
 0x4dc   : > { %5753 = vrot.lane.b32.xlu1 %v5742_v14, %s6151_s8 }
 0x4de   : > { %5768 = vrot.lane.b32.xlu0 %v5757_v12, %s6151_s8 }
 0x4e0   : > { %5778 = vrot.lane.b32.xlu1 %v5742_v14, %s6152_s18 }
 0x4e2   : > { %5773 = vrot.lane.b32.xlu0 %v5757_v12, %s6152_s18 }
 0x546   : > { %v5744_v50 = vpop.permute.xlu1 %5743 }
 0x547   : > { %v5746_v21 = vunpack.i.h.bf16 %v5744_v50  ;;  %v5745_v38 = vunpack.i.l.bf16 %v5744_v50 }
 0x548   : > { %v5759_v20 = vpop.permute.xlu0 %5758 }
 0x549   : > { %v2893_v5 = vmax.f32 %v7207_v62, %v5746_v21  ;;  %v2892_v18 = vmax.f32 %v7205_v6, %v5745_v38  ;;  %v5761_v9 = vunpack.i.h.bf16 %v5759_v20  ;;  %v5760_v22 = vunpack.i.l.bf16 %v5759_v20 }
 0x54a   : > { %v5749_v44 = vpop.permute.xlu1 %5748 }
 0x54b   : > { %v2891_v49 = vmax.f32 %v7211_v54, %v5761_v9  ;;  %v2890_v42 = vmax.f32 %v7209_v52, %v5760_v22  ;;  %v5751_v34 = vunpack.i.h.bf16 %v5749_v44  ;;  %v5750_v24 = vunpack.i.l.bf16 %v5749_v44 }
 0x54c   : > { %v2896_v40 = vsel %vm7827_vm6, %v7205_v6, %v2892_v18  ;;  %v2897_v15 = vsel %vm7828_vm11, %v7207_v62, %v2893_v5  ;;  %v5764_v55 = vpop.permute.xlu0 %5763  ;;  %vm7831_vm11 = vcmp.lt.s32.totalorder %v6323_v25, 8 }
 0x54d   : > { %v2908_v37 = vmax.f32 %v2896_v40, %v5750_v24  ;;  %v2909_v13 = vmax.f32 %v2897_v15, %v5751_v34  ;;  %v5766_v29 = vunpack.i.h.bf16 %v5764_v55  ;;  %v5765_v41 = vunpack.i.l.bf16 %v5764_v55  ;;  %vm7832_vm6 = vmmov %vm7831_vm11 }
 0x54e   : > { %v2894_v7 = vsel %vm7829_vm2, %v7209_v52, %v2890_v42  ;;  %v2895_v4 = vsel %vm7830_vm8, %v7211_v54, %v2891_v49  ;;  %v5754_v56 = vpop.permute.xlu1 %5753  ;;  %vm7833_vm2 = vmmov %vm7832_vm6 }
 0x54f   : > { %v2906_v48 = vmax.f32 %v2894_v7, %v5765_v41  ;;  %v2907_v14 = vmax.f32 %v2895_v4, %v5766_v29  ;;  %v5756_v12 = vunpack.i.h.bf16 %v5754_v56  ;;  %v5755_v36 = vunpack.i.l.bf16 %v5754_v56  ;;  %vm7834_vm8 = vmmov %vm7833_vm2 }
 0x550   : > { %v2912_v10 = vsel %vm7831_vm11, %v2896_v40, %v2908_v37  ;;  %v2913_v39 = vsel %vm7832_vm6, %v2897_v15, %v2909_v13  ;;  %v5769_v58 = vpop.permute.xlu0 %5768  ;;  %vm7835_vm11 = vcmp.ge.s32.totalorder %v6323_v25, 120 }
 0x551   : > { %v2924_v31 = vmax.f32 %v2912_v10, %v5755_v36  ;;  %v2925_v3 = vmax.f32 %v2913_v39, %v5756_v12  ;;  %v5771_v11 = vunpack.i.h.bf16 %v5769_v58  ;;  %v5770_v16 = vunpack.i.l.bf16 %v5769_v58  ;;  %vm7836_vm6 = vmmov %vm7835_vm11 }
 0x552   : > { %v2910_v59 = vsel %vm7833_vm2, %v2894_v7, %v2906_v48  ;;  %v2911_v35 = vsel %vm7834_vm8, %v2895_v4, %v2907_v14  ;;  %v5779_v0 = vpop.permute.xlu1 %5778  ;;  %vm7837_vm2 = vmmov %vm7836_vm6 }
 0x553   : > { %v2922_v1 = vmax.f32 %v2910_v59, %v5770_v16  ;;  %v2923_v47 = vmax.f32 %v2911_v35, %v5771_v11  ;;  %v5781_v50 = vunpack.i.h.bf16 %v5779_v0  ;;  %v5780_v21 = vunpack.i.l.bf16 %v5779_v0  ;;  %vm7838_vm8 = vmmov %vm7837_vm2 }
 0x554   : > { %v2928_v38 = vsel %vm7835_vm11, %v2912_v10, %v2924_v31  ;;  %v2929_v20 = vsel %vm7836_vm6, %v2913_v39, %v2925_v3  ;;  %v5774_v5 = vpop.permute.xlu0 %5773  ;;  %vm7841_vm11 = vcmp.lt.s32.totalorder %v6321_v23, 2  ;;  %vm7842_vm6 = vmmov %vm7839_vm3 }
 0x555   : > { %v2940_v18 = vmax.f32 %v2928_v38, %v5780_v21  ;;  %v2941_v9 = vmax.f32 %v2929_v20, %v5781_v50  ;;  %v5776_v22 = vunpack.i.h.bf16 %v5774_v5  ;;  %v5775_v44 = vunpack.i.l.bf16 %v5774_v5 }
 0x556   : > { %v2926_v49 = vsel %vm7837_vm2, %v2910_v59, %v2922_v1  ;;  %v2927_v42 = vsel %vm7838_vm8, %v2911_v35, %v2923_v47  ;;  %vm7844_vm2 = vmmov %vm7841_vm11 }
 0x557   : > { %v2944_v34 = vsel %vm7839_vm3, %v2928_v38, %v2940_v18  ;;  %v2945_v24 = vsel %vm7840_vm5, %v2929_v20, %v2941_v9  ;;  %v2938_v40 = vmax.f32 %v2926_v49, %v5775_v44  ;;  %v2939_v15 = vmax.f32 %v2927_v42, %v5776_v22  ;;  %vm7845_vm8 = vmmov %vm7844_vm2 }
 0x558   : > { %v2948_v55 = vrot.slane %v2944_v34, 6  ;;  %v2949_v37 = vrot.slane %v2945_v24, 6  ;;  %v2964_v13 = vrot.slane %v2944_v34, 7  ;;  %v2965_v29 = vrot.slane %v2945_v24, 7 }
 0x559   : > { %v2980_v41 = vrot.slane %v2944_v34, 1  ;;  %v2981_v7 = vrot.slane %v2945_v24, 1  ;;  %v2996_v56 = vrot.slane %v2944_v34, 2  ;;  %v2942_v48 = vsel %vm7842_vm6, %v2926_v49, %v2938_v40 }
 0x55a   : > { %v2950_v4 = vsel %vm7841_vm11, %v2948_v55, %v2949_v37  ;;  %v2943_v14 = vsel %vm7839_vm3, %v2927_v42, %v2939_v15  ;;  %v2997_v36 = vrot.slane %v2945_v24, 2  ;;  %v2946_v10 = vrot.slane %v2942_v48, 6  ;;  %vm7846_vm11 = vmmov %vm7844_vm2 }
 0x55b   : > { %v2957_v12 = vmax.f32 %v2945_v24, %v2950_v4  ;;  %v2947_v39 = vrot.slane %v2943_v14, 6  ;;  %vm7843_vm5 = vcmp.lt.s32.totalorder %v6321_v23, 1  ;;  %v2962_v31 = vrot.slane %v2942_v48, 7 }
 0x55c   : > { %v2966_v58 = vsel %vm7843_vm5, %v2964_v13, %v2965_v29  ;;  %v2963_v3 = vrot.slane %v2943_v14, 7  ;;  %v2979_v11 = vrot.slane %v2943_v14, 1  ;;  %v2953_v25 = vsel %vm7846_vm11, %v2949_v37, %v2946_v10  ;;  %vm7847_vm6 = vmmov %vm7843_vm5 }
 0x55d   : > { %v2951_v16 = vsel %vm7844_vm2, %v2947_v39, %v2948_v55  ;;  %v2952_v59 = vsel %vm7845_vm8, %v2946_v10, %v2947_v39  ;;  %v2978_v35 = vrot.slane %v2942_v48, 1  ;;  %v2973_v0 = vmax.f32 %v2957_v12, %v2966_v58  ;;  %vm7848_vm3 = vmmov %vm7843_vm5 }
 0x55e   : > { %v2954_v1 = vmax.f32 %v2942_v48, %v2953_v25  ;;  %v2955_v47 = vmax.f32 %v2943_v14, %v2952_v59  ;;  %v2956_v50 = vmax.f32 %v2944_v34, %v2951_v16  ;;  %v2967_v21 = vsel %vm7847_vm6, %v2963_v3, %v2964_v13  ;;  %vm7849_vm5 = vmmov %vm7848_vm3  ;;  %v7332_v16 = vld [vmem:[#allocation5 + $0x578] sm:$0xff]  }
 0x55f   : > { %v2968_v38 = vsel %vm7848_vm3, %v2962_v31, %v2963_v3  ;;  %v2969_v20 = vsel %vm7849_vm5, %v2965_v29, %v2962_v31  ;;  %vm7850_vm2 = vcmp.lt.s32.totalorder %v6321_v23, 7  ;;  %vm7851_vm8 = vnez %v7667_v32 }
 0x560   : > { %v2983_v5 = vsel %vm7850_vm2, %v2979_v11, %v2980_v41  ;;  %v2958_v18 = vsel %vm6375_vm7, %v2942_v48, %v2954_v1  ;;  %v2960_v9 = vsel %vm7851_vm8, %v2944_v34, %v2956_v50  ;;  %v2971_v22 = vmax.f32 %v2955_v47, %v2968_v38  ;;  %vm7852_vm11 = vmmov %vm7850_vm2 }
 0x561   : > { %v2994_v44 = vrot.slane %v2942_v48, 2  ;;  %v2970_v49 = vmax.f32 %v2958_v18, %v2969_v20  ;;  %v2972_v42 = vmax.f32 %v2960_v9, %v2967_v21  ;;  %v2995_v24 = vrot.slane %v2943_v14, 2  ;;  %vm7853_vm6 = vmmov %vm7850_vm2  ;;  %v5967_v14 = vld [vmem:[#allocation5 + $0x480] sm:$0xff]  }
 0x562   : > { %v2985_v40 = vsel %vm7852_vm11, %v2981_v7, %v2978_v35  ;;  %v2982_v15 = vsel %vm7853_vm6, %v2980_v41, %v2981_v7  ;;  %vm7854_vm3 = vmmov %vm7850_vm2  ;;  %v2987_v27 = vmax.f32 %v2971_v22, %v2983_v5  ;;  %vm7855_vm7 = vcmp.lt.s32.totalorder %v6321_v23, 6  ;;  %5409 = vmatprep.subr.bf16.mxu1 %v5967_v14 }
 0x563   : > { %v2984_v55 = vsel %vm7854_vm3, %v2978_v35, %v2979_v11  ;;  %v2989_v37 = vmax.f32 %v2973_v0, %v2985_v40  ;;  %v2974_v32 = vsel %vm7785_vm4, %v2958_v18, %v2970_v49  ;;  %v2976_v34 = vsel %vm7786_vm15, %v2960_v9, %v2972_v42  ;;  %vm7856_vm5 = vmmov %vm7855_vm7  ;;  %5410 = vmatpush3.bf16.msra.mxu1 %v5967_v14  ;;  %v5958_v9 = vld [vmem:[#allocation5 + $0x530] sm:$0xff]   ;;  %v5960_v40 = vld [vmem:[#allocation5 + $0x528] sm:$0xff]  }
 0x564   : > { %v3001_v13 = vsel %vm7855_vm7, %v2997_v36, %v2994_v44  ;;  %v2999_v29 = vsel %vm7856_vm5, %v2995_v24, %v2996_v56  ;;  %v2988_v4 = vmax.f32 %v2976_v34, %v2982_v15  ;;  %v2986_v7 = vmax.f32 %v2974_v32, %v2984_v55  ;;  %vm7858_vm4 = vmmov %vm7856_vm5  ;;  %5435 = vmatprep.subr.bf16.mxu1 %v7332_v16  ;;  %v5964_v15 = vld [vmem:[#allocation5 + $0x518] sm:$0xff]   ;;  %v5966_v55 = vld [vmem:[#allocation5 + $0x510] sm:$0xff]  }
 0x565   : > { %v2993_v41 = vsel %vm6420_vm12, %v2973_v0, %v2989_v37  ;;  %vm7857_vm2 = vnez %v7675_v26  ;;  %v2998_v45 = vsel %vm7858_vm4, %v2996_v56, %v2997_v36  ;;  %vm7859_vm15 = vmmov %vm7858_vm4  ;;  %vm7860_vm12 = vnez %v7677_v60  ;;  %v5968_v37 = vld [vmem:[#allocation5 + $0x508] sm:$0xff]  }
 0x566   : > { %v2991_v48 = vsel %vm7857_vm2, %v2971_v22, %v2987_v27  ;;  %v3005_v46 = vmax.f32 %v2993_v41, %v3001_v13  ;;  %v3000_v12 = vsel %vm7859_vm15, %v2994_v44, %v2995_v24  ;;  %v7312_v39 = vmax.f32 %v2988_v4, %v2998_v45 }
 0x567   : > { %v3003_v10 = vmax.f32 %v2991_v48, %v2999_v29  ;;  %v7314_v58 = vmax.f32 %v2986_v7, %v3000_v12  ;;  %vm7861_vm8 = vnez %v7679_v61  ;;  %vm7862_vm11 = vcmp.lt.s32.totalorder %v6321_v23, 1 }
 0x568   : > { %v7318_v28 = vsel %vm7860_vm12, %v2993_v41, %v3005_v46  ;;  %v3051_v61 = vrot.slane %v7312_v39, 7  ;;  %vm7863_vm6 = vmmov %vm7862_vm11  ;;  %v3916_v50 = vrot.slane %v7312_v39, 1  ;;  %vm7866_vm5 = vcmp.lt.s32.totalorder %v6321_v23, 7  ;;  %v6006_v23 = vld [vmem:[#allocation5 + $0x6b0] sm:$0xff]  }
 0x569   : > { %v7322_v26 = vsel %vm7861_vm8, %v2991_v48, %v3003_v10  ;;  %v5787_v56 = vpack.i.bf16 %v7312_v39, %v7318_v28  ;;  %v3917_v36 = vrot.slane %v7318_v28, 1  ;;  %v3049_v3 = vrot.slane %v7314_v58, 7  ;;  %vm7864_vm3 = vmmov %vm7863_vm6 }
 0x56a   : > { %v5782_v31 = vpack.i.bf16 %v7322_v26, %v7314_v58  ;;  %v3050_v11 = vrot.slane %v7322_v26, 7  ;;  %v3052_v60 = vrot.slane %v7318_v28, 7  ;;  %v3538_v59 = vpack.c.bf16 %v7322_v26, %v7314_v58  ;;  %vm7865_vm7 = vmmov %vm7864_vm3 }
 0x56b   : > { %5788 = vrot.lane.b32.xlu1 %v5787_v56, %s6150_s17  ;;  %v3539_v25 = vpack.c.bf16 %v7318_v28, %v7312_v39  ;;  %v3914_v35 = vrot.slane %v7314_v58, 1  ;;  %v3915_v47 = vrot.slane %v7322_v26, 1  ;;  %vm7867_vm2 = vmmov %vm7866_vm5  ;;  %vm7870_vm12 = vnez %v7683_v8  ;;  %v5969_v8 = vld [vmem:[#allocation5 + $0x500] sm:$0xff]   ;;  %v5982_v58 = vld [vmem:[#allocation5 + $0x590] sm:$0xff]  }
 0x56c   : > { %5783 = vrot.lane.b32.xlu0 %v5782_v31, %s6150_s17  ;;  %v3055_v0 = vsel %vm7862_vm11, %v3049_v3, %v3050_v11  ;;  %v3056_v1 = vsel %vm7863_vm6, %v3052_v60, %v3049_v3  ;;  %v3053_v38 = vsel %vm7864_vm3, %v3051_v61, %v3052_v60  ;;  %v3054_v20 = vsel %vm7865_vm7, %v3050_v11, %v3051_v61  ;;  %vm7868_vm4 = vmmov %vm7867_vm2  ;;  %v5981_v26 = vld [vmem:[#allocation5 + $0x548] sm:$0xff]   ;;  %v5996_v39 = vld [vmem:[#allocation5 + $0x618] sm:$0xff]  }
 0x56d   : > { %v4600_v21 = vpack.c.bf16 %v3055_v0, %v3056_v1  ;;  %v7355_v5 = vsel %vm7866_vm5, %v3917_v36, %v3914_v35  ;;  %v4604_v18 = vpack.c.bf16 %v3053_v38, %v3054_v20  ;;  %v7359_v22 = vsel %vm7867_vm2, %v3915_v47, %v3916_v50  ;;  %vm7869_vm15 = vmmov %vm7867_vm2  ;;  %v5995_v28 = vld [vmem:[#allocation5 + $0x5d0] sm:$0xff]  }
 0x56e   : > { %v7363_v44 = vsel %vm7868_vm4, %v3914_v35, %v3915_v47  ;;  %v7367_v49 = vsel %vm7869_vm15, %v3916_v50, %v3917_v36  ;;  %vm7872_vm8 = vmmov %vm7864_vm3 }
 0x56f   : > { %5391 = vmatprep.mubr.msk.bf16.mxu0 %vm7801_vm10, %v4600_v21  ;;  %5798 = vrot.lane.b32.xlu1 %v5787_v56, %s6151_s8  ;;  %v4714_v42 = vpack.c.bf16 %v7359_v22, %v7363_v44  ;;  %v4718_v24 = vpack.c.bf16 %v7355_v5, %v7367_v49  ;;  %vm7871_vm10 = vmmov %vm7864_vm3  ;;  %v6008_v22 = vld [vmem:[#allocation5 + $0x6a8] sm:$0xff]   ;;  %v6010_v44 = vld [vmem:[#allocation5 + $0x6a0] sm:$0xff]  }
 0x570   : > { %5793 = vrot.lane.b32.xlu0 %v5782_v31, %s6151_s8  ;;  %5392 = vmatmul.mubr.msk.bf16.vlgmr.msra.gmra.mxu0 %vm7870_vm12, %v4604_v18  ;;  %vm7873_vm11 = vmmov %vm7864_vm3 }
 0x571   : > { %5416 = vmatpush3.bf16.msra.mxu0 %v7225_v51  ;;  %v5972_v51 = vld [vmem:[#allocation5 + $0x5b8] sm:$0xff]   ;;  %vm7874_vm6 = vmmov %vm7867_vm2 }
 0x572   : > { %5417 = vmatprep.subr.bf16.mxu0 %v5958_v9  ;;  %vm7875_vm7 = vmmov %vm7864_vm3 }
 0x573   : > { %vm7876_vm5 = vmmov %vm7864_vm3 }
 0x574   : > { %vm7877_vm4 = vmmov %vm7867_vm2 }
 0x575   : > { %5418 = vmatpush3.bf16.msra.mxu0 %v5958_v9  ;;  %vm7878_vm15 = vmmov %vm7864_vm3 }
 0x576   : > { %5419 = vmatprep.subr.bf16.mxu0 %v5960_v40  ;;  %vm7879_vm12 = vmmov %vm7864_vm3 }
 0x579   : > { %5420 = vmatpush3.bf16.msra.mxu0 %v5960_v40 }
 0x57a   : > { %5421 = vmatprep.subr.bf16.mxu0 %v5962_v33 }
 0x57d   : > { %5422 = vmatpush3.bf16.msra.mxu0 %v5962_v33 }
 0x57e   : > { %5423 = vmatprep.subr.bf16.mxu0 %v5964_v15 }
 0x581   : > { %5424 = vmatpush3.bf16.msra.mxu0 %v5964_v15 }
 0x582   : > { %5425 = vmatprep.subr.bf16.mxu0 %v5966_v55 }
 0x585   : > { %5426 = vmatpush3.bf16.msra.mxu0 %v5966_v55 }
 0x586   : > { %5427 = vmatprep.subr.bf16.mxu0 %v5968_v37 }
 0x589   : > { %5428 = vmatpush3.bf16.msra.mxu0 %v5968_v37 }
 0x58a   : > { %5429 = vmatprep.subr.bf16.mxu0 %v5969_v8 }
 0x58d   : > { %5430 = vmatpush3.bf16.msra.mxu0 %v5969_v8 }
 0x58e   : > { %5455 = vmatprep.subr.bf16.mxu0 %v5972_v51 }
 0x5dd   : > { %v5789_v27 = vpop.permute.xlu1 %5788 }
 0x5de   : > { %v5784_v32 = vpop.permute.xlu0 %5783  ;;  %v7380_v34 = vunpack.i.h.bf16 %v5789_v27  ;;  %v7382_v13 = vunpack.i.l.bf16 %v5789_v27 }
 0x5df   : > { %v7384_v29 = vunpack.i.h.bf16 %v5784_v32  ;;  %v7386_v4 = vunpack.i.l.bf16 %v5784_v32 }
 0x5e0   : > { %v3020_v41 = vrot.slane %v7380_v34, 7  ;;  %v3021_v7 = vrot.slane %v7382_v13, 7 }
 0x5e1   : > { %v3019_v48 = vrot.slane %v7384_v29, 7  ;;  %v5799_v14 = vpop.permute.xlu1 %5798  ;;  %v3018_v45 = vrot.slane %v7386_v4, 7  ;;  %v4653_v37 = vpack.c.bf16 %v7384_v29, %v7386_v4 }
 0x5e2   : > { %v7392_v46 = vunpack.i.h.bf16 %v5799_v14  ;;  %v5794_v12 = vpop.permute.xlu0 %5793  ;;  %v7394_v10 = vunpack.i.l.bf16 %v5799_v14  ;;  %v3022_v36 = vsel %vm7871_vm10, %v3020_v41, %v3021_v7  ;;  %vm7880_vm10 = vmmov %vm7867_vm2 }
 0x5e3   : > { %v7396_v56 = vunpack.i.h.bf16 %v5794_v12  ;;  %v3023_v31 = vsel %vm7872_vm8, %v3019_v48, %v3020_v41  ;;  %v7410_v47 = vunpack.i.l.bf16 %v5794_v12  ;;  %v3024_v50 = vsel %vm7873_vm11, %v3018_v45, %v3019_v48  ;;  %v5971_v41 = vld [vmem:[#allocation5 + $0x570] sm:$0xff]  }
 0x5e4   : > { %v3284_v3 = vrot.slane %v7392_v46, 7  ;;  %v4048_v11 = vrot.slane %v7392_v46, 1  ;;  %v3285_v60 = vrot.slane %v7394_v10, 7  ;;  %v4684_v61 = vpack.c.bf16 %v7394_v10, %v7392_v46  ;;  %v6012_v46 = vld [vmem:[#allocation5 + $0x698] sm:$0xff]  }
 0x5e5   : > { %v4049_v35 = vrot.slane %v7394_v10, 1  ;;  %v3283_v0 = vrot.slane %v7396_v56, 7  ;;  %v4047_v1 = vrot.slane %v7396_v56, 1  ;;  %v4622_v21 = vpack.c.bf16 %v3022_v36, %v3023_v31  ;;  %v5974_v36 = vld [vmem:[#allocation5 + $0x5b0] sm:$0xff]   ;;  %v5977_v31 = vld [vmem:[#allocation5 + $0x558] sm:$0xff]  }
 0x5e6   : > { %v3025_v20 = vsel %vm7864_vm3, %v3021_v7, %v3018_v45  ;;  %v3286_v18 = vsel %vm7875_vm7, %v3284_v3, %v3285_v60  ;;  %v3282_v40 = vrot.slane %v7410_v47, 7  ;;  %v4046_v33 = vrot.slane %v7410_v47, 1  ;;  %v6011_v10 = vld [vmem:[#allocation5 + $0x650] sm:$0xff]  }
 0x5e7   : > { %v7416_v38 = vsel %vm7874_vm6, %v4048_v11, %v4049_v35  ;;  %v3287_v9 = vsel %vm7876_vm5, %v3283_v0, %v3284_v3  ;;  %v4617_v15 = vpack.c.bf16 %v3024_v50, %v3025_v20  ;;  %v7428_v55 = vsel %vm7867_vm2, %v4047_v1, %v4048_v11  ;;  %v5983_v3 = vld [vmem:[#allocation5 + $0x540] sm:$0xff]   ;;  %v5988_v20 = vld [vmem:[#allocation5 + $0x638] sm:$0xff]  }
 0x5e8   : > { %v7434_v8 = vsel %vm7877_vm4, %v4049_v35, %v4046_v33  ;;  %v3288_v27 = vsel %vm7878_vm15, %v3282_v40, %v3283_v0  ;;  %v3289_v32 = vsel %vm7879_vm12, %v3285_v60, %v3282_v40  ;;  %v4640_v7 = vpack.c.bf16 %v3286_v18, %v3287_v9  ;;  %v5985_v11 = vld [vmem:[#allocation5 + $0x580] sm:$0xff]   ;;  %v5986_v60 = vld [vmem:[#allocation5 + $0x5f8] sm:$0xff]   ;;  %v5990_v40 = vld [vmem:[#allocation5 + $0x630] sm:$0xff]  }
 0x5e9   : > { %v4736_v48 = vpack.c.bf16 %v7434_v8, %v7416_v38  ;;  %5411 = vmatprep.mubr.msk.bf16.mxu1 %vm6622_vm1, %v4617_v15  ;;  %v4635_v14 = vpack.c.bf16 %v3288_v27, %v3289_v32  ;;  %v7446_v45 = vsel %vm7880_vm10, %v4046_v33, %v4047_v1  ;;  %vm7881_vm1 = vnez %v7716_v19  ;;  %v5980_v19 = vld [vmem:[#allocation5 + $0x598] sm:$0xff]   ;;  %v5991_v33 = vld [vmem:[#allocation5 + $0x5e0] sm:$0xff]   ;;  %v6000_v27 = vld [vmem:[#allocation5 + $0x608] sm:$0xff]  }
 0x5ea   : > { %5412 = vmatmul.mubr.msk.bf16.vlgmr.msra.gmra.mxu1 %vm7811_vm14, %v4622_v21  ;;  %v4731_v12 = vpack.c.bf16 %v7428_v55, %v7446_v45  ;;  %v3784_v35 = vrot.slane %v7380_v34, 1  ;;  %v3783_v0 = vrot.slane %v7384_v29, 1  ;;  %v3782_v1 = vrot.slane %v7386_v4, 1  ;;  %v5987_v21 = vld [vmem:[#allocation5 + $0x5f0] sm:$0xff]   ;;  %vm7882_vm14 = vmmov %vm7867_vm2  ;;  %v5994_v15 = vld [vmem:[#allocation5 + $0x620] sm:$0xff]  }
 0x5eb   : > { %5436 = vmatpush3.bf16.msra.mxu1 %v7332_v16  ;;  %5451 = vmatprep.mubr.msk.bf16.mxu1 %vm7812_vm0, %v4653_v37  ;;  %v5975_v16 = vld [vmem:[#allocation5 + $0x560] sm:$0xff]   ;;  %v4658_v50 = vpack.c.bf16 %v7382_v13, %v7380_v34  ;;  %v4679_v18 = vpack.c.bf16 %v7396_v56, %v7410_v47  ;;  %v5989_v47 = vld [vmem:[#allocation5 + $0x5e8] sm:$0xff]   ;;  %vm7884_vm8 = vnez %v7726_v63  ;;  %v5993_v37 = vld [vmem:[#allocation5 + $0x5d8] sm:$0xff]   ;;  %vm7887_vm6 = vnez %v7735_v43 }
 0x5ec   : > { %5431 = vmatprep.mubr.msk.bf16.mxu0 %vm7813_vm13, %v4635_v14  ;;  %5437 = vmatprep.subr.bf16.mxu1 %v5971_v41  ;;  %v3787_v9 = vsel %vm7882_vm14, %v3783_v0, %v3784_v35  ;;  %vm7883_vm13 = vmmov %vm7867_vm2  ;;  %v5998_v63 = vld [vmem:[#allocation5 + $0x610] sm:$0xff]   ;;  %v5999_v32 = vld [vmem:[#allocation5 + $0x5c0] sm:$0xff]  }
 0x5ed   : > { %5432 = vmatmul.mubr.msk.bf16.vlgmr.msra.gmra.mxu0 %vm7881_vm1, %v4640_v7  ;;  %v3788_v29 = vsel %vm7883_vm13, %v3782_v1, %v3783_v0  ;;  %v3785_v7 = vrot.slane %v7382_v13, 1  ;;  %v6002_v14 = vld [vmem:[#allocation5 + $0x678] sm:$0xff]   ;;  %v6005_v34 = vld [vmem:[#allocation5 + $0x668] sm:$0xff]   ;;  %v7888_v4 = vld [vmem:[#allocation15_spill] sm:$0xff] }
 0x5ee   : > { %5456 = vmatpush3.bf16.msra.mxu0 %v5972_v51  ;;  %5471 = vmatprep.mubr.bf16.mxu0 %v3538_v59  ;;  %v5979_v51 = vld [vmem:[#allocation5 + $0x550] sm:$0xff]   ;;  %v5984_v59 = vld [vmem:[#allocation5 + $0x588] sm:$0xff]   ;;  %v4697_v56 = vpack.c.bf16 %v3787_v9, %v3788_v29  ;;  %vm7889_vm3 = vnez %v7888_v4  ;;  %v6007_v43 = vld [vmem:[#allocation5 + $0x660] sm:$0xff]  }
 0x5ef   : > { %5438 = vmatpush3.bf16.msra.mxu1 %v5971_v41  ;;  %5457 = vmatprep.subr.bf16.mxu0 %v5974_v36  ;;  %v6001_v41 = vld [vmem:[#allocation5 + $0x600] sm:$0xff]   ;;  %v6013_v55 = vld [vmem:[#allocation5 + $0x648] sm:$0xff]  }
 0x5f0   : > { %5439 = vmatprep.subr.bf16.mxu1 %v5973_v57  ;;  %v6016_v45 = vld [vmem:[#allocation5 + $0x688] sm:$0xff]  }
 0x5f2   : > { %5458 = vmatpush3.bf16.msra.mxu0 %v5974_v36 }
 0x5f3   : > { %5440 = vmatpush3.bf16.msra.mxu1 %v5973_v57  ;;  %5459 = vmatprep.subr.bf16.mxu0 %v5976_v30 }
 0x5f4   : > { %5441 = vmatprep.subr.bf16.mxu1 %v5975_v16 }
 0x5f6   : > { %5460 = vmatpush3.bf16.msra.mxu0 %v5976_v30  ;;  %v6003_v30 = vld [vmem:[#allocation5 + $0x670] sm:$0xff]  }
 0x5f7   : > { %5442 = vmatpush3.bf16.msra.mxu1 %v5975_v16  ;;  %5461 = vmatprep.subr.bf16.mxu0 %v5978_v17  ;;  %v6004_v16 = vld [vmem:[#allocation5 + $0x6b8] sm:$0xff]  }
 0x5f8   : > { %5443 = vmatprep.subr.bf16.mxu1 %v5977_v31 }
 0x5fa   : > { %5462 = vmatpush3.bf16.msra.mxu0 %v5978_v17  ;;  %v6017_v17 = vld [vmem:[#allocation5 + $0x680] sm:$0xff]  }
 0x5fb   : > { %5444 = vmatpush3.bf16.msra.mxu1 %v5977_v31  ;;  %5463 = vmatprep.subr.bf16.mxu0 %v5980_v19  ;;  %v7892_v31 = vld [vmem:[#allocation17_spill] sm:$0xff] }
 0x5fc   : > { %5445 = vmatprep.subr.bf16.mxu1 %v5979_v51  ;;  %vm7893_vm7 = vnez %v7892_v31  ;;  %v7899_v31 = vld [vmem:[#allocation21_spill] sm:$0xff] }
 0x5fe   : > { %5464 = vmatpush3.bf16.msra.mxu0 %v5980_v19  ;;  %v7894_v19 = vld [vmem:[#allocation18_spill] sm:$0xff] }
 0x5ff   : > { %5446 = vmatpush3.bf16.msra.mxu1 %v5979_v51  ;;  %5465 = vmatprep.subr.bf16.mxu0 %v5982_v58  ;;  %vm7895_vm5 = vnez %v7894_v19 }
 0x600   : > { %5447 = vmatprep.subr.bf16.mxu1 %v5981_v26 }
 0x602   : > { %5466 = vmatpush3.bf16.msra.mxu0 %v5982_v58 }
 0x603   : > { %5448 = vmatpush3.bf16.msra.mxu1 %v5981_v26  ;;  %5467 = vmatprep.subr.bf16.mxu0 %v5984_v59 }
 0x604   : > { %5449 = vmatprep.subr.bf16.mxu1 %v5983_v3 }
 0x606   : > { %5468 = vmatpush3.bf16.msra.mxu0 %v5984_v59 }
 0x607   : > { %5450 = vmatpush3.bf16.msra.mxu1 %v5983_v3  ;;  %5469 = vmatprep.subr.bf16.mxu0 %v5985_v11 }
 0x608   : > { %5475 = vmatprep.subr.bf16.mxu1 %v5986_v60 }
 0x60a   : > { %5452 = vmatmul.mubr.msk.bf16.vlgmr.msra.gmra.mxu1 %vm7812_vm0, %v4658_v50  ;;  %5470 = vmatpush3.bf16.msra.mxu0 %v5985_v11  ;;  %vm7885_vm0 = vmmov %vm7867_vm2 }
 0x60b   : > { %5476 = vmatpush3.bf16.msra.mxu1 %v5986_v60  ;;  %5491 = vmatprep.mubr.msk.bf16.mxu1 %vm6763_vm9, %v4679_v18  ;;  %v3786_v36 = vsel %vm7885_vm0, %v3784_v35, %v3785_v7  ;;  %vm7886_vm11 = vmmov %vm7885_vm0 }
 0x60c   : > { %5477 = vmatprep.subr.bf16.mxu1 %v5987_v21  ;;  %5495 = vmatprep.subr.bf16.mxu0 %v5988_v20  ;;  %v3789_v57 = vsel %vm7886_vm11, %v3785_v7, %v3782_v1 }
 0x60d   : > { %5472 = vmatmul.mubr.bf16.vlgmr.msra.gmra.mxu0 %v3539_v25  ;;  %v5997_v25 = vld [vmem:[#allocation5 + $0x5c8] sm:$0xff]   ;;  %v4702_v13 = vpack.c.bf16 %v3789_v57, %v3786_v36 }
 0x60e   : > { %5496 = vmatpush3.bf16.msra.mxu0 %v5988_v20  ;;  %5511 = vmatprep.mubr.msk.bf16.mxu0 %vm7884_vm8, %v4697_v56 }
 0x60f   : > { %5478 = vmatpush3.bf16.msra.mxu1 %v5987_v21  ;;  %5497 = vmatprep.subr.bf16.mxu0 %v5990_v40 }
 0x610   : > { %5479 = vmatprep.subr.bf16.mxu1 %v5989_v47 }
 0x612   : > { %5498 = vmatpush3.bf16.msra.mxu0 %v5990_v40 }
 0x613   : > { %5480 = vmatpush3.bf16.msra.mxu1 %v5989_v47  ;;  %5499 = vmatprep.subr.bf16.mxu0 %v5992_v53 }
 0x614   : > { %5481 = vmatprep.subr.bf16.mxu1 %v5991_v33 }
 0x616   : > { %5500 = vmatpush3.bf16.msra.mxu0 %v5992_v53 }
 0x617   : > { %5482 = vmatpush3.bf16.msra.mxu1 %v5991_v33  ;;  %5501 = vmatprep.subr.bf16.mxu0 %v5994_v15 }
 0x618   : > { %5483 = vmatprep.subr.bf16.mxu1 %v5993_v37 }
 0x61a   : > { %5502 = vmatpush3.bf16.msra.mxu0 %v5994_v15 }
 0x61b   : > { %5484 = vmatpush3.bf16.msra.mxu1 %v5993_v37  ;;  %5503 = vmatprep.subr.bf16.mxu0 %v5996_v39 }
 0x61c   : > { %5485 = vmatprep.subr.bf16.mxu1 %v5995_v28 }
 0x61e   : > { %5504 = vmatpush3.bf16.msra.mxu0 %v5996_v39 }
 0x61f   : > { %5486 = vmatpush3.bf16.msra.mxu1 %v5995_v28  ;;  %5505 = vmatprep.subr.bf16.mxu0 %v5998_v63 }
 0x620   : > { %5487 = vmatprep.subr.bf16.mxu1 %v5997_v25 }
 0x622   : > { %5506 = vmatpush3.bf16.msra.mxu0 %v5998_v63 }
 0x623   : > { %5488 = vmatpush3.bf16.msra.mxu1 %v5997_v25  ;;  %5507 = vmatprep.subr.bf16.mxu0 %v6000_v27 }
 0x624   : > { %5489 = vmatprep.subr.bf16.mxu1 %v5999_v32 }
 0x626   : > { %5508 = vmatpush3.bf16.msra.mxu0 %v6000_v27 }
 0x627   : > { %5490 = vmatpush3.bf16.msra.mxu1 %v5999_v32  ;;  %5509 = vmatprep.subr.bf16.mxu0 %v6001_v41 }
 0x628   : > { %5515 = vmatprep.subr.bf16.mxu1 %v6002_v14 }
 0x62a   : > { %5492 = vmatmul.mubr.msk.bf16.vlgmr.msra.gmra.mxu1 %vm6763_vm9, %v4684_v61  ;;  %5510 = vmatpush3.bf16.msra.mxu0 %v6001_v41  ;;  %vm7891_vm9 = vnez %v7890_v2  ;;  %v6014_v61 = vld [vmem:[#allocation5 + $0x690] sm:$0xff]  }
 0x62b   : > { %5516 = vmatpush3.bf16.msra.mxu1 %v6002_v14  ;;  %5531 = vmatprep.mubr.msk.bf16.mxu1 %vm7887_vm6, %v4714_v42  ;;  %v6009_v42 = vld [vmem:[#allocation5 + $0x658] sm:$0xff]  }
 0x62c   : > { %5517 = vmatprep.subr.bf16.mxu1 %v6003_v30  ;;  %5535 = vmatprep.subr.bf16.mxu0 %v6004_v16 }
 0x62d   : > { %5512 = vmatmul.mubr.msk.bf16.vlgmr.msra.gmra.mxu0 %vm7889_vm3, %v4702_v13 }
 0x62e   : > { %5536 = vmatpush3.bf16.msra.mxu0 %v6004_v16  ;;  %5551 = vmatprep.mubr.msk.bf16.mxu0 %vm7891_vm9, %v4731_v12  ;;  %v6015_v12 = vld [vmem:[#allocation5 + $0x640] sm:$0xff]  }
 0x62f   : > { %5518 = vmatpush3.bf16.msra.mxu1 %v6003_v30  ;;  %5537 = vmatprep.subr.bf16.mxu0 %v6006_v23 }
 0x630   : > { %5519 = vmatprep.subr.bf16.mxu1 %v6005_v34  ;;  %v5393_v51 = vpop.f32.mrf.mxu0 }
 0x632   : > { %5538 = vmatpush3.bf16.msra.mxu0 %v6006_v23  ;;  %v3162_v58 = vpop.f32.mrf.mxu0 }
 0x633   : > { %5520 = vmatpush3.bf16.msra.mxu1 %v6005_v34  ;;  %5539 = vmatprep.subr.bf16.mxu0 %v6008_v22 }
 0x634   : > { %5521 = vmatprep.subr.bf16.mxu1 %v6007_v43  ;;  %v5394_v26 = vpop.f32.mrf.mxu0 }
 0x636   : > { %5540 = vmatpush3.bf16.msra.mxu0 %v6008_v22  ;;  %v3165_v3 = vpop.f32.mrf.mxu0  ;;  %v7896_v22 = vld [vmem:[#allocation13_spill] sm:$0xff] }
 0x637   : > { %5522 = vmatpush3.bf16.msra.mxu1 %v6007_v43  ;;  %5541 = vmatprep.subr.bf16.mxu0 %v6010_v44  ;;  %v7897_v43 = vld [vmem:[#allocation19_spill] sm:$0xff] }
 0x638   : > { %5523 = vmatprep.subr.bf16.mxu1 %v6009_v42 }
 0x63a   : > { %5542 = vmatpush3.bf16.msra.mxu0 %v6010_v44  ;;  %v1580_v44 = vadd.f32 %v7897_v43, %v7896_v22 }
 0x63b   : > { %5524 = vmatpush3.bf16.msra.mxu1 %v6009_v42  ;;  %5543 = vmatprep.subr.bf16.mxu0 %v6012_v46 }
 0x63c   : > { %5525 = vmatprep.subr.bf16.mxu1 %v6011_v10 }
 0x63e   : > { %5544 = vmatpush3.bf16.msra.mxu0 %v6012_v46 }
 0x63f   : > { %5526 = vmatpush3.bf16.msra.mxu1 %v6011_v10  ;;  %5545 = vmatprep.subr.bf16.mxu0 %v6014_v61 }
 0x640   : > { %5527 = vmatprep.subr.bf16.mxu1 %v6013_v55 }
 0x642   : > { %5546 = vmatpush3.bf16.msra.mxu0 %v6014_v61 }
 0x643   : > { %5528 = vmatpush3.bf16.msra.mxu1 %v6013_v55  ;;  %5547 = vmatprep.subr.bf16.mxu0 %v6016_v45 }
 0x644   : > { %5529 = vmatprep.subr.bf16.mxu1 %v6015_v12 }
 0x646   : > { %5548 = vmatpush3.bf16.msra.mxu0 %v6016_v45  ;;  %v2880_v45 = vadd.f32 %v7205_v6, %v1580_v44 }
 0x647   : > { %5530 = vmatpush3.bf16.msra.mxu1 %v6015_v12  ;;  %5549 = vmatprep.subr.bf16.mxu0 %v6017_v17 }
 0x64a   : > { %5532 = vmatmul.mubr.msk.bf16.vlgmr.msra.gmra.mxu1 %vm7893_vm7, %v4718_v24  ;;  %5550 = vmatpush3.bf16.msra.mxu0 %v6017_v17  ;;  %v7898_v17 = vld [vmem:[#allocation11_spill] sm:$0xff] }
 0x64b   : > { %v1578_v19 = vadd.f32 %v7899_v31, %v7898_v17 }
 0x64d   : > { %5552 = vmatmul.mubr.msk.bf16.vlgmr.msra.gmra.mxu0 %vm7895_vm5, %v4736_v48 }
 0x6aa   : > { %v5413_v59 = vpop.f32.mrf.mxu1 }
 0x6ab   : > { %v3268_v40 = vadd.f32 %v5413_v59, %v5393_v51 }
 0x6ac   : > { %v3259_v60 = vpop.f32.mrf.mxu1 }
 0x6ad   : > { %v5433_v11 = vpop.f32.mrf.mxu0  ;;  %v3260_v47 = vadd.f32 %v3259_v60, %v3162_v58 }
 0x6ae   : > { %v5414_v0 = vpop.f32.mrf.mxu1  ;;  %v3412_v53 = vadd.f32 %v5433_v11, %v3268_v40  ;;  %v2878_v11 = vadd.f32 %v7209_v52, %v1578_v19 }
 0x6af   : > { %v3395_v35 = vpop.f32.mrf.mxu0  ;;  %v3271_v15 = vadd.f32 %v5414_v0, %v5394_v26  ;;  %v7901_v0 = vld [vmem:[#allocation20_spill] sm:$0xff] }
 0x6b0   : > { %v3262_v49 = vpop.f32.mrf.mxu1  ;;  %v3410_v37 = vadd.f32 %v3395_v35, %v3260_v47  ;;  %v7900_v35 = vld [vmem:[#allocation14_spill] sm:$0xff] }
 0x6b1   : > { %v5434_v5 = vpop.f32.mrf.mxu0  ;;  %v3263_v63 = vadd.f32 %v3262_v49, %v3165_v3 }
 0x6b2   : > { %v3413_v25 = vadd.f32 %v5434_v5, %v3271_v15  ;;  %v1581_v5 = vadd.f32 %v7901_v0, %v7900_v35 }
 0x6b3   : > { %v3398_v24 = vpop.f32.mrf.mxu0 }
 0x6b4   : > { %v3411_v7 = vadd.f32 %v3398_v24, %v3263_v63 }
 0x6ca   : > { %v5453_v1 = vpop.f32.mrf.mxu1 }
 0x6cb   : > { %v3536_v39 = vadd.f32 %v5453_v1, %v3412_v53 }
 0x6cc   : > { %v3519_v21 = vpop.f32.mrf.mxu1 }
 0x6cd   : > { %v5473_v50 = vpop.f32.mrf.mxu0  ;;  %v3534_v27 = vadd.f32 %v3519_v21, %v3410_v37 }
 0x6ce   : > { %v5454_v38 = vpop.f32.mrf.mxu1  ;;  %v3656_v32 = vadd.f32 %v5473_v50, %v3536_v39 }
 0x6cf   : > { %v3639_v20 = vpop.f32.mrf.mxu0  ;;  %v3537_v14 = vadd.f32 %v5454_v38, %v3413_v25  ;;  %v7903_v38 = vld [vmem:[#allocation22_spill] sm:$0xff] }
 0x6d0   : > { %v3522_v18 = vpop.f32.mrf.mxu1  ;;  %v3654_v36 = vadd.f32 %v3639_v20, %v3534_v27  ;;  %v7902_v20 = vld [vmem:[#allocation12_spill] sm:$0xff] }
 0x6d1   : > { %v5474_v8 = vpop.f32.mrf.mxu0  ;;  %v3535_v16 = vadd.f32 %v3522_v18, %v3411_v7 }
 0x6d2   : > { %v3657_v13 = vadd.f32 %v5474_v8, %v3537_v14  ;;  %v1579_v8 = vadd.f32 %v7903_v38, %v7902_v20 }
 0x6d3   : > { %v3642_v9 = vpop.f32.mrf.mxu0 }
 0x6d4   : > { %v3655_v42 = vadd.f32 %v3642_v9, %v3535_v16 }
 0x6ea   : > { %v5493_v48 = vpop.f32.mrf.mxu1 }
 0x6eb   : > { %v3780_v57 = vadd.f32 %v5493_v48, %v3656_v32  ;;  %v2881_v48 = vadd.f32 %v7207_v62, %v1581_v5 }
 0x6ec   : > { %v3763_v56 = vpop.f32.mrf.mxu1 }
 0x6ed   : > { %v5513_v29 = vpop.f32.mrf.mxu0  ;;  %v3778_v23 = vadd.f32 %v3763_v56, %v3654_v36  ;;  %v2879_v56 = vadd.f32 %v7211_v54, %v1579_v8 }
 0x6ee   : > { %v5494_v28 = vpop.f32.mrf.mxu1  ;;  %v3912_v34 = vadd.f32 %v5513_v29, %v3780_v57 }
 0x6ef   : > { %v3895_v33 = vpop.f32.mrf.mxu0  ;;  %v3781_v46 = vadd.f32 %v5494_v28, %v3657_v13 }
 0x6f0   : > { %v3766_v30 = vpop.f32.mrf.mxu1  ;;  %v3910_v10 = vadd.f32 %v3895_v33, %v3778_v23 }
 0x6f1   : > { %v5514_v41 = vpop.f32.mrf.mxu0  ;;  %v3779_v51 = vadd.f32 %v3766_v30, %v3655_v42 }
 0x6f2   : > { %v3913_v58 = vadd.f32 %v5514_v41, %v3781_v46 }
 0x6f3   : > { %v3898_v2 = vpop.f32.mrf.mxu0 }
 0x6f4   : > { %v3911_v49 = vadd.f32 %v3898_v2, %v3779_v51 }
 0x70a   : > { %v5533_v4 = vpop.f32.mrf.mxu1 }
 0x70b   : > { %v4044_v61 = vadd.f32 %v5533_v4, %v3912_v34 }
 0x70c   : > { %v4027_v55 = vpop.f32.mrf.mxu1 }
 0x70d   : > { %v5553_v12 = vpop.f32.mrf.mxu0  ;;  %v4042_v26 = vadd.f32 %v4027_v55, %v3910_v10 }
 0x70e   : > { %v5534_v59 = vpop.f32.mrf.mxu1  ;;  %v4176_v3 = vadd.f32 %v5553_v12, %v4044_v61 }
 0x70f   : > { %v4159_v60 = vpop.f32.mrf.mxu0  ;;  %v4045_v1 = vadd.f32 %v5534_v59, %v3913_v58 }
 0x710   : > { %v4180_v6 = vadd.f32 %v4176_v3, %v2880_v45  ;;  %v4030_v24 = vpop.f32.mrf.mxu1  ;;  %v4174_v50 = vadd.f32 %v4159_v60, %v4042_v26 }
 0x711   : > { %v5554_v21 = vpop.f32.mrf.mxu0  ;;  %v4043_v52 = vadd.f32 %v4030_v24, %v3911_v49 }
 0x712   : > { %4184 = vst [vmem:[%s176_s19 + $0x10] sm:$0xff] %v4180_v6  ;;  %v4178_v18 = vadd.f32 %v4174_v50, %v2878_v11  ;;  %v4177_v9 = vadd.f32 %v5554_v21, %v4045_v1 }
 0x713   : > { %v4162_v29 = vpop.f32.mrf.mxu0 }
 0x714   : > { %4182 = vst [vmem:[%s176_s19] sm:$0xff] %v4178_v18  ;;  %v4181_v40 = vadd.f32 %v4177_v9, %v2881_v48  ;;  %v4175_v47 = vadd.f32 %v4162_v29, %v4043_v52 }
 0x716   : > { %4185 = vst [vmem:[%s176_s19 + $0x18] sm:$0xff] %v4181_v40  ;;  %v4179_v53 = vadd.f32 %v4175_v47, %v2879_v56 }
 0x718   : > { %4183 = vst [vmem:[%s176_s19 + $0x8] sm:$0xff] %v4179_v53 }
 0x719   : > { %6086 = shalt.err (!%p6083_p0)
}
 0x71a   : > { %s6087_s7 = scalar_lea.hbm %s7542_s28, 512  ;;  %s6091_s24 = scalar_lea.hbm %s7588_s2, 1024 }
 0x71b   : > { %p6088_p5 = scmp.ne.s32.totalorder %s7542_s28, %s6087_s7  ;;  %p6092_p4 = scmp.lt.s32.totalorder %s7542_s28, %s7588_s2 }
 0x71c   : > { %p6093_p6 = scmp.lt.s32.totalorder %s6091_s24, %s6087_s7 }
 0x71d   : > { %p6089_p9 = pnand %p6088_p5, %p7904_p11 }
 0x71e   : > { %p6094_p8 = por %p6093_p6, %p6092_p4 }
 0x71f   : > { %p6090_p1 = pneg %p6089_p9 }
 0x721   : > { %p6095_p3 = pnand %p6094_p8, %p6090_p1 }
 0x723   : > { %6098 = shalt.err (!%p6095_p3)
}
 0x724   : > { %s6155_s18 = smov 128  }
 0x725   : > { %5561 = dma.vmem_to_hbm [thread:$0]  (%p7904_p11), %s7537_s20, 512, %s7542_s28, %s4187_s3, %s6155_s18, %s6155_s18, %s6150_s17  }
 0x726 PF: > { %s4215_s19 = sand.u32 1, %s6129_s9   ;;  %p7905_p7 = scmp.ne.s32.totalorder %s7650_s16, 0 }
 0x727   : > { %p7906_p12 = scmp.ge.s32.totalorder %s6141_s12, 2  ;;  %s4216_s25 = scalar_lea.sflag [#allocation4], %s4215_s19 }
 0x729   : > { %p5572_p10 = pnand %p7906_p12, %p7905_p7 }
 0x72b   : > { %p5573_p2 = pneg %p5572_p10 }
 0x72d   : > { %6124 = dma.done.wait (%p5573_p2), %s4216_s25, 512  }
 0x72e   : > { %6126 = vsyncadd (%p5573_p2), %s4216_s25, 4294966784  ;;  %p16_p13 = scmp.ge.s32.totalorder %s6225_s21, 4   ;;  %s7907_s9 = smov %s6133_s10 }
 0x72f   : > { %s7908_s10 = smov %s6137_s11  ;;  %s7909_s11 = smov %s6242_s29 }
 0x730   : > { %s7910_s12 = smov %s6225_s21  ;;  %18 = sbr.rel (!%p16_p13) target bundleno = 6 (0x6), region = 103 }
 0x735   :  { %4221 = vsyncpa [#allocation3], 1 }
 0x736   :  { %4223 = vsyncpa [#allocation3 + $0x1], 1 }
 0x737   :  { %4224 = vsyncpa [#allocation6], 1 }
 0x738   :  { %4225 = vsyncpa [#allocation4], 1 }
 0x739   :  { %4227 = vsyncpa [#allocation4 + $0x1], 1 }

</bundles_post_ra>
